<compile_context>
chip_gen: v7x
topology: tpu7x:2x2x1
jax: 0.10.0
libtpu: 0.0.40
codegen_flags: <defaults>
</compile_context>

<pallas_src>
import functools

import jax
import jax.numpy as jnp
import numpy as np
from jax import lax
from jax.experimental import pallas as pl
from jax.experimental.pallas import tpu as pltpu

BN_EPS = 1e-5
LEAKY_SLOPE = 0.1


def _round_up(x, m):
    return (x + m - 1) // m * m


# ---------------------------------------------------------------------------
# Pass 1: fused conv (K*K tap loop on the MXU, f32 accumulation) + per-tile
#         BatchNorm partial statistics (sum, M2 about the tile mean).
# ---------------------------------------------------------------------------
def _conv_stats_kernel(x_ref, w_ref, base_ref, conv_ref, stats_ref, acc_ref, *,
                       kernel_size, stride, th, wo_pad, ho, cpad):
    k = kernel_size
    j = pl.program_id(1)
    row0 = j * th * stride          # first padded-input row used by this tile
    rows = th * wo_pad

    for t in range(k * k):
        dh, dw = divmod(t, k)
        wstop = dw + (wo_pad - 1) * stride + 1
        if stride == 1:
            hsl = pl.ds(row0 + dh, th)
            wsl = slice(dw, wstop)
        else:
            # TODO(synk): stride > 1 uses strided in-kernel slices; functional but
            # unexercised by the demo (stride == 1).
            hsl = pl.ds(row0 + dh, th, stride=stride)
            wsl = slice(dw, wstop, stride)
        patch = x_ref[0, hsl, wsl, :]                    # (th, wo_pad, cin_pad) bf16
        patch = patch.reshape(rows, patch.shape[-1])
        prod = jnp.dot(patch, w_ref[t], preferred_element_type=jnp.float32)
        if t == 0:
            acc_ref[...] = prod
        else:
            acc_ref[...] += prod

    conv = acc_ref[...]                                  # (rows, cpad) f32

    # Fake rows / columns introduced by tile padding must not pollute the BN
    # statistics: `base` holds the local output-row index, or a huge sentinel
    # for padded columns, so one compare masks both.
    valid = base_ref[...] < (ho - j * th)                # (rows, 1) bool
    conv = jnp.where(valid, conv, 0.0)
    cnt = jnp.maximum(jnp.sum(valid.astype(jnp.float32)), 1.0)
    tsum = jnp.sum(conv, axis=0, keepdims=True)          # (1, cpad)
    tmean = tsum / cnt
    dev = jnp.where(valid, conv - tmean, 0.0)
    m2 = jnp.sum(dev * dev, axis=0, keepdims=True)       # (1, cpad)

    conv_ref[...] = conv.astype(conv_ref.dtype)          # bf16 intermediate
    stats_ref[...] = jnp.concatenate(
        [jnp.broadcast_to(tsum, (4, cpad)),
         jnp.broadcast_to(m2, (4, cpad))], axis=0)[None]


# ---------------------------------------------------------------------------
# Pass 2: fused BatchNorm affine (one per-channel FMA) + LeakyReLU(0.1).
# ---------------------------------------------------------------------------
def _bn_act_kernel(conv_ref, scale_ref, shift_ref, out_ref):
    y = conv_ref[...].astype(jnp.float32) * scale_ref[...] + shift_ref[...]
    out_ref[...] = jnp.where(y > 0, y, LEAKY_SLOPE * y).astype(out_ref.dtype)


@functools.partial(
    jax.jit,
    static_argnames=("kernel_size", "stride", "padding", "th_tile", "return_nhwc"))
def cnn_block_forward(x_nchw, weight_oihw, gamma, beta, *,
                      kernel_size=3, stride=1, padding=1, th_tile=16,
                      return_nhwc=False):
    """CNNBlock forward: Conv2d(bias=False) -> BatchNorm2d(train stats) -> LeakyReLU."""
    n, cin, h, w = x_nchw.shape
    cout = weight_oihw.shape[0]
    k = kernel_size

    ho = (h + 2 * padding - k) // stride + 1
    wo = (w + 2 * padding - k) // stride + 1
    assert ho > 0 and wo > 0

    th = max(1, min(th_tile, ho))          # output rows per pass-1 tile
    nh = (ho + th - 1) // th
    ho_pad = nh * th
    wo_pad = _round_up(wo, 16)             # bf16 sublane tiling of the intermediate
    cin_pad = _round_up(cin, 8)
    # TODO(synk): Cout << 128 still pads the lane dim to 128 (demo Cout=8 -> 16x
    # inflation of the conv intermediate); real layers should use Cout >= 128.
    cpad = _round_up(cout, 256 if cout >= 256 else 128)

    hin = max((ho_pad - 1) * stride + k, h + 2 * padding)
    win = max((wo_pad - 1) * stride + k, w + 2 * padding)

    rows_per_tile = th * wo_pad
    n_tiles = n * nh
    r_total = n_tiles * rows_per_tile

    # ---- operand prep (cast to bf16 first; one jnp.pad per operand) ---------
    x_nhwc = jnp.transpose(x_nchw.astype(jnp.bfloat16), (0, 2, 3, 1))
    x_p = jnp.pad(x_nhwc, ((0, 0),
                           (padding, hin - h - padding),
                           (padding, win - w - padding),
                           (0, cin_pad - cin)))

    w_taps = jnp.transpose(weight_oihw.astype(jnp.bfloat16), (2, 3, 1, 0))
    w_taps = w_taps.reshape(k * k, cin, cout)
    w_p = jnp.pad(w_taps, ((0, 0), (0, cin_pad - cin), (0, cpad - cout)))

    gamma_p = jnp.pad(gamma.astype(jnp.float32), (0, cpad - cout))
    beta_p = jnp.pad(beta.astype(jnp.float32), (0, cpad - cout))

    # Per-flat-row helper: local output-row index, or a huge sentinel for the
    # fake columns added by wo_pad padding (single compare masks rows + cols).
    r_idx = np.arange(rows_per_tile)
    base = np.where((r_idx % wo_pad) < wo, r_idx // wo_pad, 2 ** 30).astype(np.int32)
    base = jnp.asarray(base.reshape(rows_per_tile, 1))

    # ---- per-generation VMEM budget ------------------------------------------
    vmem_cap = 64 * 1024 * 1024            # safe fallback (v7x size)
    try:
        vmem_cap = int(pltpu.get_tpu_info().vmem_capacity_bytes)
    except Exception:
        pass

    x_blk = hin * _round_up(win, 16) * _round_up(cin_pad, 128) * 2
    w_blk = k * k * _round_up(cin_pad, 16) * cpad * 2
    conv_blk = rows_per_tile * cpad * 2
    stats_blk = 8 * cpad * 4
    acc_blk = rows_per_tile * cpad * 4
    base_blk = rows_per_tile * 128 * 4
    p1_need = 2 * (x_blk + conv_blk + stats_blk + base_blk) + 2 * w_blk + acc_blk

    def _limit(need):
        return min(max(int(1.4 * need), 32 * 1024 * 1024), int(0.85 * vmem_cap))

    cparams1 = pltpu.CompilerParams(
        dimension_semantics=("parallel", "parallel"),
        vmem_limit_bytes=_limit(p1_need))

    kern1 = functools.partial(
        _conv_stats_kernel, kernel_size=k, stride=stride, th=th,
        wo_pad=wo_pad, ho=ho, cpad=cpad)

    conv, stats = pl.pallas_call(
        kern1,
        out_shape=(jax.ShapeDtypeStruct((r_total, cpad), jnp.bfloat16),
                   jax.ShapeDtypeStruct((n_tiles, 8, cpad), jnp.float32)),
        grid_spec=pltpu.PrefetchScalarGridSpec(
            num_scalar_prefetch=0,
            grid=(n, nh),
            in_specs=[
                pl.BlockSpec((1, hin, win, cin_pad), lambda b, j: (b, 0, 0, 0)),
                pl.BlockSpec((k * k, cin_pad, cpad), lambda b, j: (0, 0, 0)),
                pl.BlockSpec((rows_per_tile, 1), lambda b, j: (0, 0)),
            ],
            out_specs=[
                pl.BlockSpec((rows_per_tile, cpad), lambda b, j: (b * nh + j, 0)),
                pl.BlockSpec((1, 8, cpad), lambda b, j: (b * nh + j, 0, 0)),
            ],
            scratch_shapes=[pltpu.VMEM((rows_per_tile, cpad), jnp.float32)],
        ),
        compiler_params=cparams1,
        cost_estimate=pl.CostEstimate(
            flops=2 * r_total * (k * k * cin_pad) * cpad,
            transcendentals=0,
            bytes_accessed=(x_p.size * 2 + w_p.size * 2 + r_total * cpad * 2
                            + n_tiles * 8 * cpad * 4)),
    )(x_p, w_p, base)

    # ---- fold BN (training-mode batch stats) into one per-channel FMA --------
    counts_j = np.maximum(np.minimum(th, ho - np.arange(nh) * th), 0) * wo
    counts = jnp.asarray(np.tile(counts_j.astype(np.float32), n))        # (n_tiles,)
    sums = stats[:, 0, :]                                                # (n_tiles, cpad)
    m2s = stats[:, 4, :]
    total_cnt = jnp.float32(n * ho * wo)
    mean = jnp.sum(sums, axis=0) / total_cnt
    tile_mean = sums / jnp.maximum(counts, 1.0)[:, None]
    m2 = (jnp.sum(m2s, axis=0)
          + jnp.sum(counts[:, None] * (tile_mean - mean[None, :]) ** 2, axis=0))
    var = m2 / total_cnt                              # biased (training) variance
    scale = gamma_p * lax.rsqrt(var + BN_EPS)
    shift = beta_p - mean * scale

    # ---- pass 2: y = conv*scale + shift, LeakyReLU(0.1) -----------------------
    max_rows = max(rows_per_tile, int(0.5 * vmem_cap) // (12 * cpad))
    fold = 1
    for cand in range(n_tiles, 0, -1):
        if n_tiles % cand == 0 and cand * rows_per_tile <= max_rows:
            fold = cand
            break
    tr2 = fold * rows_per_tile
    n2 = r_total // tr2
    p2_need = 2 * (tr2 * cpad * 2 + tr2 * cpad * 4) + 4 * cpad * 4
    cparams2 = pltpu.CompilerParams(
        dimension_semantics=("parallel",),
        vmem_limit_bytes=_limit(p2_need))

    out_flat = pl.pallas_call(
        _bn_act_kernel,
        out_shape=jax.ShapeDtypeStruct((r_total, cpad), jnp.float32),
        grid_spec=pltpu.PrefetchScalarGridSpec(
            num_scalar_prefetch=0,
            grid=(n2,),
            in_specs=[
                pl.BlockSpec((tr2, cpad), lambda i: (i, 0)),
                pl.BlockSpec((1, cpad), lambda i: (0, 0)),
                pl.BlockSpec((1, cpad), lambda i: (0, 0)),
            ],
            out_specs=pl.BlockSpec((tr2, cpad), lambda i: (i, 0)),
        ),
        compiler_params=cparams2,
        cost_estimate=pl.CostEstimate(
            flops=3 * r_total * cpad, transcendentals=0,
            bytes_accessed=r_total * cpad * (2 + 4) + 2 * cpad * 4),
    )(conv, scale.reshape(1, cpad), shift.reshape(1, cpad))

    out_nhwc = out_flat.reshape(n, ho_pad, wo_pad, cpad)[:, :ho, :wo, :cout]
    if return_nhwc:
        return out_nhwc
    # TODO(synk): in a chain of CNNBlocks keep NHWC (return_nhwc=True) and skip
    # this full read+write transpose pass.
    return jnp.transpose(out_nhwc, (0, 3, 1, 2))          # back to NCHW


def _reference_forward(x_nchw, weight_oihw, gamma, beta, stride=1, padding=1,
                       conv_dtype=jnp.float32, round_conv_to_bf16=False):
    # Pure-JAX reference (conv + training-mode BN + LeakyReLU) for validation.
    conv = lax.conv_general_dilated(
        x_nchw.astype(conv_dtype), weight_oihw.astype(conv_dtype),
        window_strides=(stride, stride),
        padding=[(padding, padding), (padding, padding)],
        dimension_numbers=("NCHW", "OIHW", "NCHW"),
        preferred_element_type=jnp.float32,
    )
    mean = jnp.mean(conv, axis=(0, 2, 3), keepdims=True)
    var = jnp.mean((conv - mean) ** 2, axis=(0, 2, 3), keepdims=True)
    if round_conv_to_bf16:
        conv = conv.astype(jnp.bfloat16).astype(jnp.float32)
    x_hat = (conv - mean) * lax.rsqrt(var + BN_EPS)
    y = x_hat * gamma.reshape(1, -1, 1, 1) + beta.reshape(1, -1, 1, 1)
    return jnp.where(y > 0, y, LEAKY_SLOPE * y)


if __name__ == "__main__":
    # Small shapes consistent with the module: N=2, Cin=4, Cout=8, H=W=16, 3x3 conv.
    N, CIN, COUT, H, W, K = 2, 4, 8, 16, 16, 3

    key = jax.random.PRNGKey(0)
    kx, kw = jax.random.split(key)
    x = jax.random.normal(kx, (N, CIN, H, W), dtype=jnp.float32)
    weight = jax.random.normal(kw, (COUT, CIN, K, K), dtype=jnp.float32) * 0.1
    gamma = jnp.ones((COUT,), dtype=jnp.float32)   # PyTorch BatchNorm2d defaults
    beta = jnp.zeros((COUT,), dtype=jnp.float32)

    # th_tile=8 -> 2 row tiles per image (4 pass-1 grid steps) so the cross-tile
    # BN-stat combine is exercised; use larger th_tile for realistic shapes.
    out = cnn_block_forward(x, weight, gamma, beta,
                            kernel_size=K, stride=1, padding=1, th_tile=8)
    out = jax.block_until_ready(out)
    assert out.shape == (N, COUT, H, W), out.shape

    # Tight check vs a reference fed the same bf16 operands and a bf16-rounded
    # conv intermediate (isolates kernel / tiling / BN-stat correctness).
    ref_bf16 = _reference_forward(x, weight, gamma, beta, stride=1, padding=1,
                                  conv_dtype=jnp.bfloat16, round_conv_to_bf16=True)
    err = float(jnp.max(jnp.abs(out - ref_bf16)))
    assert err < 2.5e-2, err

    # Loose check vs the full-f32 module semantics (bf16 operand rounding).
    ref_f32 = _reference_forward(x, weight, gamma, beta, stride=1, padding=1,
                                 conv_dtype=jnp.float32)
    err32 = float(jnp.max(jnp.abs(out - ref_f32)))
    assert err32 < 8e-2, err32

    # Second config: th_tile=6 forces Ho padding (Ho_pad=18 > 16) so the in-kernel
    # validity mask and per-tile-count stat path are exercised.
    out2 = jax.block_until_ready(
        cnn_block_forward(x, weight, gamma, beta, kernel_size=K, stride=1,
                          padding=1, th_tile=6))
    err2 = float(jnp.max(jnp.abs(out2 - ref_bf16)))
    assert err2 < 2.5e-2, err2

    print("KERNEL_OK")
</pallas_src>

<mosaic_0001>
module attributes {stable_mosaic.version = 11 : i64} {
  func.func @_conv_stats_kernel(%arg0: i32, %arg1: i32, %arg2: memref<1x18x18x8xbf16, #tpu.memory_space<vmem>>, %arg3: memref<9x8x128xbf16, #tpu.memory_space<vmem>>, %arg4: memref<128x1xi32, #tpu.memory_space<vmem>>, %arg5: memref<128x128xbf16, #tpu.memory_space<vmem>>, %arg6: memref<1x8x128xf32, #tpu.memory_space<vmem>>, %arg7: memref<128x128xf32, #tpu.memory_space<vmem>>) attributes {dimension_semantics = [#tpu.dimension_semantics<parallel>, #tpu.dimension_semantics<parallel>], iteration_bounds = array<i64: 2, 2>, scalar_prefetch = 0 : i64, scratch_operands = 1 : i64, tpu.core_type = #tpu.core_type<tc>, window_params = [{transform_indices = @transform_0, window_bounds = array<i64: 1, 18, 18, 8>}, {pipeline_mode = #tpu.pipeline_mode<synchronous>, transform_indices = @transform_1, window_bounds = array<i64: 9, 8, 128>}, {pipeline_mode = #tpu.pipeline_mode<synchronous>, transform_indices = @transform_2, window_bounds = array<i64: 128, 1>}, {transform_indices = @transform_3, window_bounds = array<i64: 128, 128>}, {transform_indices = @transform_4, window_bounds = array<i64: 1, 8, 128>}]} {
    %c8_i32 = arith.constant 8 : i32
    %0 = arith.muli %arg1, %c8_i32 : i32
    %c1_i32 = arith.constant 1 : i32
    %1 = arith.muli %0, %c1_i32 : i32
    %c0_i32 = arith.constant 0 : i32
    %2 = arith.addi %1, %c0_i32 : i32
    %c0 = arith.constant 0 : index
    %3 = arith.index_cast %2 : i32 to index
    %c0_0 = arith.constant 0 : index
    %c0_1 = arith.constant 0 : index
    %4 = vector.load %arg2[%c0, %3, %c0_0, %c0_1] : memref<1x18x18x8xbf16, #tpu.memory_space<vmem>>, vector<1x8x16x8xbf16>
    %5 = vector.shape_cast %4 : vector<1x8x16x8xbf16> to vector<8x16x8xbf16>
    %6 = vector.shape_cast %5 : vector<8x16x8xbf16> to vector<128x8xbf16>
    %c0_2 = arith.constant 0 : index
    %c0_3 = arith.constant 0 : index
    %c0_4 = arith.constant 0 : index
    %7 = vector.load %arg3[%c0_2, %c0_3, %c0_4] : memref<9x8x128xbf16, #tpu.memory_space<vmem>>, vector<1x8x128xbf16>
    %8 = vector.shape_cast %7 : vector<1x8x128xbf16> to vector<8x128xbf16>
    %cst = arith.constant dense<0.000000e+00> : vector<128x128xf32>
    %9 = tpu.matmul %6, %8, %cst {dimension_numbers = #tpu.dot_dimension_numbers<[1], [0], [0], [1], [0, 0, 1, 1], [], []>} : vector<128x8xbf16>, vector<8x128xbf16>, vector<128x128xf32> -> vector<128x128xf32>
    %c0_5 = arith.constant 0 : index
    %c0_6 = arith.constant 0 : index
    %10 = vector.load %arg7[%c0_5, %c0_6] : memref<128x128xf32, #tpu.memory_space<vmem>>, vector<128x128xf32>
    tpu.vector_store %arg7[%c0_5, %c0_6], %9 {strides = array<i32>} : memref<128x128xf32, #tpu.memory_space<vmem>>, vector<128x128xf32>,
    %c0_i32_7 = arith.constant 0 : i32
    %11 = arith.addi %1, %c0_i32_7 : i32
    %c0_8 = arith.constant 0 : index
    %12 = arith.index_cast %11 : i32 to index
    %c1 = arith.constant 1 : index
    %c0_9 = arith.constant 0 : index
    %13 = vector.load %arg2[%c0_8, %12, %c1, %c0_9] : memref<1x18x18x8xbf16, #tpu.memory_space<vmem>>, vector<1x8x16x8xbf16>
    %14 = vector.shape_cast %13 : vector<1x8x16x8xbf16> to vector<8x16x8xbf16>
    %15 = vector.shape_cast %14 : vector<8x16x8xbf16> to vector<128x8xbf16>
    %c1_10 = arith.constant 1 : index
    %c0_11 = arith.constant 0 : index
    %c0_12 = arith.constant 0 : index
    %16 = vector.load %arg3[%c1_10, %c0_11, %c0_12] : memref<9x8x128xbf16, #tpu.memory_space<vmem>>, vector<1x8x128xbf16>
    %17 = vector.shape_cast %16 : vector<1x8x128xbf16> to vector<8x128xbf16>
    %cst_13 = arith.constant dense<0.000000e+00> : vector<128x128xf32>
    %18 = tpu.matmul %15, %17, %cst_13 {dimension_numbers = #tpu.dot_dimension_numbers<[1], [0], [0], [1], [0, 0, 1, 1], [], []>} : vector<128x8xbf16>, vector<8x128xbf16>, vector<128x128xf32> -> vector<128x128xf32>
    %c0_14 = arith.constant 0 : index
    %c0_15 = arith.constant 0 : index
    %19 = vector.load %arg7[%c0_14, %c0_15] : memref<128x128xf32, #tpu.memory_space<vmem>>, vector<128x128xf32>
    %20 = arith.addf %19, %18 : vector<128x128xf32>
    %c0_16 = arith.constant 0 : index
    %c0_17 = arith.constant 0 : index
    %21 = vector.load %arg7[%c0_16, %c0_17] : memref<128x128xf32, #tpu.memory_space<vmem>>, vector<128x128xf32>
    tpu.vector_store %arg7[%c0_16, %c0_17], %20 {strides = array<i32>} : memref<128x128xf32, #tpu.memory_space<vmem>>, vector<128x128xf32>,
    %c0_i32_18 = arith.constant 0 : i32
    %22 = arith.addi %1, %c0_i32_18 : i32
    %c0_19 = arith.constant 0 : index
    %23 = arith.index_cast %22 : i32 to index
    %c2 = arith.constant 2 : index
    %c0_20 = arith.constant 0 : index
    %24 = vector.load %arg2[%c0_19, %23, %c2, %c0_20] : memref<1x18x18x8xbf16, #tpu.memory_space<vmem>>, vector<1x8x16x8xbf16>
    %25 = vector.shape_cast %24 : vector<1x8x16x8xbf16> to vector<8x16x8xbf16>
    %26 = vector.shape_cast %25 : vector<8x16x8xbf16> to vector<128x8xbf16>
    %c2_21 = arith.constant 2 : index
    %c0_22 = arith.constant 0 : index
    %c0_23 = arith.constant 0 : index
    %27 = vector.load %arg3[%c2_21, %c0_22, %c0_23] : memref<9x8x128xbf16, #tpu.memory_space<vmem>>, vector<1x8x128xbf16>
    %28 = vector.shape_cast %27 : vector<1x8x128xbf16> to vector<8x128xbf16>
    %cst_24 = arith.constant dense<0.000000e+00> : vector<128x128xf32>
    %29 = tpu.matmul %26, %28, %cst_24 {dimension_numbers = #tpu.dot_dimension_numbers<[1], [0], [0], [1], [0, 0, 1, 1], [], []>} : vector<128x8xbf16>, vector<8x128xbf16>, vector<128x128xf32> -> vector<128x128xf32>
    %c0_25 = arith.constant 0 : index
    %c0_26 = arith.constant 0 : index
    %30 = vector.load %arg7[%c0_25, %c0_26] : memref<128x128xf32, #tpu.memory_space<vmem>>, vector<128x128xf32>
    %31 = arith.addf %30, %29 : vector<128x128xf32>
    %c0_27 = arith.constant 0 : index
    %c0_28 = arith.constant 0 : index
    %32 = vector.load %arg7[%c0_27, %c0_28] : memref<128x128xf32, #tpu.memory_space<vmem>>, vector<128x128xf32>
    tpu.vector_store %arg7[%c0_27, %c0_28], %31 {strides = array<i32>} : memref<128x128xf32, #tpu.memory_space<vmem>>, vector<128x128xf32>,
    %c1_i32_29 = arith.constant 1 : i32
    %33 = arith.addi %1, %c1_i32_29 : i32
    %c0_30 = arith.constant 0 : index
    %34 = arith.index_cast %33 : i32 to index
    %c0_31 = arith.constant 0 : index
    %c0_32 = arith.constant 0 : index
    %35 = vector.load %arg2[%c0_30, %34, %c0_31, %c0_32] : memref<1x18x18x8xbf16, #tpu.memory_space<vmem>>, vector<1x8x16x8xbf16>
    %36 = vector.shape_cast %35 : vector<1x8x16x8xbf16> to vector<8x16x8xbf16>
    %37 = vector.shape_cast %36 : vector<8x16x8xbf16> to vector<128x8xbf16>
    %c3 = arith.constant 3 : index
    %c0_33 = arith.constant 0 : index
    %c0_34 = arith.constant 0 : index
    %38 = vector.load %arg3[%c3, %c0_33, %c0_34] : memref<9x8x128xbf16, #tpu.memory_space<vmem>>, vector<1x8x128xbf16>
    %39 = vector.shape_cast %38 : vector<1x8x128xbf16> to vector<8x128xbf16>
    %cst_35 = arith.constant dense<0.000000e+00> : vector<128x128xf32>
    %40 = tpu.matmul %37, %39, %cst_35 {dimension_numbers = #tpu.dot_dimension_numbers<[1], [0], [0], [1], [0, 0, 1, 1], [], []>} : vector<128x8xbf16>, vector<8x128xbf16>, vector<128x128xf32> -> vector<128x128xf32>
    %c0_36 = arith.constant 0 : index
    %c0_37 = arith.constant 0 : index
    %41 = vector.load %arg7[%c0_36, %c0_37] : memref<128x128xf32, #tpu.memory_space<vmem>>, vector<128x128xf32>
    %42 = arith.addf %41, %40 : vector<128x128xf32>
    %c0_38 = arith.constant 0 : index
    %c0_39 = arith.constant 0 : index
    %43 = vector.load %arg7[%c0_38, %c0_39] : memref<128x128xf32, #tpu.memory_space<vmem>>, vector<128x128xf32>
    tpu.vector_store %arg7[%c0_38, %c0_39], %42 {strides = array<i32>} : memref<128x128xf32, #tpu.memory_space<vmem>>, vector<128x128xf32>,
    %c1_i32_40 = arith.constant 1 : i32
    %44 = arith.addi %1, %c1_i32_40 : i32
    %c0_41 = arith.constant 0 : index
    %45 = arith.index_cast %44 : i32 to index
    %c1_42 = arith.constant 1 : index
    %c0_43 = arith.constant 0 : index
    %46 = vector.load %arg2[%c0_41, %45, %c1_42, %c0_43] : memref<1x18x18x8xbf16, #tpu.memory_space<vmem>>, vector<1x8x16x8xbf16>
    %47 = vector.shape_cast %46 : vector<1x8x16x8xbf16> to vector<8x16x8xbf16>
    %48 = vector.shape_cast %47 : vector<8x16x8xbf16> to vector<128x8xbf16>
    %c4 = arith.constant 4 : index
    %c0_44 = arith.constant 0 : index
    %c0_45 = arith.constant 0 : index
    %49 = vector.load %arg3[%c4, %c0_44, %c0_45] : memref<9x8x128xbf16, #tpu.memory_space<vmem>>, vector<1x8x128xbf16>
    %50 = vector.shape_cast %49 : vector<1x8x128xbf16> to vector<8x128xbf16>
    %cst_46 = arith.constant dense<0.000000e+00> : vector<128x128xf32>
    %51 = tpu.matmul %48, %50, %cst_46 {dimension_numbers = #tpu.dot_dimension_numbers<[1], [0], [0], [1], [0, 0, 1, 1], [], []>} : vector<128x8xbf16>, vector<8x128xbf16>, vector<128x128xf32> -> vector<128x128xf32>
    %c0_47 = arith.constant 0 : index
    %c0_48 = arith.constant 0 : index
    %52 = vector.load %arg7[%c0_47, %c0_48] : memref<128x128xf32, #tpu.memory_space<vmem>>, vector<128x128xf32>
    %53 = arith.addf %52, %51 : vector<128x128xf32>
    %c0_49 = arith.constant 0 : index
    %c0_50 = arith.constant 0 : index
    %54 = vector.load %arg7[%c0_49, %c0_50] : memref<128x128xf32, #tpu.memory_space<vmem>>, vector<128x128xf32>
    tpu.vector_store %arg7[%c0_49, %c0_50], %53 {strides = array<i32>} : memref<128x128xf32, #tpu.memory_space<vmem>>, vector<128x128xf32>,
    %c1_i32_51 = arith.constant 1 : i32
    %55 = arith.addi %1, %c1_i32_51 : i32
    %c0_52 = arith.constant 0 : index
    %56 = arith.index_cast %55 : i32 to index
    %c2_53 = arith.constant 2 : index
    %c0_54 = arith.constant 0 : index
    %57 = vector.load %arg2[%c0_52, %56, %c2_53, %c0_54] : memref<1x18x18x8xbf16, #tpu.memory_space<vmem>>, vector<1x8x16x8xbf16>
    %58 = vector.shape_cast %57 : vector<1x8x16x8xbf16> to vector<8x16x8xbf16>
    %59 = vector.shape_cast %58 : vector<8x16x8xbf16> to vector<128x8xbf16>
    %c5 = arith.constant 5 : index
    %c0_55 = arith.constant 0 : index
    %c0_56 = arith.constant 0 : index
    %60 = vector.load %arg3[%c5, %c0_55, %c0_56] : memref<9x8x128xbf16, #tpu.memory_space<vmem>>, vector<1x8x128xbf16>
    %61 = vector.shape_cast %60 : vector<1x8x128xbf16> to vector<8x128xbf16>
    %cst_57 = arith.constant dense<0.000000e+00> : vector<128x128xf32>
    %62 = tpu.matmul %59, %61, %cst_57 {dimension_numbers = #tpu.dot_dimension_numbers<[1], [0], [0], [1], [0, 0, 1, 1], [], []>} : vector<128x8xbf16>, vector<8x128xbf16>, vector<128x128xf32> -> vector<128x128xf32>
    %c0_58 = arith.constant 0 : index
    %c0_59 = arith.constant 0 : index
    %63 = vector.load %arg7[%c0_58, %c0_59] : memref<128x128xf32, #tpu.memory_space<vmem>>, vector<128x128xf32>
    %64 = arith.addf %63, %62 : vector<128x128xf32>
    %c0_60 = arith.constant 0 : index
    %c0_61 = arith.constant 0 : index
    %65 = vector.load %arg7[%c0_60, %c0_61] : memref<128x128xf32, #tpu.memory_space<vmem>>, vector<128x128xf32>
    tpu.vector_store %arg7[%c0_60, %c0_61], %64 {strides = array<i32>} : memref<128x128xf32, #tpu.memory_space<vmem>>, vector<128x128xf32>,
    %c2_i32 = arith.constant 2 : i32
    %66 = arith.addi %1, %c2_i32 : i32
    %c0_62 = arith.constant 0 : index
    %67 = arith.index_cast %66 : i32 to index
    %c0_63 = arith.constant 0 : index
    %c0_64 = arith.constant 0 : index
    %68 = vector.load %arg2[%c0_62, %67, %c0_63, %c0_64] : memref<1x18x18x8xbf16, #tpu.memory_space<vmem>>, vector<1x8x16x8xbf16>
    %69 = vector.shape_cast %68 : vector<1x8x16x8xbf16> to vector<8x16x8xbf16>
    %70 = vector.shape_cast %69 : vector<8x16x8xbf16> to vector<128x8xbf16>
    %c6 = arith.constant 6 : index
    %c0_65 = arith.constant 0 : index
    %c0_66 = arith.constant 0 : index
    %71 = vector.load %arg3[%c6, %c0_65, %c0_66] : memref<9x8x128xbf16, #tpu.memory_space<vmem>>, vector<1x8x128xbf16>
    %72 = vector.shape_cast %71 : vector<1x8x128xbf16> to vector<8x128xbf16>
    %cst_67 = arith.constant dense<0.000000e+00> : vector<128x128xf32>
    %73 = tpu.matmul %70, %72, %cst_67 {dimension_numbers = #tpu.dot_dimension_numbers<[1], [0], [0], [1], [0, 0, 1, 1], [], []>} : vector<128x8xbf16>, vector<8x128xbf16>, vector<128x128xf32> -> vector<128x128xf32>
    %c0_68 = arith.constant 0 : index
    %c0_69 = arith.constant 0 : index
    %74 = vector.load %arg7[%c0_68, %c0_69] : memref<128x128xf32, #tpu.memory_space<vmem>>, vector<128x128xf32>
    %75 = arith.addf %74, %73 : vector<128x128xf32>
    %c0_70 = arith.constant 0 : index
    %c0_71 = arith.constant 0 : index
    %76 = vector.load %arg7[%c0_70, %c0_71] : memref<128x128xf32, #tpu.memory_space<vmem>>, vector<128x128xf32>
    tpu.vector_store %arg7[%c0_70, %c0_71], %75 {strides = array<i32>} : memref<128x128xf32, #tpu.memory_space<vmem>>, vector<128x128xf32>,
    %c2_i32_72 = arith.constant 2 : i32
    %77 = arith.addi %1, %c2_i32_72 : i32
    %c0_73 = arith.constant 0 : index
    %78 = arith.index_cast %77 : i32 to index
    %c1_74 = arith.constant 1 : index
    %c0_75 = arith.constant 0 : index
    %79 = vector.load %arg2[%c0_73, %78, %c1_74, %c0_75] : memref<1x18x18x8xbf16, #tpu.memory_space<vmem>>, vector<1x8x16x8xbf16>
    %80 = vector.shape_cast %79 : vector<1x8x16x8xbf16> to vector<8x16x8xbf16>
    %81 = vector.shape_cast %80 : vector<8x16x8xbf16> to vector<128x8xbf16>
    %c7 = arith.constant 7 : index
    %c0_76 = arith.constant 0 : index
    %c0_77 = arith.constant 0 : index
    %82 = vector.load %arg3[%c7, %c0_76, %c0_77] : memref<9x8x128xbf16, #tpu.memory_space<vmem>>, vector<1x8x128xbf16>
    %83 = vector.shape_cast %82 : vector<1x8x128xbf16> to vector<8x128xbf16>
    %cst_78 = arith.constant dense<0.000000e+00> : vector<128x128xf32>
    %84 = tpu.matmul %81, %83, %cst_78 {dimension_numbers = #tpu.dot_dimension_numbers<[1], [0], [0], [1], [0, 0, 1, 1], [], []>} : vector<128x8xbf16>, vector<8x128xbf16>, vector<128x128xf32> -> vector<128x128xf32>
    %c0_79 = arith.constant 0 : index
    %c0_80 = arith.constant 0 : index
    %85 = vector.load %arg7[%c0_79, %c0_80] : memref<128x128xf32, #tpu.memory_space<vmem>>, vector<128x128xf32>
    %86 = arith.addf %85, %84 : vector<128x128xf32>
    %c0_81 = arith.constant 0 : index
    %c0_82 = arith.constant 0 : index
    %87 = vector.load %arg7[%c0_81, %c0_82] : memref<128x128xf32, #tpu.memory_space<vmem>>, vector<128x128xf32>
    tpu.vector_store %arg7[%c0_81, %c0_82], %86 {strides = array<i32>} : memref<128x128xf32, #tpu.memory_space<vmem>>, vector<128x128xf32>,
    %c2_i32_83 = arith.constant 2 : i32
    %88 = arith.addi %1, %c2_i32_83 : i32
    %c0_84 = arith.constant 0 : index
    %89 = arith.index_cast %88 : i32 to index
    %c2_85 = arith.constant 2 : index
    %c0_86 = arith.constant 0 : index
    %90 = vector.load %arg2[%c0_84, %89, %c2_85, %c0_86] : memref<1x18x18x8xbf16, #tpu.memory_space<vmem>>, vector<1x8x16x8xbf16>
    %91 = vector.shape_cast %90 : vector<1x8x16x8xbf16> to vector<8x16x8xbf16>
    %92 = vector.shape_cast %91 : vector<8x16x8xbf16> to vector<128x8xbf16>
    %c8 = arith.constant 8 : index
    %c0_87 = arith.constant 0 : index
    %c0_88 = arith.constant 0 : index
    %93 = vector.load %arg3[%c8, %c0_87, %c0_88] : memref<9x8x128xbf16, #tpu.memory_space<vmem>>, vector<1x8x128xbf16>
    %94 = vector.shape_cast %93 : vector<1x8x128xbf16> to vector<8x128xbf16>
    %cst_89 = arith.constant dense<0.000000e+00> : vector<128x128xf32>
    %95 = tpu.matmul %92, %94, %cst_89 {dimension_numbers = #tpu.dot_dimension_numbers<[1], [0], [0], [1], [0, 0, 1, 1], [], []>} : vector<128x8xbf16>, vector<8x128xbf16>, vector<128x128xf32> -> vector<128x128xf32>
    %c0_90 = arith.constant 0 : index
    %c0_91 = arith.constant 0 : index
    %96 = vector.load %arg7[%c0_90, %c0_91] : memref<128x128xf32, #tpu.memory_space<vmem>>, vector<128x128xf32>
    %97 = arith.addf %96, %95 : vector<128x128xf32>
    %c0_92 = arith.constant 0 : index
    %c0_93 = arith.constant 0 : index
    %98 = vector.load %arg7[%c0_92, %c0_93] : memref<128x128xf32, #tpu.memory_space<vmem>>, vector<128x128xf32>
    tpu.vector_store %arg7[%c0_92, %c0_93], %97 {strides = array<i32>} : memref<128x128xf32, #tpu.memory_space<vmem>>, vector<128x128xf32>,
    %c0_94 = arith.constant 0 : index
    %c0_95 = arith.constant 0 : index
    %99 = vector.load %arg7[%c0_94, %c0_95] : memref<128x128xf32, #tpu.memory_space<vmem>>, vector<128x128xf32>
    %c0_96 = arith.constant 0 : index
    %c0_97 = arith.constant 0 : index
    %100 = vector.load %arg4[%c0_96, %c0_97] : memref<128x1xi32, #tpu.memory_space<vmem>>, vector<128x1xi32>
    %c8_i32_98 = arith.constant 8 : i32
    %101 = arith.muli %arg1, %c8_i32_98 : i32
    %c16_i32 = arith.constant 16 : i32
    %102 = arith.subi %c16_i32, %101 : i32
    %103 = vector.broadcast %102 : i32 to vector<128x1xi32>
    %104 = arith.cmpi slt, %100, %103 : vector<128x1xi32>
    %cst_99 = arith.constant 0.000000e+00 : f32
    %105 = vector.shape_cast %104 : vector<128x1xi1> to vector<128x1xi1>
    %106 = vector.broadcast %105 : vector<128x1xi1> to vector<128x128xi1>
    %107 = vector.broadcast %cst_99 : f32 to vector<128x128xf32>
    %108 = arith.select %106, %99, %107 : vector<128x128xi1>, vector<128x128xf32>
    %109 = arith.extui %104 : vector<128x1xi1> to vector<128x1xi32>
    %110 = arith.sitofp %109 : vector<128x1xi32> to vector<128x1xf32>
    %111 = vector.shape_cast %110 : vector<128x1xf32> to vector<1x128x1xf32>
    %cst_100 = arith.constant dense<0.000000e+00> : vector<1xf32>
    %112 = vector.multi_reduction <add>, %111, %cst_100 [1, 2] : vector<1x128x1xf32> to vector<1xf32>
    %113 = vector.shape_cast %112 : vector<1xf32> to vector<1x1x1xf32>
    %114 = vector.extract %113[0, 0, 0] : f32 from vector<1x1x1xf32>
    %cst_101 = arith.constant 1.000000e+00 : f32
    %115 = arith.maximumf %114, %cst_101 : f32
    %cst_102 = arith.constant dense<0.000000e+00> : vector<128xf32>
    %116 = vector.multi_reduction <add>, %108, %cst_102 [0] : vector<128x128xf32> to vector<128xf32>
    %117 = vector.shape_cast %116 : vector<128xf32> to vector<1x128xf32>
    %118 = vector.broadcast %115 : f32 to vector<1x128xf32>
    %119 = arith.divf %117, %118 : vector<1x128xf32>
    %120 = vector.broadcast %119 : vector<1x128xf32> to vector<128x128xf32>
    %121 = arith.subf %108, %120 : vector<128x128xf32>
    %cst_103 = arith.constant 0.000000e+00 : f32
    %122 = vector.shape_cast %104 : vector<128x1xi1> to vector<128x1xi1>
    %123 = vector.broadcast %122 : vector<128x1xi1> to vector<128x128xi1>
    %124 = vector.broadcast %cst_103 : f32 to vector<128x128xf32>
    %125 = arith.select %123, %121, %124 : vector<128x128xi1>, vector<128x128xf32>
    %126 = arith.mulf %125, %125 : vector<128x128xf32>
    %cst_104 = arith.constant dense<0.000000e+00> : vector<128xf32>
    %127 = vector.multi_reduction <add>, %126, %cst_104 [0] : vector<128x128xf32> to vector<128xf32>
    %128 = vector.shape_cast %127 : vector<128xf32> to vector<1x128xf32>
    %129 = arith.truncf %108 : vector<128x128xf32> to vector<128x128xbf16>
    %c0_105 = arith.constant 0 : index
    %c0_106 = arith.constant 0 : index
    %130 = vector.load %arg5[%c0_105, %c0_106] : memref<128x128xbf16, #tpu.memory_space<vmem>>, vector<128x128xbf16>
    tpu.vector_store %arg5[%c0_105, %c0_106], %129 {strides = array<i32>} : memref<128x128xbf16, #tpu.memory_space<vmem>>, vector<128x128xbf16>,
    %131 = vector.shape_cast %117 : vector<1x128xf32> to vector<1x128xf32>
    %132 = vector.broadcast %131 : vector<1x128xf32> to vector<4x128xf32>
    %133 = vector.shape_cast %128 : vector<1x128xf32> to vector<1x128xf32>
    %134 = vector.broadcast %133 : vector<1x128xf32> to vector<4x128xf32>
    %135 = tpu.concatenate %132, %134 in 0 : vector<4x128xf32>, vector<4x128xf32> -> vector<8x128xf32>
    %136 = vector.shape_cast %135 : vector<8x128xf32> to vector<1x8x128xf32>
    %c0_107 = arith.constant 0 : index
    %c0_108 = arith.constant 0 : index
    %c0_109 = arith.constant 0 : index
    %137 = vector.load %arg6[%c0_107, %c0_108, %c0_109] : memref<1x8x128xf32, #tpu.memory_space<vmem>>, vector<1x8x128xf32>
    tpu.vector_store %arg6[%c0_107, %c0_108, %c0_109], %136 {strides = array<i32>} : memref<1x8x128xf32, #tpu.memory_space<vmem>>, vector<1x8x128xf32>,
    return
  }
  func.func @transform_0(%arg0: i32, %arg1: i32) -> (i32, i32, i32, i32) {
    %c0_i32 = arith.constant 0 : i32
    %c0_i32_0 = arith.constant 0 : i32
    %c0_i32_1 = arith.constant 0 : i32
    %c0_i32_2 = arith.constant 0 : i32
    return %arg0, %c0_i32, %c0_i32_0, %c0_i32_1 : i32, i32, i32, i32
  }
  func.func @transform_1(%arg0: i32, %arg1: i32) -> (i32, i32, i32) {
    %c0_i32 = arith.constant 0 : i32
    %c0_i32_0 = arith.constant 0 : i32
    %c0_i32_1 = arith.constant 0 : i32
    %c0_i32_2 = arith.constant 0 : i32
    return %c0_i32, %c0_i32_0, %c0_i32_1 : i32, i32, i32
  }
  func.func @transform_2(%arg0: i32, %arg1: i32) -> (i32, i32) {
    %c0_i32 = arith.constant 0 : i32
    %c0_i32_0 = arith.constant 0 : i32
    %c0_i32_1 = arith.constant 0 : i32
    return %c0_i32, %c0_i32_0 : i32, i32
  }
  func.func @transform_3(%arg0: i32, %arg1: i32) -> (i32, i32) {
    %c2_i32 = arith.constant 2 : i32
    %0 = arith.muli %arg0, %c2_i32 : i32
    %1 = arith.addi %0, %arg1 : i32
    %c0_i32 = arith.constant 0 : i32
    %c0_i32_0 = arith.constant 0 : i32
    return %1, %c0_i32 : i32, i32
  }
  func.func @transform_4(%arg0: i32, %arg1: i32) -> (i32, i32, i32) {
    %c2_i32 = arith.constant 2 : i32
    %0 = arith.muli %arg0, %c2_i32 : i32
    %1 = arith.addi %0, %arg1 : i32
    %c0_i32 = arith.constant 0 : i32
    %c0_i32_0 = arith.constant 0 : i32
    %c0_i32_1 = arith.constant 0 : i32
    return %1, %c0_i32, %c0_i32_0 : i32, i32, i32
  }
}

module attributes {stable_mosaic.version = 11 : i64} {
  func.func @_bn_act_kernel(%arg0: i32, %arg1: memref<512x128xbf16, #tpu.memory_space<vmem>>, %arg2: memref<1x128xf32, #tpu.memory_space<vmem>>, %arg3: memref<1x128xf32, #tpu.memory_space<vmem>>, %arg4: memref<512x128xf32, #tpu.memory_space<vmem>>) attributes {dimension_semantics = [#tpu.dimension_semantics<parallel>], iteration_bounds = array<i64: 1>, scalar_prefetch = 0 : i64, scratch_operands = 0 : i64, tpu.core_type = #tpu.core_type<tc>, window_params = [{transform_indices = @transform_0, window_bounds = array<i64: 512, 128>}, {pipeline_mode = #tpu.pipeline_mode<synchronous>, transform_indices = @transform_1, window_bounds = array<i64: 1, 128>}, {pipeline_mode = #tpu.pipeline_mode<synchronous>, transform_indices = @transform_2, window_bounds = array<i64: 1, 128>}, {transform_indices = @transform_3, window_bounds = array<i64: 512, 128>}]} {
    %c0 = arith.constant 0 : index
    %c0_0 = arith.constant 0 : index
    %0 = vector.load %arg1[%c0, %c0_0] : memref<512x128xbf16, #tpu.memory_space<vmem>>, vector<512x128xbf16>
    %1 = arith.extf %0 : vector<512x128xbf16> to vector<512x128xf32>
    %c0_1 = arith.constant 0 : index
    %c0_2 = arith.constant 0 : index
    %2 = vector.load %arg2[%c0_1, %c0_2] : memref<1x128xf32, #tpu.memory_space<vmem>>, vector<1x128xf32>
    %3 = vector.broadcast %2 : vector<1x128xf32> to vector<512x128xf32>
    %4 = arith.mulf %1, %3 : vector<512x128xf32>
    %c0_3 = arith.constant 0 : index
    %c0_4 = arith.constant 0 : index
    %5 = vector.load %arg3[%c0_3, %c0_4] : memref<1x128xf32, #tpu.memory_space<vmem>>, vector<1x128xf32>
    %6 = vector.broadcast %5 : vector<1x128xf32> to vector<512x128xf32>
    %7 = arith.addf %4, %6 : vector<512x128xf32>
    %cst = arith.constant 0.000000e+00 : f32
    %8 = vector.broadcast %cst : f32 to vector<512x128xf32>
    %9 = arith.cmpf ogt, %7, %8 : vector<512x128xf32>
    %cst_5 = arith.constant 1.000000e-01 : f32
    %10 = vector.broadcast %cst_5 : f32 to vector<512x128xf32>
    %11 = arith.mulf %10, %7 : vector<512x128xf32>
    %12 = arith.select %9, %7, %11 : vector<512x128xi1>, vector<512x128xf32>
    %c0_6 = arith.constant 0 : index
    %c0_7 = arith.constant 0 : index
    %13 = vector.load %arg4[%c0_6, %c0_7] : memref<512x128xf32, #tpu.memory_space<vmem>>, vector<512x128xf32>
    tpu.vector_store %arg4[%c0_6, %c0_7], %12 {strides = array<i32>} : memref<512x128xf32, #tpu.memory_space<vmem>>, vector<512x128xf32>,
    return
  }
  func.func @transform_0(%arg0: i32) -> (i32, i32) {
    %c0_i32 = arith.constant 0 : i32
    %c0_i32_0 = arith.constant 0 : i32
    return %arg0, %c0_i32 : i32, i32
  }
  func.func @transform_1(%arg0: i32) -> (i32, i32) {
    %c0_i32 = arith.constant 0 : i32
    %c0_i32_0 = arith.constant 0 : i32
    %c0_i32_1 = arith.constant 0 : i32
    return %c0_i32, %c0_i32_0 : i32, i32
  }
  func.func @transform_2(%arg0: i32) -> (i32, i32) {
    %c0_i32 = arith.constant 0 : i32
    %c0_i32_0 = arith.constant 0 : i32
    %c0_i32_1 = arith.constant 0 : i32
    return %c0_i32, %c0_i32_0 : i32, i32
  }
  func.func @transform_3(%arg0: i32) -> (i32, i32) {
    %c0_i32 = arith.constant 0 : i32
    %c0_i32_0 = arith.constant 0 : i32
    return %arg0, %c0_i32 : i32, i32
  }
}

</mosaic_0001>

<bundles_post_ra>
// kernel: cnn_block_forward.3
= control target key start
LH: loop header
LB: loop body
LE: loop exit
PB: predicated region body
PF: predicated region fallthrough
CT: control target
= control target key end

     0   :  { %s1151_s0 = inlined_call_operand.vmem [shape: bf16[512,128], index: 0, kind: input, shape index: {}]   ;;  %s1152_s1 = inlined_call_operand.vmem [shape: f32[1,128], index: 1, kind: input, shape index: {}]   ;;  %s1153_s2 = inlined_call_operand.vmem [shape: f32[1,128], index: 2, kind: input, shape index: {}]   ;;  %s1154_s3 = inlined_call_operand.vmem [shape: f32[512,128], index: 3, kind: output, shape index: {}]  }
   0x1   :  { %v547_v0 = vld [vmem:[%s1151_s0] sm:$0xff]   ;;  %v674_v4 = vld [vmem:[%s1151_s0 + $0x8] sm:$0xff]   ;;  %v675_v5 = vld [vmem:[%s1151_s0 + $0x10] sm:$0xff]  }
   0x2   :  { %v731_v1 = vld [vmem:[%s1152_s1] ss:$0 sm:$0xff]  ;;  %v548_v2 = vunpack.c.l.bf16 %v547_v0  ;;  %v549_v3 = vunpack.c.h.bf16 %v547_v0  ;;  %v676_v6 = vld [vmem:[%s1151_s0 + $0x18] sm:$0xff]   ;;  %v552_v8 = vunpack.c.l.bf16 %v674_v4  ;;  %v553_v9 = vunpack.c.h.bf16 %v674_v4  ;;  %v678_v36 = vld [vmem:[%s1151_s0 + $0x28] sm:$0xff]  }
   0x3   :  { %v745_v7 = vld [vmem:[%s1153_s2] ss:$0 sm:$0xff]  ;;  %v556_v10 = vunpack.c.l.bf16 %v675_v5  ;;  %v557_v11 = vunpack.c.h.bf16 %v675_v5  ;;  %v560_v14 = vunpack.c.l.bf16 %v676_v6  ;;  %v561_v15 = vunpack.c.h.bf16 %v676_v6  ;;  %v679_v48 = vld [vmem:[%s1151_s0 + $0x30] sm:$0xff]   ;;  %v680_v55 = vld [vmem:[%s1151_s0 + $0x38] sm:$0xff]  }
   0x4   :  { %v149_v12 = vmul.f32 %v548_v2, %v731_v1  ;;  %v150_v13 = vmul.f32 %v549_v3, %v731_v1  ;;  %v151_v16 = vmul.f32 %v552_v8, %v731_v1  ;;  %v152_v17 = vmul.f32 %v553_v9, %v731_v1  ;;  %v677_v28 = vld [vmem:[%s1151_s0 + $0x20] sm:$0xff]  }
   0x5   :  { %v153_v18 = vmul.f32 %v556_v10, %v731_v1  ;;  %v154_v19 = vmul.f32 %v557_v11, %v731_v1  ;;  %v155_v22 = vmul.f32 %v560_v14, %v731_v1  ;;  %v156_v23 = vmul.f32 %v561_v15, %v731_v1  ;;  %v681_v14 = vld [vmem:[%s1151_s0 + $0x40] sm:$0xff]  }
   0x6   :  { %v220_v20 = vadd.f32 %v745_v7, %v149_v12  ;;  %v221_v21 = vadd.f32 %v745_v7, %v150_v13  ;;  %v222_v24 = vadd.f32 %v745_v7, %v151_v16  ;;  %v223_v25 = vadd.f32 %v745_v7, %v152_v17 }
   0x7   :  { %v224_v26 = vadd.f32 %v745_v7, %v153_v18  ;;  %v225_v27 = vadd.f32 %v745_v7, %v154_v19  ;;  %v226_v41 = vadd.f32 %v745_v7, %v155_v22  ;;  %v227_v42 = vadd.f32 %v745_v7, %v156_v23  ;;  %v682_v19 = vld [vmem:[%s1151_s0 + $0x48] sm:$0xff]  }
   0x8   :  { %vm284_vm0 = vcmp.gt.f32.partialorder %v220_v20, 0.0  ;;  %v348_v29 = vmul.f32 0.1, %v220_v20  ;;  %vm285_vm1 = vcmp.gt.f32.partialorder %v221_v21, 0.0  ;;  %v349_v30 = vmul.f32 0.1, %v221_v21 }
   0x9   :  { %vm286_vm2 = vcmp.gt.f32.partialorder %v222_v24, 0.0  ;;  %v350_v31 = vmul.f32 0.1, %v222_v24  ;;  %vm287_vm3 = vcmp.gt.f32.partialorder %v223_v25, 0.0  ;;  %v351_v32 = vmul.f32 0.1, %v223_v25 }
   0xa   :  { %v412_v33 = vsel %vm284_vm0, %v220_v20, %v348_v29  ;;  %v413_v34 = vsel %vm285_vm1, %v221_v21, %v349_v30  ;;  %vm288_vm4 = vcmp.gt.f32.partialorder %v224_v26, 0.0  ;;  %v352_v35 = vmul.f32 0.1, %v224_v26  ;;  %v683_v30 = vld [vmem:[%s1151_s0 + $0x50] sm:$0xff]  }
   0xb   :  { %476 = vst [vmem:[%s1154_s3] sm:$0xff] %v412_v33  ;;  %477 = vst [vmem:[%s1154_s3 + $0x8] sm:$0xff] %v413_v34  ;;  %v414_v37 = vsel %vm286_vm2, %v222_v24, %v350_v31  ;;  %v415_v38 = vsel %vm287_vm3, %v223_v25, %v351_v32  ;;  %vm289_vm5 = vcmp.gt.f32.partialorder %v225_v27, 0.0  ;;  %v353_v39 = vmul.f32 0.1, %v225_v27 }
   0xc   :  { %478 = vst [vmem:[%s1154_s3 + $0x10] sm:$0xff] %v414_v37  ;;  %479 = vst [vmem:[%s1154_s3 + $0x18] sm:$0xff] %v415_v38  ;;  %v416_v40 = vsel %vm288_vm4, %v224_v26, %v352_v35  ;;  %v564_v43 = vunpack.c.l.bf16 %v677_v28  ;;  %v565_v45 = vunpack.c.h.bf16 %v677_v28  ;;  %v568_v46 = vunpack.c.l.bf16 %v678_v36  ;;  %v684_v37 = vld [vmem:[%s1151_s0 + $0x58] sm:$0xff]  }
   0xd   :  { %480 = vst [vmem:[%s1154_s3 + $0x20] sm:$0xff] %v416_v40  ;;  %v417_v44 = vsel %vm289_vm5, %v225_v27, %v353_v39  ;;  %v569_v47 = vunpack.c.h.bf16 %v678_v36  ;;  %vm290_vm6 = vcmp.gt.f32.partialorder %v226_v41, 0.0  ;;  %v354_v49 = vmul.f32 0.1, %v226_v41 }
   0xe   :  { %481 = vst [vmem:[%s1154_s3 + $0x28] sm:$0xff] %v417_v44  ;;  %vm291_vm7 = vcmp.gt.f32.partialorder %v227_v42, 0.0  ;;  %v355_v50 = vmul.f32 0.1, %v227_v42  ;;  %v157_v51 = vmul.f32 %v564_v43, %v731_v1  ;;  %v158_v52 = vmul.f32 %v565_v45, %v731_v1 }
   0xf   :  { %v159_v53 = vmul.f32 %v568_v46, %v731_v1  ;;  %v160_v54 = vmul.f32 %v569_v47, %v731_v1  ;;  %v418_v56 = vsel %vm290_vm6, %v226_v41, %v354_v49  ;;  %v572_v58 = vunpack.c.l.bf16 %v679_v48 }
  0x10   :  { %v419_v57 = vsel %vm291_vm7, %v227_v42, %v355_v50  ;;  %v573_v59 = vunpack.c.h.bf16 %v679_v48  ;;  %482 = vst [vmem:[%s1154_s3 + $0x30] sm:$0xff] %v418_v56  ;;  %v228_v60 = vadd.f32 %v745_v7, %v157_v51  ;;  %v229_v61 = vadd.f32 %v745_v7, %v158_v52 }
  0x11   :  { %483 = vst [vmem:[%s1154_s3 + $0x38] sm:$0xff] %v419_v57  ;;  %v230_v62 = vadd.f32 %v745_v7, %v159_v53  ;;  %v231_v63 = vadd.f32 %v745_v7, %v160_v54  ;;  %v161_v0 = vmul.f32 %v572_v58, %v731_v1  ;;  %v576_v3 = vunpack.c.l.bf16 %v680_v55  ;;  %v685_v58 = vld [vmem:[%s1151_s0 + $0x60] sm:$0xff]  }
  0x12   :  { %v162_v2 = vmul.f32 %v573_v59, %v731_v1  ;;  %v577_v4 = vunpack.c.h.bf16 %v680_v55  ;;  %vm292_vm8 = vcmp.gt.f32.partialorder %v228_v60, 0.0  ;;  %v356_v5 = vmul.f32 0.1, %v228_v60 }
  0x13   :  { %vm293_vm9 = vcmp.gt.f32.partialorder %v229_v61, 0.0  ;;  %v357_v6 = vmul.f32 0.1, %v229_v61  ;;  %vm294_vm10 = vcmp.gt.f32.partialorder %v230_v62, 0.0  ;;  %v358_v8 = vmul.f32 0.1, %v230_v62 }
  0x14   :  { %vm295_vm11 = vcmp.gt.f32.partialorder %v231_v63, 0.0  ;;  %v359_v9 = vmul.f32 0.1, %v231_v63  ;;  %v420_v10 = vsel %vm292_vm8, %v228_v60, %v356_v5  ;;  %v232_v12 = vadd.f32 %v745_v7, %v161_v0 }
  0x15   :  { %v421_v11 = vsel %vm293_vm9, %v229_v61, %v357_v6  ;;  %v233_v13 = vadd.f32 %v745_v7, %v162_v2  ;;  %484 = vst [vmem:[%s1154_s3 + $0x40] sm:$0xff] %v420_v10  ;;  %v422_v15 = vsel %vm294_vm10, %v230_v62, %v358_v8  ;;  %v163_v17 = vmul.f32 %v576_v3, %v731_v1 }
  0x16   :  { %485 = vst [vmem:[%s1154_s3 + $0x48] sm:$0xff] %v421_v11  ;;  %v423_v16 = vsel %vm295_vm11, %v231_v63, %v359_v9  ;;  %v164_v18 = vmul.f32 %v577_v4, %v731_v1  ;;  %486 = vst [vmem:[%s1154_s3 + $0x50] sm:$0xff] %v422_v15  ;;  %vm296_vm12 = vcmp.gt.f32.partialorder %v232_v12, 0.0  ;;  %v360_v20 = vmul.f32 0.1, %v232_v12  ;;  %v686_v63 = vld [vmem:[%s1151_s0 + $0x68] sm:$0xff]  }
  0x17   :  { %487 = vst [vmem:[%s1154_s3 + $0x58] sm:$0xff] %v423_v16  ;;  %vm297_vm13 = vcmp.gt.f32.partialorder %v233_v13, 0.0  ;;  %v361_v21 = vmul.f32 0.1, %v233_v13  ;;  %v234_v22 = vadd.f32 %v745_v7, %v163_v17  ;;  %v580_v24 = vunpack.c.l.bf16 %v681_v14 }
  0x18   :  { %v235_v23 = vadd.f32 %v745_v7, %v164_v18  ;;  %v581_v25 = vunpack.c.h.bf16 %v681_v14  ;;  %v424_v26 = vsel %vm296_vm12, %v232_v12, %v360_v20  ;;  %v584_v28 = vunpack.c.l.bf16 %v682_v19  ;;  %v687_v12 = vld [vmem:[%s1151_s0 + $0x70] sm:$0xff]  }
  0x19   :  { %v425_v27 = vsel %vm297_vm13, %v233_v13, %v361_v21  ;;  %v585_v29 = vunpack.c.h.bf16 %v682_v19  ;;  %488 = vst [vmem:[%s1154_s3 + $0x60] sm:$0xff] %v424_v26  ;;  %vm298_vm14 = vcmp.gt.f32.partialorder %v234_v22, 0.0  ;;  %v362_v31 = vmul.f32 0.1, %v234_v22  ;;  %v688_v19 = vld [vmem:[%s1151_s0 + $0x78] sm:$0xff]  }
  0x1a   :  { %489 = vst [vmem:[%s1154_s3 + $0x68] sm:$0xff] %v425_v27  ;;  %vm299_vm15 = vcmp.gt.f32.partialorder %v235_v23, 0.0  ;;  %v363_v32 = vmul.f32 0.1, %v235_v23  ;;  %v165_v33 = vmul.f32 %v580_v24, %v731_v1  ;;  %v166_v34 = vmul.f32 %v581_v25, %v731_v1 }
  0x1b   :  { %v167_v35 = vmul.f32 %v584_v28, %v731_v1  ;;  %v168_v36 = vmul.f32 %v585_v29, %v731_v1  ;;  %v426_v38 = vsel %vm298_vm14, %v234_v22, %v362_v31  ;;  %v588_v40 = vunpack.c.l.bf16 %v683_v30 }
  0x1c   :  { %v427_v39 = vsel %vm299_vm15, %v235_v23, %v363_v32  ;;  %v589_v41 = vunpack.c.h.bf16 %v683_v30  ;;  %490 = vst [vmem:[%s1154_s3 + $0x70] sm:$0xff] %v426_v38  ;;  %v236_v42 = vadd.f32 %v745_v7, %v165_v33  ;;  %v237_v43 = vadd.f32 %v745_v7, %v166_v34 }
  0x1d   :  { %491 = vst [vmem:[%s1154_s3 + $0x78] sm:$0xff] %v427_v39  ;;  %v238_v44 = vadd.f32 %v745_v7, %v167_v35  ;;  %v239_v45 = vadd.f32 %v745_v7, %v168_v36  ;;  %v169_v46 = vmul.f32 %v588_v40, %v731_v1  ;;  %v592_v48 = vunpack.c.l.bf16 %v684_v37  ;;  %v689_v40 = vld [vmem:[%s1151_s0 + $0x80] sm:$0xff]  }
  0x1e   :  { %v170_v47 = vmul.f32 %v589_v41, %v731_v1  ;;  %v593_v49 = vunpack.c.h.bf16 %v684_v37  ;;  %vm300_vm0 = vcmp.gt.f32.partialorder %v236_v42, 0.0  ;;  %v364_v50 = vmul.f32 0.1, %v236_v42 }
  0x1f   :  { %vm301_vm1 = vcmp.gt.f32.partialorder %v237_v43, 0.0  ;;  %v365_v51 = vmul.f32 0.1, %v237_v43  ;;  %vm302_vm2 = vcmp.gt.f32.partialorder %v238_v44, 0.0  ;;  %v366_v52 = vmul.f32 0.1, %v238_v44 }
  0x20   :  { %vm303_vm3 = vcmp.gt.f32.partialorder %v239_v45, 0.0  ;;  %v367_v53 = vmul.f32 0.1, %v239_v45  ;;  %v428_v54 = vsel %vm300_vm0, %v236_v42, %v364_v50  ;;  %v240_v56 = vadd.f32 %v745_v7, %v169_v46 }
  0x21   :  { %v429_v55 = vsel %vm301_vm1, %v237_v43, %v365_v51  ;;  %v241_v57 = vadd.f32 %v745_v7, %v170_v47  ;;  %492 = vst [vmem:[%s1154_s3 + $0x80] sm:$0xff] %v428_v54  ;;  %v430_v59 = vsel %vm302_vm2, %v238_v44, %v366_v52  ;;  %v171_v61 = vmul.f32 %v592_v48, %v731_v1 }
  0x22   :  { %493 = vst [vmem:[%s1154_s3 + $0x88] sm:$0xff] %v429_v55  ;;  %v431_v60 = vsel %vm303_vm3, %v239_v45, %v367_v53  ;;  %v172_v62 = vmul.f32 %v593_v49, %v731_v1  ;;  %494 = vst [vmem:[%s1154_s3 + $0x90] sm:$0xff] %v430_v59  ;;  %vm304_vm4 = vcmp.gt.f32.partialorder %v240_v56, 0.0  ;;  %v368_v0 = vmul.f32 0.1, %v240_v56  ;;  %v690_v45 = vld [vmem:[%s1151_s0 + $0x88] sm:$0xff]  }
  0x23   :  { %495 = vst [vmem:[%s1154_s3 + $0x98] sm:$0xff] %v431_v60  ;;  %vm305_vm5 = vcmp.gt.f32.partialorder %v241_v57, 0.0  ;;  %v369_v2 = vmul.f32 0.1, %v241_v57  ;;  %v242_v3 = vadd.f32 %v745_v7, %v171_v61  ;;  %v596_v5 = vunpack.c.l.bf16 %v685_v58 }
  0x24   :  { %v243_v4 = vadd.f32 %v745_v7, %v172_v62  ;;  %v597_v6 = vunpack.c.h.bf16 %v685_v58  ;;  %v432_v8 = vsel %vm304_vm4, %v240_v56, %v368_v0  ;;  %v600_v10 = vunpack.c.l.bf16 %v686_v63  ;;  %v691_v56 = vld [vmem:[%s1151_s0 + $0x90] sm:$0xff]  }
  0x25   :  { %v433_v9 = vsel %vm305_vm5, %v241_v57, %v369_v2  ;;  %v601_v11 = vunpack.c.h.bf16 %v686_v63  ;;  %496 = vst [vmem:[%s1154_s3 + $0xa0] sm:$0xff] %v432_v8  ;;  %vm306_vm6 = vcmp.gt.f32.partialorder %v242_v3, 0.0  ;;  %v370_v13 = vmul.f32 0.1, %v242_v3  ;;  %v692_v63 = vld [vmem:[%s1151_s0 + $0x98] sm:$0xff]  }
  0x26   :  { %497 = vst [vmem:[%s1154_s3 + $0xa8] sm:$0xff] %v433_v9  ;;  %vm307_vm7 = vcmp.gt.f32.partialorder %v243_v4, 0.0  ;;  %v371_v14 = vmul.f32 0.1, %v243_v4  ;;  %v173_v15 = vmul.f32 %v596_v5, %v731_v1  ;;  %v174_v16 = vmul.f32 %v597_v6, %v731_v1 }
  0x27   :  { %v175_v17 = vmul.f32 %v600_v10, %v731_v1  ;;  %v176_v18 = vmul.f32 %v601_v11, %v731_v1  ;;  %v434_v20 = vsel %vm306_vm6, %v242_v3, %v370_v13  ;;  %v604_v22 = vunpack.c.l.bf16 %v687_v12 }
  0x28   :  { %v435_v21 = vsel %vm307_vm7, %v243_v4, %v371_v14  ;;  %v605_v23 = vunpack.c.h.bf16 %v687_v12  ;;  %498 = vst [vmem:[%s1154_s3 + $0xb0] sm:$0xff] %v434_v20  ;;  %v244_v24 = vadd.f32 %v745_v7, %v173_v15  ;;  %v245_v25 = vadd.f32 %v745_v7, %v174_v16 }
  0x29   :  { %499 = vst [vmem:[%s1154_s3 + $0xb8] sm:$0xff] %v435_v21  ;;  %v246_v26 = vadd.f32 %v745_v7, %v175_v17  ;;  %v247_v27 = vadd.f32 %v745_v7, %v176_v18  ;;  %v177_v28 = vmul.f32 %v604_v22, %v731_v1  ;;  %v608_v30 = vunpack.c.l.bf16 %v688_v19  ;;  %v693_v22 = vld [vmem:[%s1151_s0 + $0xa0] sm:$0xff]  }
  0x2a   :  { %v178_v29 = vmul.f32 %v605_v23, %v731_v1  ;;  %v609_v31 = vunpack.c.h.bf16 %v688_v19  ;;  %vm308_vm8 = vcmp.gt.f32.partialorder %v244_v24, 0.0  ;;  %v372_v32 = vmul.f32 0.1, %v244_v24 }
  0x2b   :  { %vm309_vm9 = vcmp.gt.f32.partialorder %v245_v25, 0.0  ;;  %v373_v33 = vmul.f32 0.1, %v245_v25  ;;  %vm310_vm10 = vcmp.gt.f32.partialorder %v246_v26, 0.0  ;;  %v374_v34 = vmul.f32 0.1, %v246_v26 }
  0x2c   :  { %vm311_vm11 = vcmp.gt.f32.partialorder %v247_v27, 0.0  ;;  %v375_v35 = vmul.f32 0.1, %v247_v27  ;;  %v436_v36 = vsel %vm308_vm8, %v244_v24, %v372_v32  ;;  %v248_v38 = vadd.f32 %v745_v7, %v177_v28 }
  0x2d   :  { %v437_v37 = vsel %vm309_vm9, %v245_v25, %v373_v33  ;;  %v249_v39 = vadd.f32 %v745_v7, %v178_v29  ;;  %500 = vst [vmem:[%s1154_s3 + $0xc0] sm:$0xff] %v436_v36  ;;  %v438_v41 = vsel %vm310_vm10, %v246_v26, %v374_v34  ;;  %v179_v43 = vmul.f32 %v608_v30, %v731_v1 }
  0x2e   :  { %501 = vst [vmem:[%s1154_s3 + $0xc8] sm:$0xff] %v437_v37  ;;  %v439_v42 = vsel %vm311_vm11, %v247_v27, %v375_v35  ;;  %v180_v44 = vmul.f32 %v609_v31, %v731_v1  ;;  %502 = vst [vmem:[%s1154_s3 + $0xd0] sm:$0xff] %v438_v41  ;;  %vm312_vm12 = vcmp.gt.f32.partialorder %v248_v38, 0.0  ;;  %v376_v46 = vmul.f32 0.1, %v248_v38  ;;  %v694_v27 = vld [vmem:[%s1151_s0 + $0xa8] sm:$0xff]  }
  0x2f   :  { %503 = vst [vmem:[%s1154_s3 + $0xd8] sm:$0xff] %v439_v42  ;;  %vm313_vm13 = vcmp.gt.f32.partialorder %v249_v39, 0.0  ;;  %v377_v47 = vmul.f32 0.1, %v249_v39  ;;  %v250_v48 = vadd.f32 %v745_v7, %v179_v43  ;;  %v612_v50 = vunpack.c.l.bf16 %v689_v40 }
  0x30   :  { %v251_v49 = vadd.f32 %v745_v7, %v180_v44  ;;  %v613_v51 = vunpack.c.h.bf16 %v689_v40  ;;  %v440_v52 = vsel %vm312_vm12, %v248_v38, %v376_v46  ;;  %v616_v54 = vunpack.c.l.bf16 %v690_v45  ;;  %v695_v38 = vld [vmem:[%s1151_s0 + $0xb0] sm:$0xff]  }
  0x31   :  { %v441_v53 = vsel %vm313_vm13, %v249_v39, %v377_v47  ;;  %v617_v55 = vunpack.c.h.bf16 %v690_v45  ;;  %504 = vst [vmem:[%s1154_s3 + $0xe0] sm:$0xff] %v440_v52  ;;  %vm314_vm14 = vcmp.gt.f32.partialorder %v250_v48, 0.0  ;;  %v378_v57 = vmul.f32 0.1, %v250_v48  ;;  %v696_v45 = vld [vmem:[%s1151_s0 + $0xb8] sm:$0xff]  }
  0x32   :  { %505 = vst [vmem:[%s1154_s3 + $0xe8] sm:$0xff] %v441_v53  ;;  %vm315_vm15 = vcmp.gt.f32.partialorder %v251_v49, 0.0  ;;  %v379_v58 = vmul.f32 0.1, %v251_v49  ;;  %v181_v59 = vmul.f32 %v612_v50, %v731_v1  ;;  %v182_v60 = vmul.f32 %v613_v51, %v731_v1 }
  0x33   :  { %v183_v61 = vmul.f32 %v616_v54, %v731_v1  ;;  %v184_v62 = vmul.f32 %v617_v55, %v731_v1  ;;  %v442_v0 = vsel %vm314_vm14, %v250_v48, %v378_v57  ;;  %v620_v3 = vunpack.c.l.bf16 %v691_v56 }
  0x34   :  { %v443_v2 = vsel %vm315_vm15, %v251_v49, %v379_v58  ;;  %v621_v4 = vunpack.c.h.bf16 %v691_v56  ;;  %506 = vst [vmem:[%s1154_s3 + $0xf0] sm:$0xff] %v442_v0  ;;  %v252_v5 = vadd.f32 %v745_v7, %v181_v59  ;;  %v253_v6 = vadd.f32 %v745_v7, %v182_v60 }
  0x35   :  { %507 = vst [vmem:[%s1154_s3 + $0xf8] sm:$0xff] %v443_v2  ;;  %v254_v8 = vadd.f32 %v745_v7, %v183_v61  ;;  %v255_v9 = vadd.f32 %v745_v7, %v184_v62  ;;  %v185_v10 = vmul.f32 %v620_v3, %v731_v1  ;;  %v624_v12 = vunpack.c.l.bf16 %v692_v63  ;;  %v697_v3 = vld [vmem:[%s1151_s0 + $0xc0] sm:$0xff]  }
  0x36   :  { %v186_v11 = vmul.f32 %v621_v4, %v731_v1  ;;  %v625_v13 = vunpack.c.h.bf16 %v692_v63  ;;  %vm316_vm0 = vcmp.gt.f32.partialorder %v252_v5, 0.0  ;;  %v380_v14 = vmul.f32 0.1, %v252_v5 }
  0x37   :  { %vm317_vm1 = vcmp.gt.f32.partialorder %v253_v6, 0.0  ;;  %v381_v15 = vmul.f32 0.1, %v253_v6  ;;  %vm318_vm2 = vcmp.gt.f32.partialorder %v254_v8, 0.0  ;;  %v382_v16 = vmul.f32 0.1, %v254_v8 }
  0x38   :  { %vm319_vm3 = vcmp.gt.f32.partialorder %v255_v9, 0.0  ;;  %v383_v17 = vmul.f32 0.1, %v255_v9  ;;  %v444_v18 = vsel %vm316_vm0, %v252_v5, %v380_v14  ;;  %v256_v20 = vadd.f32 %v745_v7, %v185_v10 }
  0x39   :  { %v445_v19 = vsel %vm317_vm1, %v253_v6, %v381_v15  ;;  %v257_v21 = vadd.f32 %v745_v7, %v186_v11  ;;  %508 = vst [vmem:[%s1154_s3 + $0x100] sm:$0xff] %v444_v18  ;;  %v446_v23 = vsel %vm318_vm2, %v254_v8, %v382_v16  ;;  %v187_v25 = vmul.f32 %v624_v12, %v731_v1 }
  0x3a   :  { %509 = vst [vmem:[%s1154_s3 + $0x108] sm:$0xff] %v445_v19  ;;  %v447_v24 = vsel %vm319_vm3, %v255_v9, %v383_v17  ;;  %v188_v26 = vmul.f32 %v625_v13, %v731_v1  ;;  %510 = vst [vmem:[%s1154_s3 + $0x110] sm:$0xff] %v446_v23  ;;  %vm320_vm4 = vcmp.gt.f32.partialorder %v256_v20, 0.0  ;;  %v384_v28 = vmul.f32 0.1, %v256_v20  ;;  %v698_v9 = vld [vmem:[%s1151_s0 + $0xc8] sm:$0xff]  }
  0x3b   :  { %511 = vst [vmem:[%s1154_s3 + $0x118] sm:$0xff] %v447_v24  ;;  %vm321_vm5 = vcmp.gt.f32.partialorder %v257_v21, 0.0  ;;  %v385_v29 = vmul.f32 0.1, %v257_v21  ;;  %v258_v30 = vadd.f32 %v745_v7, %v187_v25  ;;  %v628_v32 = vunpack.c.l.bf16 %v693_v22 }
  0x3c   :  { %v259_v31 = vadd.f32 %v745_v7, %v188_v26  ;;  %v629_v33 = vunpack.c.h.bf16 %v693_v22  ;;  %v448_v34 = vsel %vm320_vm4, %v256_v20, %v384_v28  ;;  %v632_v36 = vunpack.c.l.bf16 %v694_v27  ;;  %v699_v20 = vld [vmem:[%s1151_s0 + $0xd0] sm:$0xff]  }
  0x3d   :  { %v449_v35 = vsel %vm321_vm5, %v257_v21, %v385_v29  ;;  %v633_v37 = vunpack.c.h.bf16 %v694_v27  ;;  %512 = vst [vmem:[%s1154_s3 + $0x120] sm:$0xff] %v448_v34  ;;  %vm322_vm6 = vcmp.gt.f32.partialorder %v258_v30, 0.0  ;;  %v386_v39 = vmul.f32 0.1, %v258_v30  ;;  %v700_v27 = vld [vmem:[%s1151_s0 + $0xd8] sm:$0xff]  }
  0x3e   :  { %513 = vst [vmem:[%s1154_s3 + $0x128] sm:$0xff] %v449_v35  ;;  %vm323_vm7 = vcmp.gt.f32.partialorder %v259_v31, 0.0  ;;  %v387_v40 = vmul.f32 0.1, %v259_v31  ;;  %v189_v41 = vmul.f32 %v628_v32, %v731_v1  ;;  %v190_v42 = vmul.f32 %v629_v33, %v731_v1 }
  0x3f   :  { %v191_v43 = vmul.f32 %v632_v36, %v731_v1  ;;  %v192_v44 = vmul.f32 %v633_v37, %v731_v1  ;;  %v450_v46 = vsel %vm322_vm6, %v258_v30, %v386_v39  ;;  %v636_v48 = vunpack.c.l.bf16 %v695_v38 }
  0x40   :  { %v451_v47 = vsel %vm323_vm7, %v259_v31, %v387_v40  ;;  %v637_v49 = vunpack.c.h.bf16 %v695_v38  ;;  %514 = vst [vmem:[%s1154_s3 + $0x130] sm:$0xff] %v450_v46  ;;  %v260_v50 = vadd.f32 %v745_v7, %v189_v41  ;;  %v261_v51 = vadd.f32 %v745_v7, %v190_v42 }
  0x41   :  { %515 = vst [vmem:[%s1154_s3 + $0x138] sm:$0xff] %v451_v47  ;;  %v262_v52 = vadd.f32 %v745_v7, %v191_v43  ;;  %v263_v53 = vadd.f32 %v745_v7, %v192_v44  ;;  %v193_v54 = vmul.f32 %v636_v48, %v731_v1  ;;  %v640_v56 = vunpack.c.l.bf16 %v696_v45  ;;  %v701_v48 = vld [vmem:[%s1151_s0 + $0xe0] sm:$0xff]  }
  0x42   :  { %v194_v55 = vmul.f32 %v637_v49, %v731_v1  ;;  %v641_v57 = vunpack.c.h.bf16 %v696_v45  ;;  %vm324_vm8 = vcmp.gt.f32.partialorder %v260_v50, 0.0  ;;  %v388_v58 = vmul.f32 0.1, %v260_v50 }
  0x43   :  { %vm325_vm9 = vcmp.gt.f32.partialorder %v261_v51, 0.0  ;;  %v389_v59 = vmul.f32 0.1, %v261_v51  ;;  %vm326_vm10 = vcmp.gt.f32.partialorder %v262_v52, 0.0  ;;  %v390_v60 = vmul.f32 0.1, %v262_v52 }
  0x44   :  { %vm327_vm11 = vcmp.gt.f32.partialorder %v263_v53, 0.0  ;;  %v391_v61 = vmul.f32 0.1, %v263_v53  ;;  %v452_v62 = vsel %vm324_vm8, %v260_v50, %v388_v58  ;;  %v264_v0 = vadd.f32 %v745_v7, %v193_v54 }
  0x45   :  { %v453_v63 = vsel %vm325_vm9, %v261_v51, %v389_v59  ;;  %v265_v2 = vadd.f32 %v745_v7, %v194_v55  ;;  %516 = vst [vmem:[%s1154_s3 + $0x140] sm:$0xff] %v452_v62  ;;  %v454_v4 = vsel %vm326_vm10, %v262_v52, %v390_v60  ;;  %v195_v6 = vmul.f32 %v640_v56, %v731_v1 }
  0x46   :  { %517 = vst [vmem:[%s1154_s3 + $0x148] sm:$0xff] %v453_v63  ;;  %v455_v5 = vsel %vm327_vm11, %v263_v53, %v391_v61  ;;  %v196_v8 = vmul.f32 %v641_v57, %v731_v1  ;;  %518 = vst [vmem:[%s1154_s3 + $0x150] sm:$0xff] %v454_v4  ;;  %vm328_vm12 = vcmp.gt.f32.partialorder %v264_v0, 0.0  ;;  %v392_v10 = vmul.f32 0.1, %v264_v0  ;;  %v702_v53 = vld [vmem:[%s1151_s0 + $0xe8] sm:$0xff]  }
  0x47   :  { %519 = vst [vmem:[%s1154_s3 + $0x158] sm:$0xff] %v455_v5  ;;  %vm329_vm13 = vcmp.gt.f32.partialorder %v265_v2, 0.0  ;;  %v393_v11 = vmul.f32 0.1, %v265_v2  ;;  %v266_v12 = vadd.f32 %v745_v7, %v195_v6  ;;  %v644_v14 = vunpack.c.l.bf16 %v697_v3 }
  0x48   :  { %v267_v13 = vadd.f32 %v745_v7, %v196_v8  ;;  %v645_v15 = vunpack.c.h.bf16 %v697_v3  ;;  %v456_v16 = vsel %vm328_vm12, %v264_v0, %v392_v10  ;;  %v648_v18 = vunpack.c.l.bf16 %v698_v9  ;;  %v703_v0 = vld [vmem:[%s1151_s0 + $0xf0] sm:$0xff]  }
  0x49   :  { %v457_v17 = vsel %vm329_vm13, %v265_v2, %v393_v11  ;;  %v649_v19 = vunpack.c.h.bf16 %v698_v9  ;;  %520 = vst [vmem:[%s1154_s3 + $0x160] sm:$0xff] %v456_v16  ;;  %vm330_vm14 = vcmp.gt.f32.partialorder %v266_v12, 0.0  ;;  %v394_v21 = vmul.f32 0.1, %v266_v12  ;;  %v704_v9 = vld [vmem:[%s1151_s0 + $0xf8] sm:$0xff]  }
  0x4a   :  { %521 = vst [vmem:[%s1154_s3 + $0x168] sm:$0xff] %v457_v17  ;;  %vm331_vm15 = vcmp.gt.f32.partialorder %v267_v13, 0.0  ;;  %v395_v22 = vmul.f32 0.1, %v267_v13  ;;  %v197_v23 = vmul.f32 %v644_v14, %v731_v1  ;;  %v198_v24 = vmul.f32 %v645_v15, %v731_v1 }
  0x4b   :  { %v199_v25 = vmul.f32 %v648_v18, %v731_v1  ;;  %v200_v26 = vmul.f32 %v649_v19, %v731_v1  ;;  %v458_v28 = vsel %vm330_vm14, %v266_v12, %v394_v21  ;;  %v652_v30 = vunpack.c.l.bf16 %v699_v20 }
  0x4c   :  { %v459_v29 = vsel %vm331_vm15, %v267_v13, %v395_v22  ;;  %v653_v31 = vunpack.c.h.bf16 %v699_v20  ;;  %522 = vst [vmem:[%s1154_s3 + $0x170] sm:$0xff] %v458_v28  ;;  %v268_v32 = vadd.f32 %v745_v7, %v197_v23  ;;  %v269_v33 = vadd.f32 %v745_v7, %v198_v24 }
  0x4d   :  { %523 = vst [vmem:[%s1154_s3 + $0x178] sm:$0xff] %v459_v29  ;;  %v270_v34 = vadd.f32 %v745_v7, %v199_v25  ;;  %v271_v35 = vadd.f32 %v745_v7, %v200_v26  ;;  %v201_v36 = vmul.f32 %v652_v30, %v731_v1  ;;  %v656_v38 = vunpack.c.l.bf16 %v700_v27 }
  0x4e   :  { %v202_v37 = vmul.f32 %v653_v31, %v731_v1  ;;  %v657_v39 = vunpack.c.h.bf16 %v700_v27  ;;  %vm332_vm0 = vcmp.gt.f32.partialorder %v268_v32, 0.0  ;;  %v396_v40 = vmul.f32 0.1, %v268_v32 }
  0x4f   :  { %vm333_vm1 = vcmp.gt.f32.partialorder %v269_v33, 0.0  ;;  %v397_v41 = vmul.f32 0.1, %v269_v33  ;;  %vm334_vm2 = vcmp.gt.f32.partialorder %v270_v34, 0.0  ;;  %v398_v42 = vmul.f32 0.1, %v270_v34 }
  0x50   :  { %vm335_vm3 = vcmp.gt.f32.partialorder %v271_v35, 0.0  ;;  %v399_v43 = vmul.f32 0.1, %v271_v35  ;;  %v460_v44 = vsel %vm332_vm0, %v268_v32, %v396_v40  ;;  %v272_v46 = vadd.f32 %v745_v7, %v201_v36 }
  0x51   :  { %v461_v45 = vsel %vm333_vm1, %v269_v33, %v397_v41  ;;  %v273_v47 = vadd.f32 %v745_v7, %v202_v37  ;;  %524 = vst [vmem:[%s1154_s3 + $0x180] sm:$0xff] %v460_v44  ;;  %v462_v49 = vsel %vm334_vm2, %v270_v34, %v398_v42  ;;  %v203_v51 = vmul.f32 %v656_v38, %v731_v1 }
  0x52   :  { %525 = vst [vmem:[%s1154_s3 + $0x188] sm:$0xff] %v461_v45  ;;  %v463_v50 = vsel %vm335_vm3, %v271_v35, %v399_v43  ;;  %v204_v52 = vmul.f32 %v657_v39, %v731_v1  ;;  %526 = vst [vmem:[%s1154_s3 + $0x190] sm:$0xff] %v462_v49  ;;  %vm336_vm4 = vcmp.gt.f32.partialorder %v272_v46, 0.0  ;;  %v400_v54 = vmul.f32 0.1, %v272_v46 }
  0x53   :  { %527 = vst [vmem:[%s1154_s3 + $0x198] sm:$0xff] %v463_v50  ;;  %vm337_vm5 = vcmp.gt.f32.partialorder %v273_v47, 0.0  ;;  %v401_v55 = vmul.f32 0.1, %v273_v47  ;;  %v274_v56 = vadd.f32 %v745_v7, %v203_v51  ;;  %v660_v58 = vunpack.c.l.bf16 %v701_v48 }
  0x54   :  { %v275_v57 = vadd.f32 %v745_v7, %v204_v52  ;;  %v661_v59 = vunpack.c.h.bf16 %v701_v48  ;;  %v464_v60 = vsel %vm336_vm4, %v272_v46, %v400_v54  ;;  %v664_v62 = vunpack.c.l.bf16 %v702_v53 }
  0x55   :  { %v465_v61 = vsel %vm337_vm5, %v273_v47, %v401_v55  ;;  %v665_v63 = vunpack.c.h.bf16 %v702_v53  ;;  %528 = vst [vmem:[%s1154_s3 + $0x1a0] sm:$0xff] %v464_v60  ;;  %vm338_vm6 = vcmp.gt.f32.partialorder %v274_v56, 0.0  ;;  %v402_v2 = vmul.f32 0.1, %v274_v56 }
  0x56   :  { %529 = vst [vmem:[%s1154_s3 + $0x1a8] sm:$0xff] %v465_v61  ;;  %vm339_vm7 = vcmp.gt.f32.partialorder %v275_v57, 0.0  ;;  %v403_v3 = vmul.f32 0.1, %v275_v57  ;;  %v205_v4 = vmul.f32 %v660_v58, %v731_v1  ;;  %v206_v5 = vmul.f32 %v661_v59, %v731_v1 }
  0x57   :  { %v207_v6 = vmul.f32 %v664_v62, %v731_v1  ;;  %v208_v8 = vmul.f32 %v665_v63, %v731_v1  ;;  %v466_v10 = vsel %vm338_vm6, %v274_v56, %v402_v2  ;;  %v668_v12 = vunpack.c.l.bf16 %v703_v0 }
  0x58   :  { %v467_v11 = vsel %vm339_vm7, %v275_v57, %v403_v3  ;;  %v669_v13 = vunpack.c.h.bf16 %v703_v0  ;;  %530 = vst [vmem:[%s1154_s3 + $0x1b0] sm:$0xff] %v466_v10  ;;  %v276_v14 = vadd.f32 %v745_v7, %v205_v4  ;;  %v277_v15 = vadd.f32 %v745_v7, %v206_v5 }
  0x59   :  { %531 = vst [vmem:[%s1154_s3 + $0x1b8] sm:$0xff] %v467_v11  ;;  %v278_v16 = vadd.f32 %v745_v7, %v207_v6  ;;  %v279_v17 = vadd.f32 %v745_v7, %v208_v8  ;;  %v209_v18 = vmul.f32 %v668_v12, %v731_v1  ;;  %v672_v20 = vunpack.c.l.bf16 %v704_v9 }
  0x5a   :  { %v210_v19 = vmul.f32 %v669_v13, %v731_v1  ;;  %v673_v21 = vunpack.c.h.bf16 %v704_v9  ;;  %vm340_vm8 = vcmp.gt.f32.partialorder %v276_v14, 0.0  ;;  %v404_v22 = vmul.f32 0.1, %v276_v14 }
  0x5b   :  { %vm341_vm9 = vcmp.gt.f32.partialorder %v277_v15, 0.0  ;;  %v405_v23 = vmul.f32 0.1, %v277_v15  ;;  %vm342_vm10 = vcmp.gt.f32.partialorder %v278_v16, 0.0  ;;  %v406_v24 = vmul.f32 0.1, %v278_v16 }
  0x5c   :  { %vm343_vm11 = vcmp.gt.f32.partialorder %v279_v17, 0.0  ;;  %v407_v25 = vmul.f32 0.1, %v279_v17  ;;  %v468_v26 = vsel %vm340_vm8, %v276_v14, %v404_v22  ;;  %v280_v28 = vadd.f32 %v745_v7, %v209_v18 }
  0x5d   :  { %v469_v27 = vsel %vm341_vm9, %v277_v15, %v405_v23  ;;  %v281_v29 = vadd.f32 %v745_v7, %v210_v19  ;;  %532 = vst [vmem:[%s1154_s3 + $0x1c0] sm:$0xff] %v468_v26  ;;  %v470_v30 = vsel %vm342_vm10, %v278_v16, %v406_v24  ;;  %v211_v32 = vmul.f32 %v672_v20, %v731_v1 }
  0x5e   :  { %533 = vst [vmem:[%s1154_s3 + $0x1c8] sm:$0xff] %v469_v27  ;;  %v471_v31 = vsel %vm343_vm11, %v279_v17, %v407_v25  ;;  %v212_v33 = vmul.f32 %v673_v21, %v731_v1  ;;  %534 = vst [vmem:[%s1154_s3 + $0x1d0] sm:$0xff] %v470_v30  ;;  %vm344_vm12 = vcmp.gt.f32.partialorder %v280_v28, 0.0  ;;  %v408_v34 = vmul.f32 0.1, %v280_v28 }
  0x5f   :  { %535 = vst [vmem:[%s1154_s3 + $0x1d8] sm:$0xff] %v471_v31  ;;  %vm345_vm13 = vcmp.gt.f32.partialorder %v281_v29, 0.0  ;;  %v409_v35 = vmul.f32 0.1, %v281_v29  ;;  %v282_v36 = vadd.f32 %v745_v7, %v211_v32 }
  0x60   :  { %v283_v37 = vadd.f32 %v745_v7, %v212_v33  ;;  %v472_v38 = vsel %vm344_vm12, %v280_v28, %v408_v34 }
  0x61   :  { %v473_v39 = vsel %vm345_vm13, %v281_v29, %v409_v35  ;;  %536 = vst [vmem:[%s1154_s3 + $0x1e0] sm:$0xff] %v472_v38  ;;  %vm346_vm14 = vcmp.gt.f32.partialorder %v282_v36, 0.0  ;;  %v410_v1 = vmul.f32 0.1, %v282_v36 }
  0x62   :  { %537 = vst [vmem:[%s1154_s3 + $0x1e8] sm:$0xff] %v473_v39  ;;  %vm347_vm15 = vcmp.gt.f32.partialorder %v283_v37, 0.0  ;;  %v411_v40 = vmul.f32 0.1, %v283_v37 }
  0x63   :  { %v474_v41 = vsel %vm346_vm14, %v282_v36, %v410_v1 }
  0x64   :  { %v475_v42 = vsel %vm347_vm15, %v283_v37, %v411_v40  ;;  %538 = vst [vmem:[%s1154_s3 + $0x1f0] sm:$0xff] %v474_v41 }
  0x65   :  { %539 = vst [vmem:[%s1154_s3 + $0x1f8] sm:$0xff] %v475_v42 }

// kernel: cnn_block_forward.2
= control target key start
LH: loop header
LB: loop body
LE: loop exit
PB: predicated region body
PF: predicated region fallthrough
CT: control target
= control target key end

     0   :  { %s4518_s15 = smov 0   ;;  %s4520_s16 = smov 0   ;;  %s5578_s0 = inlined_call_operand.vmem [shape: bf16[2,18,18,8], index: 0, kind: input, shape index: {}]   ;;  %s5579_s1 = inlined_call_operand.vmem [shape: bf16[9,8,128], index: 1, kind: input, shape index: {}]   ;;  %s5580_s2 = inlined_call_operand.vmem [shape: s32[128,1], index: 2, kind: input, shape index: {}]   ;;  %s5581_s3 = inlined_call_operand.vmem [shape: bf16[512,128], index: 3, kind: output, shape index: {0}]   ;;  %s5582_s4 = inlined_call_operand.vmem [shape: f32[4,8,128], index: 4, kind: output, shape index: {1}]  }
   0x1   :  { %s4522_s17 = smov 0   ;;  %s4524_s18 = smov 0  }
   0x2   :  { %s4526_s19 = smov 0  }
   0x3 LB: > { %s24_s20 = sadd.s32 1, %s4480_s17  ;;  %s27_s21 = sadd.s32 1, %s4484_s18  ;;  %s4488_s19 = sphi %s4526_s19, %s15_s19   ;;  %s4484_s18 = sphi %s4524_s18, %s5592_s18   ;;  %s4480_s17 = sphi %s4522_s17, %s5591_s17   ;;  %s4476_s16 = sphi %s4520_s16, %s5590_s16   ;;  %s4472_s15 = sphi %s4518_s15, %s5589_s15  }
   0x4   : > { %p25_p0 = scmp.ge.s32.totalorder %s24_s20, 2  ;;  %p3576_p1 = scmp.ge.s32.totalorder %s4488_s19, 1 }
   0x5   : > { %p185_p2 = scmp.lt.s32.totalorder %s4488_s19, 5 }
   0x6   : > { %s5594_s20 = smov (%p25_p0, %s24_s20), 0  ;;  %s5596_s21 = smov (!%p25_p0, %s27_s21), %s4484_s18 }
   0x7   : > { %p186_p3 = pnand %p3576_p1, %p185_p2  ;;  %p29_p4 = scmp.ge.s32.totalorder %s5596_s21, 2 }
   0x8   : > { %v263_v0 = vld [vmem:[%s5579_s1] sm:$0xf] (!%p186_p3)  ;;  %vm5583_vm0 = vcmask (!%p186_p3), 1043456   ;;  %p219_p5 = scmp.lt.s32.totalorder (!%p186_p3), %s4476_s16, 1  ;;  %v3703_v2 = vld [vmem:[%s5579_s1 + $0x10] sm:$0xf] (!%p186_p3) }
   0x9   : > { %s5598_s21 = smov (%p29_p4, %s5596_s21), 0  ;;  %189 = sbr.rel (%p186_p3) target bundleno = 470 (0x1d6), region = 32 }
   0xa   : > { %4365 = vmatprep.subr.msk.bf16.mxu1 (!%p186_p3), %vm5583_vm0, %v263_v0  ;;  %v331_v1 = vsel (!%p186_p3), %vm5583_vm0, %v263_v0, 0  ;;  %v3602_v3 = vld [vmem:[%s5579_s1 + $0x4] sm:$0xf] (!%p186_p3)  ;;  %4369 = vmatprep.subr.msk.bf16.mxu0 (!%p186_p3), %vm5583_vm0, %v3703_v2  ;;  %v4567_v4 = vsel (!%p186_p3), %vm5583_vm0, %v3703_v2, 0  ;;  %s3928_s29 = smul.u32 (!%p186_p3), 96, %s4472_s15  ;;  %vm304_vm1 = vcmask (!%p186_p3), 64512  }
   0xb   : > { %4074 = vmatpush3.bf16.msra.mxu1 (!%p186_p3), %v331_v1  ;;  %4146 = vmatpush3.bf16.msra.mxu0 (!%p186_p3), %v4567_v4  ;;  %v3752_v5 = vld [vmem:[%s5579_s1 + $0x14] sm:$0xf] (!%p186_p3)  ;;  %v4579_v6 = vld [vmem:[%s5579_s1 + $0x18] sm:$0xf] (!%p186_p3)  ;;  %v716_v7 = vsel (!%p186_p3), %vm5583_vm0, %v3602_v3, 0  ;;  %vm911_vm4 = vcmask (!%p186_p3), 1042432  }
   0xc   : > { %4366 = vmatprep.subr.msk.bf16.mxu1 (!%p186_p3), %vm5583_vm0, %v3602_v3  ;;  %4371 = vmatprep.subr.msk.bf16.mxu0 (!%p186_p3), %vm5583_vm0, %v3752_v5  ;;  %v4586_v8 = vsel (!%p186_p3), %vm5583_vm0, %v3752_v5, 0  ;;  %v3627_v9 = vld [vmem:[%s5579_s1 + $0x8] sm:$0xf] (!%p186_p3)  ;;  %vm470_vm2 = vsmask.f32 (!%p186_p3), 3328  ;;  %v4611_v14 = vsel (!%p186_p3), %vm5583_vm0, %v4579_v6, 0 }
   0xd   : > { %vm471_vm3 = vsmask.f32 (!%p186_p3), 7440  ;;  %v4596_v10 = vld [vmem:[%s5579_s1 + $0x1c] sm:$0xf] (!%p186_p3)  ;;  %v4601_v11 = vld [vmem:[%s5579_s1 + $0xc] sm:$0xf] (!%p186_p3) }
   0xe   : > { %v4606_v12 = vld [vmem:[%s5579_s1 + $0x20] sm:$0xf] (!%p186_p3)  ;;  %v4615_v16 = vsel (!%p186_p3), %vm5583_vm0, %v3627_v9, 0  ;;  %v4621_v18 = vsel (!%p186_p3), %vm5583_vm0, %v4596_v10, 0  ;;  %v4626_v19 = vsel (!%p186_p3), %vm5583_vm0, %v4601_v11, 0  ;;  %vm912_vm5 = vcmask (!%p186_p3), 1046532   ;;  %vm4644_vm6 = vmor (!%p186_p3), %vm470_vm2, %vm471_vm3 }
   0xf   : > { %v4630_v20 = vsel (!%p186_p3), %vm5583_vm0, %v4606_v12, 0  ;;  %vm4672_vm7 = vmor (!%p186_p3), %vm911_vm4, %vm912_vm5  ;;  %s3583_s30 = sshll.u32 (!%p186_p3), %s4472_s15, 3  ;;  %vm3230_vm9 = vcmask (!%p186_p3), 7168   ;;  %s3578_s26 = sshll.u32 (!%p186_p3), %s4476_s16, 1 }
  0x10   : > { %s220_s28 = scalar_select %p219_p5, %s4476_s16, 1 }
  0x11   : > { %s3100_s5 = ssub.s32 16, %s3583_s30  ;;  %s5359_s27 = sadd.s32 %s4472_s15, %s3578_s26 }
  0x12   : > { %s4375_s6 = smul.u32 216, %s220_s28  ;;  %s3579_s28 = sshll.u32 %s5359_s27, 4 }
  0x13   : > { %p227_p6 = scmp.lt.s32.totalorder %s3579_s28, 63  ;;  %p236_p7 = scmp.lt.s32.totalorder %s5359_s27, 3 }
  0x14   : > { %s223_s11 = scalar_lea.vmem %s5578_s0, %s4375_s6  ;;  %s4492_s6 = smov 1.0  }
  0x15   : > { %s4591_s14 = scalar_lea.vmem %s223_s11, %s3928_s29  ;;  %s5600_s28 = smov (!%p227_p6, %s3579_s28), 63 }
  0x16   : > { %v4423_v13 = vld [vmem:[%s4591_s14] sm:$0xff]   ;;  %v4424_v15 = vld [vmem:[%s4591_s14 + $0xc] sm:$0xff]   ;;  %v4425_v17 = vld [vmem:[%s4591_s14 + $0x18] sm:$0xff]   ;;  %s3580_s16 = sshll.u32 %s5600_s28, 2  ;;  %s5602_s27 = smov (!%p236_p7, %s5359_s27), 3 }
  0x17   : > { %4075 = vmatprep.mubr.msk.bf16.mxu1 %vm304_vm1, %v4423_v13  ;;  %v3679_v21 = vld [vmem:[%s4591_s14 + $0xc] sm:$0xf]  ;;  %v3680_v22 = vld [vmem:[%s4591_s14 + $0x10] sm:$0xf]  ;;  %v3681_v23 = vld [vmem:[%s4591_s14 + $0x14] sm:$0x1]  ;;  %s5381_s30 = scalar_lea.vmem %s5581_s3, %s3580_s16 }
  0x18   : > { %4076 = vmatmul.mubr.msk.bf16.vlgmr.msra.gmra.mrb[0].mxu1 %vm304_vm1, %v4424_v15  ;;  %v4426_v24 = vld [vmem:[%s4591_s14 + $0x24] sm:$0xff]   ;;  %v1427_v25 = vshrl.u32 %v3679_v21, 16  ;;  %v1430_v26 = vshll.u32 %v3679_v21, 16  ;;  %v1436_v27 = vshll.u32 %v3680_v22, 16  ;;  %v1440_v28 = vshrl.u32 %v3680_v22, 16  ;;  %v4427_v46 = vld [vmem:[%s4591_s14 + $0x30] sm:$0xff]  }
  0x19   : > { %4079 = vmatprep.mubr.msk.bf16.mxu1 %vm304_vm1, %v4425_v17  ;;  %4092 = vmatpush3.bf16.msra.mxu1 %v716_v7  ;;  %v3682_v29 = vld [vmem:[%s4591_s14 + $0x18] sm:$0xf]  ;;  %v1446_v30 = vshll.u32 %v3681_v23, 16  ;;  %v3683_v31 = vld [vmem:[%s4591_s14 + $0x1c] sm:$0xf]  ;;  %v4429_v17 = vld [vmem:[%s4591_s14 + $0x48] sm:$0xff]  }
  0x1a   : > { %4367 = vmatprep.subr.msk.bf16.mxu1 %vm5583_vm0, %v3627_v9  ;;  %v3684_v32 = vld [vmem:[%s4591_s14 + $0x20] sm:$0x1]  ;;  %v1451_v33 = vshrl.u32 %v3682_v29, 16  ;;  %v1429_v34 = vrot.slane %v1427_v25, 4  ;;  %v1432_v35 = vrot.slane %v1430_v26, 5  ;;  %v1438_v36 = vrot.slane %v1436_v27, 5 }
  0x1b   : > { %v1442_v37 = vrot.slane %v1440_v28, 4  ;;  %v1448_v38 = vrot.slane %v1446_v30, 5  ;;  %v1454_v40 = vshll.u32 %v3682_v29, 16  ;;  %v1460_v41 = vshll.u32 %v3683_v31, 16  ;;  %v3685_v50 = vld [vmem:[%s4591_s14 + $0x24] sm:$0xf] }
  0x1c   : > { %v1453_v39 = vrot.slane %v1451_v33, 4  ;;  %v1433_v42 = vor.u32 %v1432_v35, %v1429_v34  ;;  %v1464_v44 = vshrl.u32 %v3683_v31, 16  ;;  %v1470_v45 = vshll.u32 %v3684_v32, 16  ;;  %v3686_v55 = vld [vmem:[%s4591_s14 + $0x28] sm:$0xf]  ;;  %v4428_v0 = vld [vmem:[%s4591_s14 + $0x3c] sm:$0xff]  }
  0x1d   : > { %v1443_v43 = vor.u32 %v1442_v37, %v1438_v36  ;;  %v1456_v48 = vrot.slane %v1454_v40, 5  ;;  %v1462_v49 = vrot.slane %v1460_v41, 5  ;;  %v3687_v57 = vld [vmem:[%s4591_s14 + $0x2c] sm:$0x1]  ;;  %v1475_v58 = vshrl.u32 %v3685_v50, 16  ;;  %s3582_s8 = sshll.u32 %s5602_s27, 3 }
  0x1e   : > { %v1434_v51 = vrot.slane %v1433_v42, 4  ;;  %v1466_v53 = vrot.slane %v1464_v44, 4  ;;  %v1472_v54 = vrot.slane %v1470_v45, 5  ;;  %v1478_v59 = vshll.u32 %v3685_v50, 16  ;;  %v3688_v2 = vld [vmem:[%s4591_s14 + $0x30] sm:$0xf]  ;;  %s239_s11 = scalar_lea.vmem %s5582_s4, %s3582_s8 }
  0x1f   : > { %v1444_v52 = vrot.slane %v1443_v43, 4  ;;  %v1457_v56 = vor.u32 %v1456_v48, %v1453_v39  ;;  %v1484_v60 = vshll.u32 %v3686_v55, 16  ;;  %v1488_v1 = vshrl.u32 %v3686_v55, 16  ;;  %v3689_v3 = vld [vmem:[%s4591_s14 + $0x34] sm:$0xf] }
  0x20   : > { %4080 = vmatmul.mubr.msk.bf16.gmra.mrb[4].mxu1 %vm304_vm1, %v4426_v24  ;;  %v1439_v61 = vsel %vm4644_vm6, %v1434_v51, %v1438_v36  ;;  %v1467_v63 = vor.u32 %v1466_v53, %v1462_v49  ;;  %v1477_v9 = vrot.slane %v1475_v58, 4  ;;  %v1480_v13 = vrot.slane %v1478_v59, 5  ;;  %v3690_v15 = vld [vmem:[%s4591_s14 + $0x38] sm:$0x1]  ;;  %v3720_v33 = vld [vmem:[%s4591_s14 + $0xc] sm:$0xe] }
  0x21   : > { %4083 = vmatprep.mubr.msk.bf16.mxu1 %vm304_vm1, %v4427_v46  ;;  %v1449_v62 = vsel %vm4644_vm6, %v1444_v52, %v1448_v38  ;;  %v1458_v7 = vrot.slane %v1457_v56, 4  ;;  %v1486_v22 = vrot.slane %v1484_v60, 5  ;;  %v1490_v23 = vrot.slane %v1488_v1, 4  ;;  %v3721_v38 = vld [vmem:[%s4591_s14 + $0x10] sm:$0xf] }
  0x22   : > { %v3704_v5 = vcombine.low %v1439_v61, %v1449_v62  ;;  %v1468_v21 = vrot.slane %v1467_v63, 4  ;;  %v1494_v24 = vshll.u32 %v3687_v57, 16  ;;  %v1481_v26 = vor.u32 %v1480_v13, %v1477_v9  ;;  %v3722_v44 = vld [vmem:[%s4591_s14 + $0x14] sm:$0x1]  ;;  %v3723_v50 = vld [vmem:[%s4591_s14 + $0x18] sm:$0xe] }
  0x23   : > { %v1463_v25 = vsel %vm4644_vm6, %v1458_v7, %v1462_v49  ;;  %v1499_v27 = vshrl.u32 %v3688_v2, 16  ;;  %v1502_v28 = vshll.u32 %v3688_v2, 16  ;;  %v1491_v30 = vor.u32 %v1490_v23, %v1486_v22  ;;  %v3724_v51 = vld [vmem:[%s4591_s14 + $0x1c] sm:$0xf]  ;;  %v3725_v56 = vld [vmem:[%s4591_s14 + $0x20] sm:$0x1] }
  0x24   : > { %4147 = vmatprep.mubr.msk.bf16.mxu0 %vm304_vm1, %v3704_v5  ;;  %v1473_v29 = vsel %vm4644_vm6, %v1468_v21, %v1472_v54  ;;  %v1496_v31 = vrot.slane %v1494_v24, 5  ;;  %v1508_v32 = vshll.u32 %v3689_v3, 16  ;;  %v1482_v35 = vrot.slane %v1481_v26, 4  ;;  %v4430_v62 = vld [vmem:[%s4591_s14 + $0x54] sm:$0xff]   ;;  %v447_v2 = vld [vmem:[%s4591_s14 + $0x4] sm:$0xf] }
  0x25   : > { %v3705_v34 = vcombine.low %v1463_v25, %v1473_v29  ;;  %v1501_v36 = vrot.slane %v1499_v27, 4  ;;  %v1504_v37 = vrot.slane %v1502_v28, 5  ;;  %v1492_v39 = vrot.slane %v1491_v30, 4  ;;  %v448_v7 = vld [vmem:[%s4591_s14 + $0x8] sm:$0x1] }
  0x26   : > { %v1510_v40 = vrot.slane %v1508_v32, 5  ;;  %v1512_v41 = vshrl.u32 %v3689_v3, 16  ;;  %v1518_v42 = vshll.u32 %v3690_v15, 16  ;;  %v1487_v45 = vsel %vm4644_vm6, %v1482_v35, %v1486_v22  ;;  %v449_v13 = vld [vmem:[%s4591_s14 + $0xc] sm:$0xf] }
  0x27   : > { %4148 = vmatmul.mubr.msk.bf16.vlgmr.msra.gmra.mrb[0].mxu0 %vm304_vm1, %v3705_v34  ;;  %v1505_v46 = vor.u32 %v1504_v37, %v1501_v36  ;;  %v3744_v48 = vrot.slane %v3720_v33, 9  ;;  %v1866_v49 = vrot.slane %v3721_v38, 5  ;;  %v1497_v52 = vsel %vm4644_vm6, %v1492_v39, %v1496_v31  ;;  %v450_v30 = vld [vmem:[%s4591_s14 + $0x10] sm:$0xf]  ;;  %v451_v31 = vld [vmem:[%s4591_s14 + $0x14] sm:$0x1] }
  0x28   : > { %4084 = vmatmul.mubr.msk.bf16.gmra.mrb[8].mxu1 %vm304_vm1, %v4428_v0  ;;  %4164 = vmatpush3.bf16.msra.mxu0 %v4586_v8  ;;  %v1514_v53 = vrot.slane %v1512_v41, 4  ;;  %v1520_v54 = vrot.slane %v1518_v42, 5  ;;  %v1869_v55 = vrot.slane %v3722_v44, 5  ;;  %v3706_v57 = vcombine.low %v1487_v45, %v1497_v52  ;;  %v446_v8 = vld [vmem:[%s4591_s14] sm:$0xf] }
  0x29   : > { %4087 = vmatprep.mubr.msk.bf16.mxu1 %vm304_vm1, %v4429_v17  ;;  %v1506_v58 = vrot.slane %v1505_v46, 4  ;;  %v1867_v59 = vsel %vm4672_vm7, %v3744_v48, %v1866_v49  ;;  %v1868_v60 = vrot.slane %v1866_v49, 4  ;;  %4372 = vmatprep.subr.msk.bf16.mxu0 %vm5583_vm0, %v4579_v6  ;;  %v3745_v63 = vrot.slane %v3723_v50, 9  ;;  %v3726_v37 = vld [vmem:[%s4591_s14 + $0x24] sm:$0xe] }
  0x2a   : > { %v1515_v61 = vor.u32 %v1514_v53, %v1510_v40  ;;  %v1873_v0 = vrot.slane %v3724_v51, 5  ;;  %v1876_v1 = vrot.slane %v3725_v56, 5  ;;  %4151 = vmatprep.mubr.msk.bf16.mxu0 %vm304_vm1, %v3706_v57  ;;  %v474_v9 = vshrl.u32 %v446_v8, 16  ;;  %v3727_v38 = vld [vmem:[%s4591_s14 + $0x28] sm:$0xf] }
  0x2b   : > { %v1511_v3 = vsel %vm4644_vm6, %v1506_v58, %v1510_v40  ;;  %v1870_v5 = vsel %vm4672_vm7, %v1868_v60, %v1869_v55  ;;  %v477_v6 = vshll.u32 %v446_v8, 16  ;;  %v483_v25 = vshll.u32 %v447_v2, 16  ;;  %v3728_v44 = vld [vmem:[%s4591_s14 + $0x2c] sm:$0x1]  ;;  %v3729_v45 = vld [vmem:[%s4591_s14 + $0x30] sm:$0xe] }
  0x2c   : > { %v1516_v15 = vrot.slane %v1515_v61, 4  ;;  %v3753_v17 = vcombine.low %v1867_v59, %v1870_v5  ;;  %v4703_v21 = vsel %vm4672_vm7, %v3745_v63, %v1873_v0  ;;  %v1875_v22 = vrot.slane %v1873_v0, 4  ;;  %v3730_v51 = vld [vmem:[%s4591_s14 + $0x34] sm:$0xf]  ;;  %v3731_v56 = vld [vmem:[%s4591_s14 + $0x38] sm:$0x1] }
  0x2d   : > { %v476_v23 = vrot.slane %v474_v9, 4  ;;  %v479_v24 = vrot.slane %v477_v6, 5  ;;  %v487_v26 = vshrl.u32 %v447_v2, 16  ;;  %v493_v29 = vshll.u32 %v448_v7, 16  ;;  %v452_v8 = vld [vmem:[%s4591_s14 + $0x18] sm:$0xf] }
  0x2e   : > { %v1521_v27 = vsel %vm4644_vm6, %v1516_v15, %v1520_v54  ;;  %v1877_v28 = vsel %vm4672_vm7, %v1875_v22, %v1876_v1  ;;  %v498_v32 = vshrl.u32 %v449_v13, 16  ;;  %v485_v36 = vrot.slane %v483_v25, 5  ;;  %v455_v25 = vld [vmem:[%s4591_s14 + $0x24] sm:$0xf]  ;;  %v3867_v47 = vld [vmem:[%s4591_s14 + $0x70] sm:$0xf] }
  0x2f   : > { %v3707_v33 = vcombine.low %v1511_v3, %v1521_v27  ;;  %v3754_v34 = vcombine.low %v4703_v21, %v1877_v28  ;;  %v480_v35 = vor.u32 %v479_v24, %v476_v23  ;;  %v489_v39 = vrot.slane %v487_v26, 4  ;;  %v454_v24 = vld [vmem:[%s4591_s14 + $0x20] sm:$0x1] }
  0x30   : > { %4088 = vmatmul.mubr.msk.bf16.gmra.mrb[12].mxu1 %vm304_vm1, %v4430_v62  ;;  %v495_v40 = vrot.slane %v493_v29, 5  ;;  %v500_v41 = vrot.slane %v498_v32, 4  ;;  %v501_v42 = vshll.u32 %v449_v13, 16  ;;  %v507_v48 = vshll.u32 %v450_v30, 16  ;;  %v453_v13 = vld [vmem:[%s4591_s14 + $0x1c] sm:$0xf] }
  0x31   : > { %4152 = vmatmul.mubr.msk.bf16.gmra.mrb[4].mxu0 %vm304_vm1, %v3707_v33  ;;  %v481_v46 = vrot.slane %v480_v35, 4  ;;  %v511_v49 = vshrl.u32 %v450_v30, 16  ;;  %v517_v50 = vshll.u32 %v451_v31, 16  ;;  %v490_v52 = vor.u32 %v489_v39, %v485_v36  ;;  %v456_v35 = vld [vmem:[%s4591_s14 + $0x28] sm:$0xf] }
  0x32   : > { %4165 = vmatprep.mubr.msk.bf16.mxu0 %vm304_vm1, %v3753_v17  ;;  %v503_v53 = vrot.slane %v501_v42, 5  ;;  %v3746_v54 = vrot.slane %v3726_v37, 9  ;;  %v1880_v55 = vrot.slane %v3727_v38, 5  ;;  %v509_v58 = vrot.slane %v507_v48, 5 }
  0x33   : > { %v486_v57 = vsel %vm4644_vm6, %v481_v46, %v485_v36  ;;  %v513_v59 = vrot.slane %v511_v49, 4  ;;  %v519_v60 = vrot.slane %v517_v50, 5  ;;  %v491_v61 = vrot.slane %v490_v52, 4  ;;  %v3733_v46 = vld [vmem:[%s4591_s14 + $0x40] sm:$0xf] }
  0x34   : > { %v504_v62 = vor.u32 %v503_v53, %v500_v41  ;;  %v1881_v63 = vsel %vm4672_vm7, %v3746_v54, %v1880_v55  ;;  %v1882_v0 = vrot.slane %v1880_v55, 4  ;;  %v1883_v2 = vrot.slane %v3728_v44, 5  ;;  %v3734_v55 = vld [vmem:[%s4591_s14 + $0x44] sm:$0x1] }
  0x35   : > { %v514_v1 = vor.u32 %v513_v59, %v509_v58  ;;  %v3747_v3 = vrot.slane %v3729_v45, 9  ;;  %v1887_v5 = vrot.slane %v3730_v51, 5  ;;  %v496_v7 = vsel %vm4644_vm6, %v491_v61, %v495_v40  ;;  %v3732_v40 = vld [vmem:[%s4591_s14 + $0x3c] sm:$0xe]  ;;  %v3735_v59 = vld [vmem:[%s4591_s14 + $0x48] sm:$0xe] }
  0x36   : > { %v505_v9 = vrot.slane %v504_v62, 4  ;;  %v1890_v6 = vrot.slane %v3731_v56, 5  ;;  %v522_v15 = vshrl.u32 %v452_v8, 16  ;;  %v3603_v17 = vcombine.low %v486_v57, %v496_v7 }
  0x37   : > { %v515_v21 = vrot.slane %v514_v1, 4  ;;  %v1884_v22 = vsel %vm4672_vm7, %v1882_v0, %v1883_v2  ;;  %v1888_v23 = vsel %vm4672_vm7, %v3747_v3, %v1887_v5  ;;  %v1889_v28 = vrot.slane %v1887_v5, 4  ;;  %v3737_v3 = vld [vmem:[%s4591_s14 + $0x50] sm:$0x1] }
  0x38   : > { %v510_v26 = vsel %vm4644_vm6, %v505_v9, %v509_v58  ;;  %v3755_v27 = vcombine.low %v1881_v63, %v1884_v22  ;;  %v524_v29 = vrot.slane %v522_v15, 4  ;;  %4093 = vmatprep.mubr.msk.bf16.mxu1 %vm304_vm1, %v3603_v17  ;;  %v525_v31 = vshll.u32 %v452_v8, 16  ;;  %v3736_v63 = vld [vmem:[%s4591_s14 + $0x4c] sm:$0xf]  ;;  %v458_v5 = vld [vmem:[%s4591_s14 + $0x30] sm:$0xf] }
  0x39   : > { %4166 = vmatmul.mubr.msk.bf16.vlgmr.msra.gmra.mrb[0].mxu0 %vm304_vm1, %v3754_v34  ;;  %v520_v30 = vsel %vm4644_vm6, %v515_v21, %v519_v60  ;;  %v531_v32 = vshll.u32 %v453_v13, 16  ;;  %v535_v33 = vshrl.u32 %v453_v13, 16  ;;  %v1891_v37 = vsel %vm4672_vm7, %v1889_v28, %v1890_v6  ;;  %v457_v34 = vld [vmem:[%s4591_s14 + $0x2c] sm:$0x1]  ;;  %v459_v22 = vld [vmem:[%s4591_s14 + $0x34] sm:$0xf] }
  0x3a   : > { %4182 = vmatpush3.bf16.msra.mxu0 %v4611_v14  ;;  %v3604_v36 = vcombine.low %v510_v26, %v520_v30  ;;  %4169 = vmatprep.mubr.msk.bf16.mxu0 %vm304_vm1, %v3755_v27  ;;  %v541_v38 = vshll.u32 %v454_v24, 16  ;;  %v546_v39 = vshrl.u32 %v455_v25, 16  ;;  %v3756_v41 = vcombine.low %v1888_v23, %v1891_v37  ;;  %v460_v23 = vld [vmem:[%s4591_s14 + $0x38] sm:$0x1]  ;;  %v461_v28 = vld [vmem:[%s4591_s14 + $0x3c] sm:$0xf] }
  0x3b   : > { %v527_v42 = vrot.slane %v525_v31, 5  ;;  %v533_v44 = vrot.slane %v531_v32, 5  ;;  %v537_v45 = vrot.slane %v535_v33, 4  ;;  %4373 = vmatprep.subr.msk.bf16.mxu0 %vm5583_vm0, %v4596_v10  ;;  %v549_v49 = vshll.u32 %v455_v25, 16  ;;  %v462_v33 = vld [vmem:[%s4591_s14 + $0x40] sm:$0xf] }
  0x3c   : > { %4094 = vmatmul.mubr.msk.bf16.vlgmr.msra.gmra.mrb[0].mxu1 %vm304_vm1, %v3604_v36  ;;  %v543_v14 = vrot.slane %v541_v38, 5  ;;  %v548_v48 = vrot.slane %v546_v39, 4  ;;  %v555_v50 = vshll.u32 %v456_v35, 16  ;;  %v559_v53 = vshrl.u32 %v456_v35, 16  ;;  %v463_v35 = vld [vmem:[%s4591_s14 + $0x44] sm:$0x1] }
  0x3d   : > { %v528_v51 = vor.u32 %v527_v42, %v524_v29  ;;  %v538_v52 = vor.u32 %v537_v45, %v533_v44  ;;  %v565_v54 = vshll.u32 %v457_v34, 16  ;;  %4110 = vmatpush3.bf16.msra.mxu1 %v4615_v16  ;;  %v551_v56 = vrot.slane %v549_v49, 5  ;;  %v3738_v39 = vld [vmem:[%s4591_s14 + $0x54] sm:$0xe]  ;;  %v3739_v45 = vld [vmem:[%s4591_s14 + $0x58] sm:$0xf] }
  0x3e   : > { %v557_v57 = vrot.slane %v555_v50, 5  ;;  %v3748_v10 = vrot.slane %v3732_v40, 9  ;;  %v1894_v58 = vrot.slane %v3733_v46, 5  ;;  %4368 = vmatprep.subr.msk.bf16.mxu1 %vm5583_vm0, %v4601_v11  ;;  %v561_v61 = vrot.slane %v559_v53, 4 }
  0x3f   : > { %v529_v60 = vrot.slane %v528_v51, 4  ;;  %v539_v8 = vrot.slane %v538_v52, 4  ;;  %v567_v62 = vrot.slane %v565_v54, 5  ;;  %v552_v0 = vor.u32 %v551_v56, %v548_v48  ;;  %v3740_v54 = vld [vmem:[%s4591_s14 + $0x5c] sm:$0x1] }
  0x40   : > { %v1895_v16 = vsel %vm4672_vm7, %v3748_v10, %v1894_v58  ;;  %v1896_v1 = vrot.slane %v1894_v58, 4  ;;  %v1897_v2 = vrot.slane %v3734_v55, 5  ;;  %v562_v9 = vor.u32 %v561_v61, %v557_v57  ;;  %v3741_v58 = vld [vmem:[%s4591_s14 + $0x60] sm:$0xe] }
  0x41   : > { %4170 = vmatmul.mubr.msk.bf16.gmra.mrb[4].mxu0 %vm304_vm1, %v3756_v41  ;;  %v534_v11 = vsel %vm4644_vm6, %v529_v60, %v533_v44  ;;  %v544_v7 = vsel %vm4644_vm6, %v539_v8, %v543_v14  ;;  %v3749_v6 = vrot.slane %v3735_v59, 9  ;;  %v553_v15 = vrot.slane %v552_v0, 4 }
  0x42   : > { %v3605_v13 = vcombine.low %v534_v11, %v544_v7  ;;  %v1898_v17 = vsel %vm4672_vm7, %v1896_v1, %v1897_v2  ;;  %v1901_v21 = vrot.slane %v3736_v63, 5  ;;  %v563_v24 = vrot.slane %v562_v9, 4  ;;  %v3743_v2 = vld [vmem:[%s4591_s14 + $0x68] sm:$0x1] }
  0x43   : > { %v3757_v25 = vcombine.low %v1895_v16, %v1898_v17  ;;  %v1904_v26 = vrot.slane %v3737_v3, 5  ;;  %v570_v27 = vshrl.u32 %v458_v5, 16  ;;  %v558_v29 = vsel %vm4644_vm6, %v553_v15, %v557_v57  ;;  %v464_v9 = vld [vmem:[%s4591_s14 + $0x48] sm:$0xf] }
  0x44   : > { %4097 = vmatprep.mubr.msk.bf16.mxu1 %vm304_vm1, %v3605_v13  ;;  %v1902_v30 = vsel %vm4672_vm7, %v3749_v6, %v1901_v21  ;;  %v1903_v31 = vrot.slane %v1901_v21, 4  ;;  %v573_v32 = vshll.u32 %v458_v5, 16  ;;  %v568_v36 = vsel %vm4644_vm6, %v563_v24, %v567_v62  ;;  %v3742_v62 = vld [vmem:[%s4591_s14 + $0x64] sm:$0xf]  ;;  %v465_v6 = vld [vmem:[%s4591_s14 + $0x4c] sm:$0xf] }
  0x45   : > { %4173 = vmatprep.mubr.msk.bf16.mxu0 %vm304_vm1, %v3757_v25  ;;  %v572_v37 = vrot.slane %v570_v27, 4  ;;  %v579_v38 = vshll.u32 %v459_v22, 16  ;;  %v583_v34 = vshrl.u32 %v459_v22, 16  ;;  %v3606_v40 = vcombine.low %v558_v29, %v568_v36  ;;  %v466_v22 = vld [vmem:[%s4591_s14 + $0x50] sm:$0x1] }
  0x46   : > { %v1905_v41 = vsel %vm4672_vm7, %v1903_v31, %v1904_v26  ;;  %v575_v42 = vrot.slane %v573_v32, 5  ;;  %v589_v44 = vshll.u32 %v460_v23, 16  ;;  %v594_v49 = vshrl.u32 %v461_v28, 16  ;;  %v467_v36 = vld [vmem:[%s4591_s14 + $0x54] sm:$0xf] }
  0x47   : > { %v3758_v46 = vcombine.low %v1902_v30, %v1905_v41  ;;  %v581_v14 = vrot.slane %v579_v38, 5  ;;  %v585_v48 = vrot.slane %v583_v34, 4  ;;  %4098 = vmatmul.mubr.msk.bf16.gmra.mrb[4].mxu1 %vm304_vm1, %v3606_v40  ;;  %v597_v52 = vshll.u32 %v461_v28, 16  ;;  %v469_v41 = vld [vmem:[%s4591_s14 + $0x5c] sm:$0x1] }
  0x48   : > { %v576_v50 = vor.u32 %v575_v42, %v572_v37  ;;  %v591_v51 = vrot.slane %v589_v44, 5  ;;  %v603_v53 = vshll.u32 %v462_v33, 16  ;;  %v596_v56 = vrot.slane %v594_v49, 4  ;;  %v468_v37 = vld [vmem:[%s4591_s14 + $0x58] sm:$0xf] }
  0x49   : > { %4174 = vmatmul.mubr.msk.bf16.gmra.mrb[8].mxu0 %vm304_vm1, %v3758_v46  ;;  %v586_v55 = vor.u32 %v585_v48, %v581_v14  ;;  %v607_v57 = vshrl.u32 %v462_v33, 16  ;;  %v613_v10 = vshll.u32 %v463_v35, 16  ;;  %v599_v60 = vrot.slane %v597_v52, 5  ;;  %v4431_v42 = vld [vmem:[%s4591_s14 + $0x18] sm:$0xff]   ;;  %v863_v48 = vld [vmem:[%s4591_s14] sm:$0xe] }
  0x4a   : > { %v577_v59 = vrot.slane %v576_v50, 4  ;;  %v605_v8 = vrot.slane %v603_v53, 5  ;;  %v3750_v61 = vrot.slane %v3738_v39, 9  ;;  %v1908_v1 = vrot.slane %v3739_v45, 5  ;;  %v864_v49 = vld [vmem:[%s4591_s14 + $0x4] sm:$0xf] }
  0x4b   : > { %v587_v63 = vrot.slane %v586_v55, 4  ;;  %v609_v0 = vrot.slane %v607_v57, 4  ;;  %v615_v16 = vrot.slane %v613_v10, 5  ;;  %v600_v5 = vor.u32 %v599_v60, %v596_v56  ;;  %v866_v55 = vld [vmem:[%s4591_s14 + $0xc] sm:$0xe] }
  0x4c   : > { %v582_v3 = vsel %vm4644_vm6, %v577_v59, %v581_v14  ;;  %v1911_v11 = vrot.slane %v3740_v54, 5  ;;  %v3751_v7 = vrot.slane %v3741_v58, 9  ;;  %v1909_v17 = vsel %vm4672_vm7, %v3750_v61, %v1908_v1  ;;  %v865_v54 = vld [vmem:[%s4591_s14 + $0x8] sm:$0x1]  ;;  %v867_v59 = vld [vmem:[%s4591_s14 + $0x10] sm:$0xf] }
  0x4d   : > { %v592_v13 = vsel %vm4644_vm6, %v587_v63, %v591_v51  ;;  %v610_v15 = vor.u32 %v609_v0, %v605_v8  ;;  %v1910_v21 = vrot.slane %v1908_v1, 4  ;;  %v601_v24 = vrot.slane %v600_v5, 4  ;;  %v868_v63 = vld [vmem:[%s4591_s14 + $0x14] sm:$0x1]  ;;  %v869_v0 = vld [vmem:[%s4591_s14 + $0x18] sm:$0xe] }
  0x4e   : > { %v3607_v23 = vcombine.low %v582_v3, %v592_v13  ;;  %v1915_v25 = vrot.slane %v3742_v62, 5  ;;  %v1918_v26 = vrot.slane %v3743_v2, 5  ;;  %v618_v29 = vshrl.u32 %v464_v9, 16 }
  0x4f   : > { %v611_v27 = vrot.slane %v610_v15, 4  ;;  %v1912_v28 = vsel %vm4672_vm7, %v1910_v21, %v1911_v11  ;;  %v621_v30 = vshll.u32 %v464_v9, 16  ;;  %v606_v31 = vsel %vm4644_vm6, %v601_v24, %v605_v8 }
  0x50   : > { %4101 = vmatprep.mubr.msk.bf16.mxu1 %vm304_vm1, %v3607_v23  ;;  %v3759_v32 = vcombine.low %v1909_v17, %v1912_v28  ;;  %v1916_v33 = vsel %vm4672_vm7, %v3751_v7, %v1915_v25  ;;  %v1917_v35 = vrot.slane %v1915_v25, 4  ;;  %v620_v34 = vrot.slane %v618_v29, 4  ;;  %v4432_v17 = vld [vmem:[%s4591_s14 + $0x24] sm:$0xff]   ;;  %v871_v23 = vld [vmem:[%s4591_s14 + $0x20] sm:$0x1] }
  0x51   : > { %v616_v38 = vsel %vm4644_vm6, %v611_v27, %v615_v16  ;;  %v623_v39 = vrot.slane %v621_v30, 5  ;;  %v627_v40 = vshll.u32 %v465_v6, 16  ;;  %v631_v46 = vshrl.u32 %v465_v6, 16  ;;  %v870_v6 = vld [vmem:[%s4591_s14 + $0x1c] sm:$0xf] }
  0x52   : > { %v3608_v44 = vcombine.low %v606_v31, %v616_v38  ;;  %4177 = vmatprep.mubr.msk.bf16.mxu0 %vm304_vm1, %v3759_v32  ;;  %v1919_v45 = vsel %vm4672_vm7, %v1917_v35, %v1918_v26  ;;  %v637_v14 = vshll.u32 %v466_v22, 16  ;;  %v642_v53 = vshrl.u32 %v467_v36, 16  ;;  %v872_v28 = vld [vmem:[%s4591_s14 + $0x24] sm:$0xe]  ;;  %v873_v29 = vld [vmem:[%s4591_s14 + $0x28] sm:$0xf] }
  0x53   : > { %v3760_v50 = vcombine.low %v1916_v33, %v1919_v45  ;;  %v624_v51 = vor.u32 %v623_v39, %v620_v34  ;;  %v629_v52 = vrot.slane %v627_v40, 5  ;;  %v633_v56 = vrot.slane %v631_v46, 4  ;;  %v4433_v33 = vld [vmem:[%s4591_s14 + $0x30] sm:$0xff]  }
  0x54   : > { %4102 = vmatmul.mubr.msk.bf16.gmra.mrb[8].mxu1 %vm304_vm1, %v3608_v44  ;;  %v639_v57 = vrot.slane %v637_v14, 5  ;;  %v645_v10 = vshll.u32 %v467_v36, 16  ;;  %v651_v58 = vshll.u32 %v468_v37, 16  ;;  %v644_v8 = vrot.slane %v642_v53, 4  ;;  %v874_v36 = vld [vmem:[%s4591_s14 + $0x2c] sm:$0x1] }
  0x55   : > { %4178 = vmatmul.mubr.msk.bf16.gmra.mrb[12].mxu0 %vm304_vm1, %v3760_v50  ;;  %v625_v60 = vrot.slane %v624_v51, 4  ;;  %v655_v61 = vshrl.u32 %v468_v37, 16  ;;  %v661_v62 = vshll.u32 %v469_v41, 16  ;;  %v634_v16 = vor.u32 %v633_v56, %v629_v52  ;;  %v875_v40 = vld [vmem:[%s4591_s14 + $0x30] sm:$0xe] }
  0x56   : > { %v647_v1 = vrot.slane %v645_v10, 5  ;;  %v653_v2 = vrot.slane %v651_v58, 5  ;;  %4183 = vmatprep.mubr.msk.bf16.mxu0 %vm304_vm1, %v4431_v42  ;;  %v3619_v3 = vrot.slane %v863_v48, 9  ;;  %v916_v9 = vrot.slane %v864_v49, 5  ;;  %v876_v41 = vld [vmem:[%s4591_s14 + $0x34] sm:$0xf] }
  0x57   : > { %v630_v5 = vsel %vm4644_vm6, %v625_v60, %v629_v52  ;;  %v657_v11 = vrot.slane %v655_v61, 4  ;;  %v663_v7 = vrot.slane %v661_v62, 5  ;;  %v635_v13 = vrot.slane %v634_v16, 4  ;;  %v877_v42 = vld [vmem:[%s4591_s14 + $0x38] sm:$0x1] }
  0x58   : > { %v648_v15 = vor.u32 %v647_v1, %v644_v8  ;;  %v919_v21 = vrot.slane %v865_v54, 5  ;;  %v3620_v22 = vrot.slane %v866_v55, 9  ;;  %v917_v25 = vsel %vm4672_vm7, %v3619_v3, %v916_v9  ;;  %v878_v48 = vld [vmem:[%s4591_s14 + $0x3c] sm:$0xe]  ;;  %v880_v10 = vld [vmem:[%s4591_s14 + $0x44] sm:$0x1] }
  0x59   : > { %v658_v24 = vor.u32 %v657_v11, %v653_v2  ;;  %v918_v26 = vrot.slane %v916_v9, 4  ;;  %v923_v27 = vrot.slane %v867_v59, 5  ;;  %v640_v30 = vsel %vm4644_vm6, %v635_v13, %v639_v57  ;;  %v879_v57 = vld [vmem:[%s4591_s14 + $0x40] sm:$0xf]  ;;  %v881_v61 = vld [vmem:[%s4591_s14 + $0x48] sm:$0xe] }
  0x5a   : > { %v649_v31 = vrot.slane %v648_v15, 4  ;;  %v926_v32 = vrot.slane %v868_v63, 5  ;;  %v3621_v35 = vrot.slane %v869_v0, 9  ;;  %v3609_v37 = vcombine.low %v630_v5, %v640_v30  ;;  %v4434_v59 = vld [vmem:[%s4591_s14 + $0x3c] sm:$0xff]   ;;  %v882_v62 = vld [vmem:[%s4591_s14 + $0x4c] sm:$0xf] }
  0x5b   : > { %v659_v38 = vrot.slane %v658_v24, 4  ;;  %v920_v34 = vsel %vm4672_vm7, %v918_v26, %v919_v21  ;;  %v4844_v39 = vsel %vm4672_vm7, %v3620_v22, %v923_v27  ;;  %v925_v46 = vrot.slane %v923_v27, 4  ;;  %v4435_v0 = vld [vmem:[%s4591_s14 + $0x48] sm:$0xff]   ;;  %v883_v3 = vld [vmem:[%s4591_s14 + $0x50] sm:$0x1] }
  0x5c   : > { %v654_v44 = vsel %vm4644_vm6, %v649_v31, %v653_v2  ;;  %v3628_v45 = vcombine.low %v917_v25, %v920_v34  ;;  %v930_v14 = vrot.slane %v870_v6, 5  ;;  %4105 = vmatprep.mubr.msk.bf16.mxu1 %vm304_vm1, %v3609_v37  ;;  %v933_v50 = vrot.slane %v871_v23, 5  ;;  %v884_v9 = vld [vmem:[%s4591_s14 + $0x54] sm:$0xe]  ;;  %v885_v6 = vld [vmem:[%s4591_s14 + $0x58] sm:$0xf] }
  0x5d   : > { %v664_v49 = vsel %vm4644_vm6, %v659_v38, %v663_v7  ;;  %4184 = vmatmul.mubr.msk.bf16.vlgmr.msra.gmra.mrb[0].mxu0 %vm304_vm1, %v4432_v17  ;;  %v3622_v51 = vrot.slane %v872_v28, 9  ;;  %v937_v52 = vrot.slane %v873_v29, 5  ;;  %v927_v54 = vsel %vm4672_vm7, %v925_v46, %v926_v32  ;;  %v886_v22 = vld [vmem:[%s4591_s14 + $0x5c] sm:$0x1]  ;;  %v3804_v23 = vld [vmem:[%s4591_s14 + $0x18] sm:$0xf] }
  0x5e   : > { %v3610_v53 = vcombine.low %v654_v44, %v664_v49  ;;  %4200 = vmatpush3.bf16.msra.mxu0 %v4621_v18  ;;  %4187 = vmatprep.mubr.msk.bf16.mxu0 %vm304_vm1, %v4433_v33  ;;  %v4862_v55 = vsel %vm4672_vm7, %v3621_v35, %v930_v14  ;;  %v932_v56 = vrot.slane %v930_v14, 4  ;;  %v3629_v58 = vcombine.low %v4844_v39, %v927_v54  ;;  %v3805_v28 = vld [vmem:[%s4591_s14 + $0x1c] sm:$0xf]  ;;  %v3806_v33 = vld [vmem:[%s4591_s14 + $0x20] sm:$0x1]  ;;  %v4436_v54 = vld [vmem:[%s4591_s14 + $0x54] sm:$0xff]  }
  0x5f   : > { %v4870_v18 = vsel %vm4672_vm7, %v3622_v51, %v937_v52  ;;  %v939_v60 = vrot.slane %v937_v52, 4  ;;  %v940_v8 = vrot.slane %v874_v36, 5  ;;  %4374 = vmatprep.subr.msk.bf16.mxu0 %vm5583_vm0, %v4606_v12  ;;  %v3623_v16 = vrot.slane %v875_v40, 9  ;;  %v3807_v34 = vld [vmem:[%s4591_s14 + $0x24] sm:$0xf] }
  0x60   : > { %4106 = vmatmul.mubr.msk.bf16.gmra.mrb[12].mxu1 %vm304_vm1, %v3610_v53  ;;  %v934_v63 = vsel %vm4672_vm7, %v932_v56, %v933_v50  ;;  %v944_v1 = vrot.slane %v876_v41, 5  ;;  %v947_v2 = vrot.slane %v877_v42, 5  ;;  %v3624_v11 = vrot.slane %v878_v48, 9  ;;  %v3808_v52 = vld [vmem:[%s4591_s14 + $0x28] sm:$0xf] }
  0x61   : > { %4111 = vmatprep.mubr.msk.bf16.mxu1 %vm304_vm1, %v3628_v45  ;;  %v3630_v5 = vcombine.low %v4862_v55, %v934_v63  ;;  %v4885_v12 = vsel %vm4672_vm7, %v939_v60, %v940_v8  ;;  %v951_v7 = vrot.slane %v879_v57, 5  ;;  %v954_v21 = vrot.slane %v880_v10, 5  ;;  %v3809_v53 = vld [vmem:[%s4591_s14 + $0x2c] sm:$0x1]  ;;  %v4449_v63 = vld [vmem:[%s5579_s1 + $0x10] sm:$0xf] }
  0x62   : > { %v3631_v13 = vcombine.low %v4870_v18, %v4885_v12  ;;  %v4893_v15 = vsel %vm4672_vm7, %v3623_v16, %v944_v1  ;;  %v946_v17 = vrot.slane %v944_v1, 4  ;;  %v3625_v26 = vrot.slane %v881_v61, 9 }
  0x63   : > { %v4899_v24 = vsel %vm4672_vm7, %v3624_v11, %v951_v7  ;;  %v953_v25 = vrot.slane %v951_v7, 4  ;;  %v958_v27 = vrot.slane %v882_v62, 5  ;;  %v961_v30 = vrot.slane %v883_v3, 5  ;;  %v3812_v7 = vld [vmem:[%s4591_s14 + $0x38] sm:$0x1] }
  0x64   : > { %v4904_v29 = vsel %vm4672_vm7, %v946_v17, %v947_v2  ;;  %v3626_v31 = vrot.slane %v884_v9, 9  ;;  %v965_v32 = vrot.slane %v885_v6, 5  ;;  %v968_v42 = vrot.slane %v886_v22, 5  ;;  %v3811_v2 = vld [vmem:[%s4591_s14 + $0x34] sm:$0xf] }
  0x65   : > { %4188 = vmatmul.mubr.msk.bf16.gmra.mrb[4].mxu0 %vm304_vm1, %v4434_v59  ;;  %v3632_v35 = vcombine.low %v4893_v15, %v4904_v29  ;;  %v4912_v36 = vsel %vm4672_vm7, %v953_v25, %v954_v21  ;;  %v4916_v37 = vsel %vm4672_vm7, %v3625_v26, %v958_v27  ;;  %v960_v38 = vrot.slane %v958_v27, 4  ;;  %v4437_v59 = vld [vmem:[%s4591_s14 + $0x60] sm:$0xff]  }
  0x66   : > { %4191 = vmatprep.mubr.msk.bf16.mxu0 %vm304_vm1, %v4435_v0  ;;  %v3633_v39 = vcombine.low %v4899_v24, %v4912_v36  ;;  %v4924_v40 = vsel %vm4672_vm7, %v3626_v31, %v965_v32  ;;  %v967_v41 = vrot.slane %v965_v32, 4  ;;  %v2377_v45 = vshrl.u32 %v3804_v23, 16  ;;  %v3821_v24 = vld [vmem:[%s4591_s14 + $0x5c] sm:$0x1] }
  0x67   : > { %v4928_v44 = vsel %vm4672_vm7, %v960_v38, %v961_v30  ;;  %v2380_v46 = vshll.u32 %v3804_v23, 16  ;;  %v2386_v14 = vshll.u32 %v3805_v28, 16  ;;  %v2390_v50 = vshrl.u32 %v3805_v28, 16  ;;  %v3813_v23 = vld [vmem:[%s4591_s14 + $0x3c] sm:$0xf] }
  0x68   : > { %4112 = vmatmul.mubr.msk.bf16.vlgmr.msra.gmra.mrb[0].mxu1 %vm304_vm1, %v3629_v58  ;;  %v3634_v48 = vcombine.low %v4916_v37, %v4928_v44  ;;  %v4935_v49 = vsel %vm4672_vm7, %v967_v41, %v968_v42  ;;  %v2396_v51 = vshll.u32 %v3806_v33, 16  ;;  %v2379_v56 = vrot.slane %v2377_v45, 4  ;;  %v3810_v58 = vld [vmem:[%s4591_s14 + $0x30] sm:$0xf]  ;;  %v3814_v45 = vld [vmem:[%s4591_s14 + $0x40] sm:$0xf] }
  0x69   : > { %4115 = vmatprep.mubr.msk.bf16.mxu1 %vm304_vm1, %v3630_v5  ;;  %4128 = vmatpush3.bf16.msra.mxu1 %v4626_v19  ;;  %v3635_v55 = vcombine.low %v4924_v40, %v4935_v49  ;;  %v2382_v57 = vrot.slane %v2380_v46, 5  ;;  %v2388_v10 = vrot.slane %v2386_v14, 5  ;;  %v2392_v60 = vrot.slane %v2390_v50, 4  ;;  %v4438_v46 = vld [vmem:[%s4591_s14 + $0x6c] sm:$0xff]   ;;  %v3823_v44 = vld [vmem:[%s4591_s14 + $0x64] sm:$0xf] }
  0x6a   : > { %v2398_v8 = vrot.slane %v2396_v51, 5  ;;  %v2401_v61 = vshrl.u32 %v3807_v34, 16  ;;  %v2404_v62 = vshll.u32 %v3807_v34, 16  ;;  %4370 = vmatprep.subr.msk.bf16.mxu1 %vm5583_vm0, %v4449_v63  ;;  %v2410_v0 = vshll.u32 %v3808_v52, 16 }
  0x6b   : > { %v2383_v19 = vor.u32 %v2382_v57, %v2379_v56  ;;  %v2414_v16 = vshrl.u32 %v3808_v52, 16  ;;  %v2420_v1 = vshll.u32 %v3809_v53, 16  ;;  %v2393_v3 = vor.u32 %v2392_v60, %v2388_v10  ;;  %v3815_v53 = vld [vmem:[%s4591_s14 + $0x44] sm:$0x1]  ;;  %v3816_v57 = vld [vmem:[%s4591_s14 + $0x48] sm:$0xf] }
  0x6c   : > { %v2403_v5 = vrot.slane %v2401_v61, 4  ;;  %v2406_v11 = vrot.slane %v2404_v62, 5  ;;  %v2425_v9 = vshrl.u32 %v3810_v58, 16  ;;  %v2412_v17 = vrot.slane %v2410_v0, 5  ;;  %v3818_v61 = vld [vmem:[%s4591_s14 + $0x50] sm:$0x1] }
  0x6d   : > { %4192 = vmatmul.mubr.msk.bf16.gmra.mrb[8].mxu0 %vm304_vm1, %v4436_v54  ;;  %v2384_v6 = vrot.slane %v2383_v19, 4  ;;  %v2416_v21 = vrot.slane %v2414_v16, 4  ;;  %v2422_v22 = vrot.slane %v2420_v1, 5  ;;  %v2394_v25 = vrot.slane %v2393_v3, 4 }
  0x6e   : > { %4195 = vmatprep.mubr.msk.bf16.mxu0 %vm304_vm1, %v4437_v59  ;;  %v2407_v26 = vor.u32 %v2406_v11, %v2403_v5  ;;  %v2427_v27 = vrot.slane %v2425_v9, 4  ;;  %v2428_v28 = vshll.u32 %v3810_v58, 16  ;;  %v2434_v32 = vshll.u32 %v3811_v2, 16 }
  0x6f   : > { %v2389_v30 = vsel %vm4644_vm6, %v2384_v6, %v2388_v10  ;;  %v2417_v31 = vor.u32 %v2416_v21, %v2412_v17  ;;  %v2438_v33 = vshrl.u32 %v3811_v2, 16  ;;  %v2399_v38 = vsel %vm4644_vm6, %v2394_v25, %v2398_v8  ;;  %v3817_v10 = vld [vmem:[%s4591_s14 + $0x4c] sm:$0xf]  ;;  %v3819_v6 = vld [vmem:[%s4591_s14 + $0x54] sm:$0xf] }
  0x70   : > { %4116 = vmatmul.mubr.msk.bf16.gmra.mrb[4].mxu1 %vm304_vm1, %v3631_v13  ;;  %v2408_v34 = vrot.slane %v2407_v26, 4  ;;  %v2430_v41 = vrot.slane %v2428_v28, 5  ;;  %v2444_v42 = vshll.u32 %v3812_v7, 16  ;;  %v3829_v14 = vcombine.low %v2389_v30, %v2399_v38  ;;  %v3820_v25 = vld [vmem:[%s4591_s14 + $0x58] sm:$0xf] }
  0x71   : > { %4119 = vmatprep.mubr.msk.bf16.mxu1 %vm304_vm1, %v3632_v35  ;;  %v2418_v18 = vrot.slane %v2417_v31, 4  ;;  %v2436_v12 = vrot.slane %v2434_v32, 5  ;;  %v2440_v50 = vrot.slane %v2438_v33, 4  ;;  %v2449_v54 = vshrl.u32 %v3813_v23, 16  ;;  %v3822_v33 = vld [vmem:[%s4591_s14 + $0x60] sm:$0xf] }
  0x72   : > { %v2413_v13 = vsel %vm4644_vm6, %v2408_v34, %v2412_v17  ;;  %v2431_v51 = vor.u32 %v2430_v41, %v2427_v27  ;;  %v2446_v52 = vrot.slane %v2444_v42, 5  ;;  %v2452_v56 = vshll.u32 %v3813_v23, 16  ;;  %v4439_v42 = vld [vmem:[%s4591_s14 + $0xc] sm:$0xff]  }
  0x73   : > { %v2423_v15 = vsel %vm4644_vm6, %v2418_v18, %v2422_v22  ;;  %v2441_v29 = vor.u32 %v2440_v50, %v2436_v12  ;;  %v2458_v35 = vshll.u32 %v3814_v45, 16  ;;  %v2451_v60 = vrot.slane %v2449_v54, 4 }
  0x74   : > { %v3830_v58 = vcombine.low %v2413_v13, %v2423_v15  ;;  %v2432_v59 = vrot.slane %v2431_v51, 4  ;;  %v2462_v8 = vshrl.u32 %v3814_v45, 16  ;;  %v2454_v63 = vrot.slane %v2452_v56, 5  ;;  %v3824_v56 = vld [vmem:[%s4591_s14 + $0x68] sm:$0x1] }
  0x75   : > { %4196 = vmatmul.mubr.msk.bf16.gmra.mrb[12].mxu0 %vm304_vm1, %v4438_v46  ;;  %v2442_v62 = vrot.slane %v2441_v29, 4  ;;  %v2460_v19 = vrot.slane %v2458_v35, 5  ;;  %v2468_v0 = vshll.u32 %v3815_v53, 16  ;;  %v2473_v2 = vshrl.u32 %v3816_v57, 16 }
  0x76   : > { %4201 = vmatprep.mubr.msk.bf16.mxu0 %vm304_vm1, %v3829_v14  ;;  %v2437_v16 = vsel %vm4644_vm6, %v2432_v59, %v2436_v12  ;;  %v2464_v1 = vrot.slane %v2462_v8, 4  ;;  %v2476_v3 = vshll.u32 %v3816_v57, 16  ;;  %v2455_v11 = vor.u32 %v2454_v63, %v2451_v60  ;;  %v3825_v60 = vld [vmem:[%s4591_s14 + $0x6c] sm:$0xf] }
  0x77   : > { %v2447_v5 = vsel %vm4644_vm6, %v2442_v62, %v2446_v52  ;;  %v2470_v7 = vrot.slane %v2468_v0, 5  ;;  %v2482_v9 = vshll.u32 %v3817_v10, 16  ;;  %v2475_v22 = vrot.slane %v2473_v2, 4 }
  0x78   : > { %4120 = vmatmul.mubr.msk.bf16.gmra.mrb[8].mxu1 %vm304_vm1, %v3633_v39  ;;  %v3831_v17 = vcombine.low %v2437_v16, %v2447_v5  ;;  %v2465_v21 = vor.u32 %v2464_v1, %v2460_v19  ;;  %v2478_v23 = vrot.slane %v2476_v3, 5  ;;  %v2456_v26 = vrot.slane %v2455_v11, 4  ;;  %v3827_v16 = vld [vmem:[%s4591_s14 + $0x74] sm:$0x1]  ;;  %v3845_v11 = vld [vmem:[%s4591_s14 + $0x18] sm:$0xe] }
  0x79   : > { %4123 = vmatprep.mubr.msk.bf16.mxu1 %vm304_vm1, %v3634_v48  ;;  %v2484_v27 = vrot.slane %v2482_v9, 5  ;;  %v2486_v28 = vshrl.u32 %v3817_v10, 16  ;;  %v2492_v30 = vshll.u32 %v3818_v61, 16  ;;  %v2497_v31 = vshrl.u32 %v3819_v6, 16 }
  0x7a   : > { %v2466_v36 = vrot.slane %v2465_v21, 4  ;;  %v2479_v39 = vor.u32 %v2478_v23, %v2475_v22  ;;  %v2500_v32 = vshll.u32 %v3819_v6, 16  ;;  %v2461_v38 = vsel %vm4644_vm6, %v2456_v26, %v2460_v19  ;;  %v3826_v19 = vld [vmem:[%s4591_s14 + $0x70] sm:$0xf]  ;;  %v3846_v22 = vld [vmem:[%s4591_s14 + $0x1c] sm:$0xf] }
  0x7b   : > { %v2488_v34 = vrot.slane %v2486_v28, 4  ;;  %v2494_v41 = vrot.slane %v2492_v30, 5  ;;  %v2506_v37 = vshll.u32 %v3820_v25, 16  ;;  %v2499_v46 = vrot.slane %v2497_v31, 4  ;;  %v4441_v23 = vld [vmem:[%s4591_s14 + $0x24] sm:$0xff]  }
  0x7c   : > { %v2471_v48 = vsel %vm4644_vm6, %v2466_v36, %v2470_v7  ;;  %v2480_v45 = vrot.slane %v2479_v39, 4  ;;  %v2502_v14 = vrot.slane %v2500_v32, 5  ;;  %v2510_v13 = vshrl.u32 %v3820_v25, 16  ;;  %v4440_v7 = vld [vmem:[%s4591_s14 + $0x18] sm:$0xff]   ;;  %v3847_v30 = vld [vmem:[%s4591_s14 + $0x20] sm:$0x1] }
  0x7d   : > { %4202 = vmatmul.mubr.msk.bf16.vlgmr.msra.gmra.mrb[0].mxu0 %vm304_vm1, %v3830_v58  ;;  %v3832_v18 = vcombine.low %v2461_v38, %v2471_v48  ;;  %v2489_v12 = vor.u32 %v2488_v34, %v2484_v27  ;;  %v2508_v50 = vrot.slane %v2506_v37, 5  ;;  %v2516_v53 = vshll.u32 %v3821_v24, 16  ;;  %v3848_v32 = vld [vmem:[%s4591_s14 + $0x24] sm:$0xe]  ;;  %v3849_v37 = vld [vmem:[%s4591_s14 + $0x28] sm:$0xf] }
  0x7e   : > { %4218 = vmatpush3.bf16.msra.mxu0 %v4630_v20  ;;  %4205 = vmatprep.mubr.msk.bf16.mxu0 %vm304_vm1, %v3831_v17  ;;  %v2485_v51 = vsel %vm4644_vm6, %v2480_v45, %v2484_v27  ;;  %v2503_v52 = vor.u32 %v2502_v14, %v2499_v46  ;;  %v2521_v54 = vshrl.u32 %v3822_v33, 16  ;;  %v2512_v29 = vrot.slane %v2510_v13, 4  ;;  %v3850_v46 = vld [vmem:[%s4591_s14 + $0x2c] sm:$0x1]  ;;  %v3691_v14 = vld [vmem:[%s4591_s14 + $0x3c] sm:$0xf] }
  0x7f   : > { %v2490_v15 = vrot.slane %v2489_v12, 4  ;;  %v2524_v35 = vshll.u32 %v3822_v33, 16  ;;  %v2530_v57 = vshll.u32 %v3823_v44, 16  ;;  %v2518_v10 = vrot.slane %v2516_v53, 5 }
  0x80   : > { %4124 = vmatmul.mubr.msk.bf16.gmra.mrb[12].mxu1 %vm304_vm1, %v3635_v55  ;;  %v2504_v20 = vrot.slane %v2503_v52, 4  ;;  %v2523_v58 = vrot.slane %v2521_v54, 4  ;;  %v2534_v59 = vshrl.u32 %v3823_v44, 16  ;;  %v2513_v61 = vor.u32 %v2512_v29, %v2508_v50 }
  0x81   : > { %4129 = vmatprep.mubr.msk.bf16.mxu1 %vm304_vm1, %v4439_v42  ;;  %v2495_v8 = vsel %vm4644_vm6, %v2490_v15, %v2494_v41  ;;  %v2526_v62 = vrot.slane %v2524_v35, 5  ;;  %v2532_v63 = vrot.slane %v2530_v57, 5  ;;  %v2540_v0 = vshll.u32 %v3824_v56, 16  ;;  %v3692_v15 = vld [vmem:[%s4591_s14 + $0x40] sm:$0xf] }
  0x82   : > { %v3833_v40 = vcombine.low %v2485_v51, %v2495_v8  ;;  %v2509_v49 = vsel %vm4644_vm6, %v2504_v20, %v2508_v50  ;;  %v2536_v55 = vrot.slane %v2534_v59, 4  ;;  %v2514_v1 = vrot.slane %v2513_v61, 4  ;;  %v4442_v20 = vld [vmem:[%s4591_s14 + $0x30] sm:$0xff]   ;;  %v4443_v8 = vld [vmem:[%s4591_s14 + $0x3c] sm:$0xff]  }
  0x83   : > { %v2527_v2 = vor.u32 %v2526_v62, %v2523_v58  ;;  %v2545_v3 = vshrl.u32 %v3825_v60, 16  ;;  %v2548_v5 = vshll.u32 %v3825_v60, 16  ;;  %v2542_v6 = vrot.slane %v2540_v0, 5  ;;  %v3694_v60 = vld [vmem:[%s4591_s14 + $0x48] sm:$0xf] }
  0x84   : > { %v2537_v9 = vor.u32 %v2536_v55, %v2532_v63  ;;  %v2554_v17 = vshll.u32 %v3826_v19, 16  ;;  %v2558_v21 = vshrl.u32 %v3826_v19, 16  ;;  %v2519_v25 = vsel %vm4644_vm6, %v2514_v1, %v2518_v10 }
  0x85   : > { %4206 = vmatmul.mubr.msk.bf16.gmra.mrb[4].mxu0 %vm304_vm1, %v3832_v18  ;;  %v2528_v26 = vrot.slane %v2527_v2, 4  ;;  %v2547_v27 = vrot.slane %v2545_v3, 4  ;;  %v2550_v28 = vrot.slane %v2548_v5, 5  ;;  %v3834_v24 = vcombine.low %v2509_v49, %v2519_v25  ;;  %v3696_v3 = vld [vmem:[%s4591_s14 + $0x50] sm:$0x1] }
  0x86   : > { %4209 = vmatprep.mubr.msk.bf16.mxu0 %vm304_vm1, %v3833_v40  ;;  %v2538_v36 = vrot.slane %v2537_v9, 4  ;;  %v2556_v39 = vrot.slane %v2554_v17, 5  ;;  %v2560_v31 = vrot.slane %v2558_v21, 4  ;;  %v2564_v34 = vshll.u32 %v3827_v16, 16  ;;  %v3695_v40 = vld [vmem:[%s4591_s14 + $0x4c] sm:$0xf] }
  0x87   : > { %v2533_v33 = vsel %vm4644_vm6, %v2528_v26, %v2532_v63  ;;  %v2551_v38 = vor.u32 %v2550_v28, %v2547_v27  ;;  %v3869_v41 = vrot.slane %v3845_v11, 9  ;;  %v2816_v48 = vrot.slane %v3846_v22, 5  ;;  %v3852_v22 = vld [vmem:[%s4591_s14 + $0x34] sm:$0xf]  ;;  %v3853_v28 = vld [vmem:[%s4591_s14 + $0x38] sm:$0x1] }
  0x88   : > { %4130 = vmatmul.mubr.msk.bf16.vlgmr.msra.gmra.mrb[0].mxu1 %vm304_vm1, %v4440_v7  ;;  %v2543_v44 = vsel %vm4644_vm6, %v2538_v36, %v2542_v6  ;;  %v2561_v42 = vor.u32 %v2560_v31, %v2556_v39  ;;  %v2819_v45 = vrot.slane %v3847_v30, 5  ;;  %v2566_v50 = vrot.slane %v2564_v34, 5  ;;  %v3851_v7 = vld [vmem:[%s4591_s14 + $0x30] sm:$0xe]  ;;  %v3854_v31 = vld [vmem:[%s4591_s14 + $0x3c] sm:$0xe] }
  0x89   : > { %4133 = vmatprep.mubr.msk.bf16.mxu1 %vm304_vm1, %v4441_v23  ;;  %4236 = vmatpush3.bf16.msra.mxu1 %v4567_v4  ;;  %v3835_v18 = vcombine.low %v2533_v33, %v2543_v44  ;;  %v2552_v12 = vrot.slane %v2551_v38, 4  ;;  %v3870_v13 = vrot.slane %v3848_v32, 9  ;;  %v5041_v52 = vsel %vm4672_vm7, %v3869_v41, %v2816_v48  ;;  %v3693_v4 = vld [vmem:[%s4591_s14 + $0x44] sm:$0x1]  ;;  %v3855_v41 = vld [vmem:[%s4591_s14 + $0x40] sm:$0xf] }
  0x8a   : > { %v2562_v51 = vrot.slane %v2561_v42, 4  ;;  %v2818_v53 = vrot.slane %v2816_v48, 4  ;;  %v2823_v54 = vrot.slane %v3849_v37, 5  ;;  %v2826_v56 = vrot.slane %v3850_v46, 5  ;;  %v3697_v37 = vld [vmem:[%s4591_s14 + $0x54] sm:$0xf] }
  0x8b   : > { %v2557_v29 = vsel %vm4644_vm6, %v2552_v12, %v2556_v39  ;;  %v1523_v35 = vshrl.u32 %v3691_v14, 16  ;;  %v1526_v57 = vshll.u32 %v3691_v14, 16  ;;  %v1532_v55 = vshll.u32 %v3692_v15, 16  ;;  %v4444_v44 = vld [vmem:[%s4591_s14 + $0x48] sm:$0xff]   ;;  %v3856_v14 = vld [vmem:[%s4591_s14 + $0x44] sm:$0x1] }
  0x8c   : > { %v2567_v10 = vsel %vm4644_vm6, %v2562_v51, %v2566_v50  ;;  %v2820_v58 = vsel %vm4672_vm7, %v2818_v53, %v2819_v45  ;;  %v2825_v59 = vrot.slane %v2823_v54, 4  ;;  %v5057_v62 = vsel %vm4672_vm7, %v3870_v13, %v2823_v54 }
  0x8d   : > { %4210 = vmatmul.mubr.msk.bf16.gmra.mrb[8].mxu0 %vm304_vm1, %v3834_v24  ;;  %v3836_v61 = vcombine.low %v2557_v29, %v2567_v10  ;;  %v1525_v63 = vrot.slane %v1523_v35, 4  ;;  %v1528_v19 = vrot.slane %v1526_v57, 5  ;;  %v3878_v49 = vcombine.low %v5041_v52, %v2820_v58  ;;  %v3700_v10 = vld [vmem:[%s4591_s14 + $0x60] sm:$0xf] }
  0x8e   : > { %4213 = vmatprep.mubr.msk.bf16.mxu0 %vm304_vm1, %v3835_v18  ;;  %v1536_v0 = vshrl.u32 %v3692_v15, 16  ;;  %v1542_v16 = vshll.u32 %v3693_v4, 16  ;;  %v5064_v1 = vsel %vm4672_vm7, %v2825_v59, %v2826_v56  ;;  %v1547_v5 = vshrl.u32 %v3694_v60, 16  ;;  %v4445_v18 = vld [vmem:[%s4591_s14 + $0x54] sm:$0xff]  }
  0x8f   : > { %v1529_v2 = vor.u32 %v1528_v19, %v1525_v63  ;;  %v1550_v11 = vshll.u32 %v3694_v60, 16  ;;  %v1534_v9 = vrot.slane %v1532_v55, 5  ;;  %v1556_v21 = vshll.u32 %v3695_v40, 16  ;;  %v3698_v15 = vld [vmem:[%s4591_s14 + $0x58] sm:$0xf] }
  0x90   : > { %4134 = vmatmul.mubr.msk.bf16.gmra.mrb[4].mxu1 %vm304_vm1, %v4442_v20  ;;  %v1538_v6 = vrot.slane %v1536_v0, 4  ;;  %v1544_v17 = vrot.slane %v1542_v16, 5  ;;  %v1549_v25 = vrot.slane %v1547_v5, 4  ;;  %v1560_v27 = vshrl.u32 %v3695_v40, 16  ;;  %v3699_v20 = vld [vmem:[%s4591_s14 + $0x5c] sm:$0x1] }
  0x91   : > { %4137 = vmatprep.mubr.msk.bf16.mxu1 %vm304_vm1, %v4443_v8  ;;  %v1530_v23 = vrot.slane %v1529_v2, 4  ;;  %v1552_v26 = vrot.slane %v1550_v11, 5  ;;  %v1558_v24 = vrot.slane %v1556_v21, 5  ;;  %v1566_v36 = vshll.u32 %v3696_v3, 16  ;;  %v3701_v40 = vld [vmem:[%s4591_s14 + $0x64] sm:$0xf] }
  0x92   : > { %v1539_v30 = vor.u32 %v1538_v6, %v1534_v9  ;;  %v3871_v39 = vrot.slane %v3851_v7, 9  ;;  %v3879_v32 = vcombine.low %v5057_v62, %v5064_v1  ;;  %v1562_v38 = vrot.slane %v1560_v27, 4  ;;  %v3702_v16 = vld [vmem:[%s4591_s14 + $0x68] sm:$0x1]  ;;  %v3857_v2 = vld [vmem:[%s4591_s14 + $0x48] sm:$0xe] }
  0x93   : > { %v1553_v33 = vor.u32 %v1552_v26, %v1549_v25  ;;  %v2830_v34 = vrot.slane %v3852_v22, 5  ;;  %v1535_v42 = vsel %vm4644_vm6, %v1530_v23, %v1534_v9  ;;  %v1568_v45 = vrot.slane %v1566_v36, 5  ;;  %v3858_v9 = vld [vmem:[%s4591_s14 + $0x4c] sm:$0xf]  ;;  %v4446_v6 = vld [vmem:[%s4591_s14 + $0x60] sm:$0xff]  }
  0x94   : > { %v1540_v48 = vrot.slane %v1539_v30, 4  ;;  %v2833_v46 = vrot.slane %v3853_v28, 5  ;;  %v1563_v50 = vor.u32 %v1562_v38, %v1558_v24  ;;  %v3872_v53 = vrot.slane %v3854_v31, 9  ;;  %v3859_v30 = vld [vmem:[%s4591_s14 + $0x50] sm:$0x1] }
  0x95   : > { %4214 = vmatmul.mubr.msk.bf16.gmra.mrb[12].mxu0 %vm304_vm1, %v3836_v61  ;;  %v1554_v12 = vrot.slane %v1553_v33, 4  ;;  %v2831_v13 = vsel %vm4672_vm7, %v3871_v39, %v2830_v34  ;;  %v2832_v51 = vrot.slane %v2830_v34, 4  ;;  %v2837_v54 = vrot.slane %v3855_v41, 5  ;;  %v3860_v33 = vld [vmem:[%s4591_s14 + $0x54] sm:$0xe] }
  0x96   : > { %4219 = vmatprep.mubr.msk.bf16.mxu0 %vm304_vm1, %v3878_v49  ;;  %v1545_v52 = vsel %vm4644_vm6, %v1540_v48, %v1544_v17  ;;  %v1571_v29 = vshrl.u32 %v3697_v37, 16  ;;  %v1564_v4 = vrot.slane %v1563_v50, 4  ;;  %v2840_v57 = vrot.slane %v3856_v14, 5 }
  0x97   : > { %v1559_v56 = vsel %vm4644_vm6, %v1554_v12, %v1558_v24  ;;  %v2834_v35 = vsel %vm4672_vm7, %v2832_v51, %v2833_v46  ;;  %v3708_v58 = vcombine.low %v1535_v42, %v1545_v52  ;;  %v2839_v60 = vrot.slane %v2837_v54, 4  ;;  %v3862_v46 = vld [vmem:[%s4591_s14 + $0x5c] sm:$0x1] }
  0x98   : > { %4138 = vmatmul.mubr.msk.bf16.gmra.mrb[8].mxu1 %vm304_vm1, %v4444_v44  ;;  %v3880_v59 = vcombine.low %v2831_v13, %v2834_v35  ;;  %v1573_v8 = vrot.slane %v1571_v29, 4  ;;  %v1569_v61 = vsel %vm4644_vm6, %v1564_v4, %v1568_v45  ;;  %v1574_v62 = vshll.u32 %v3697_v37, 16  ;;  %v3861_v37 = vld [vmem:[%s4591_s14 + $0x58] sm:$0xf] }
  0x99   : > { %4141 = vmatprep.mubr.msk.bf16.mxu1 %vm304_vm1, %v4445_v18  ;;  %v1580_v63 = vshll.u32 %v3698_v15, 16  ;;  %v1584_v19 = vshrl.u32 %v3698_v15, 16  ;;  %v5100_v49 = vcombine.low %v1559_v56, %v1569_v61  ;;  %v5104_v55 = vsel %vm4672_vm7, %v3872_v53, %v2837_v54  ;;  %v3085_v54 = vld [vmem:[%s5580_s2 + $0x8] sm:$0xff]  ;;  %v3864_v61 = vld [vmem:[%s4591_s14 + $0x64] sm:$0xf] }
  0x9a   : > { %v1590_v0 = vshll.u32 %v3699_v20, 16  ;;  %v1595_v1 = vshrl.u32 %v3700_v10, 16  ;;  %v2841_v3 = vsel %vm4672_vm7, %v2839_v60, %v2840_v57  ;;  %v1576_v5 = vrot.slane %v1574_v62, 5 }
  0x9b   : > { %v1582_v11 = vrot.slane %v1580_v63, 5  ;;  %v1586_v7 = vrot.slane %v1584_v19, 4  ;;  %v1598_v22 = vshll.u32 %v3700_v10, 16  ;;  %v1604_v23 = vshll.u32 %v3701_v40, 16  ;;  %v5142_v10 = vld [vmem:[%s5580_s2] sm:$0xff] }
  0x9c   : > { %v1592_v17 = vrot.slane %v1590_v0, 5  ;;  %v1597_v21 = vrot.slane %v1595_v1, 4  ;;  %v1577_v25 = vor.u32 %v1576_v5, %v1573_v8  ;;  %v1608_v27 = vshrl.u32 %v3701_v40, 16  ;;  %v3863_v8 = vld [vmem:[%s4591_s14 + $0x60] sm:$0xe] }
  0x9d   : > { %4220 = vmatmul.mubr.msk.bf16.vlgmr.msra.gmra.mrb[0].mxu0 %vm304_vm1, %v3879_v32  ;;  %v1587_v26 = vor.u32 %v1586_v7, %v1582_v11  ;;  %v1614_v28 = vshll.u32 %v3702_v16, 16  ;;  %v1600_v24 = vrot.slane %v1598_v22, 5  ;;  %v5116_v36 = vrot.slane %v1604_v23, 5  ;;  %v3865_v0 = vld [vmem:[%s4591_s14 + $0x68] sm:$0x1] }
  0x9e   : > { %4223 = vmatprep.mubr.msk.bf16.mxu0 %vm304_vm1, %v3880_v59  ;;  %v3873_v39 = vrot.slane %v3857_v2, 9  ;;  %v2844_v31 = vrot.slane %v3858_v9, 5  ;;  %v3881_v38 = vcombine.low %v5104_v55, %v2841_v3  ;;  %v1578_v34 = vrot.slane %v1577_v25, 4  ;;  %v3086_v59 = vld [vmem:[%s5580_s2 + $0x10] sm:$0xff]  ;;  %v3866_v16 = vld [vmem:[%s4591_s14 + $0x6c] sm:$0xe] }
  0x9f   : > { %v1588_v32 = vrot.slane %v1587_v26, 4  ;;  %v1610_v41 = vrot.slane %v1608_v27, 4  ;;  %v1601_v44 = vor.u32 %v1600_v24, %v1597_v21  ;;  %v2847_v45 = vrot.slane %v3859_v30, 5  ;;  %v3868_v3 = vld [vmem:[%s4591_s14 + $0x74] sm:$0x1] }
  0xa0   : > { %4142 = vmatmul.mubr.msk.bf16.gmra.mrb[12].mxu1 %vm304_vm1, %v4446_v6  ;;  %v2845_v42 = vsel %vm4672_vm7, %v3873_v39, %v2844_v31  ;;  %v2846_v48 = vrot.slane %v2844_v31, 4  ;;  %v1583_v14 = vsel %vm4644_vm6, %v1578_v34, %v1582_v11  ;;  %v3874_v50 = vrot.slane %v3860_v33, 9  ;;  %v3087_v6 = vld [vmem:[%s5580_s2 + $0x18] sm:$0xff]  ;;  %v3090_v34 = vld [vmem:[%s5580_s2 + $0x30] sm:$0xff] }
  0xa1   : > { %4155 = vmatprep.mubr.msk.bf16.mxu1 %vm304_vm1, %v3708_v58  ;;  %v1593_v18 = vsel %vm4644_vm6, %v1588_v32, %v1592_v17  ;;  %v1611_v12 = vor.u32 %v1610_v41, %v5116_v36  ;;  %v1602_v13 = vrot.slane %v1601_v44, 4  ;;  %v1616_v51 = vrot.slane %v1614_v28, 5  ;;  %v3088_v17 = vld [vmem:[%s5580_s2 + $0x20] sm:$0xff] }
  0xa2   : > { %v2848_v52 = vsel %vm4672_vm7, %v2846_v48, %v2847_v45  ;;  %v2851_v53 = vrot.slane %v3861_v37, 5  ;;  %v2854_v56 = vrot.slane %v3862_v46, 5  ;;  %v3710_v4 = vcombine.low %v1583_v14, %v1593_v18  ;;  %v5215_v48 = vld [vmem:[%s5580_s2 + $0x40] sm:$0xff] }
  0xa3   : > { %v1612_v15 = vrot.slane %v1611_v12, 4  ;;  %v3882_v29 = vcombine.low %v2845_v42, %v2848_v52  ;;  %v4490_v20 = vmov 0   ;;  %v5144_v58 = vstv %s3100_s5  ;;  %v3091_v42 = vld [vmem:[%s5580_s2 + $0x38] sm:$0xff] }
  0xa4   : > { %v2852_v35 = vsel %vm4672_vm7, %v3874_v50, %v2851_v53  ;;  %v2853_v57 = vrot.slane %v2851_v53, 4  ;;  %4422 = vset.pattern.permute.xlu1 %v4490_v20  ;;  %4421 = vset.pattern.permute.xlu0 %v4490_v20  ;;  %v1607_v60 = vsel %vm4644_vm6, %v1602_v13, %v5116_v36  ;;  %vm3103_vm8 = vcmp.lt.s32.totalorder %v3085_v54, %v5144_v58  ;;  %v3093_v13 = vld [vmem:[%s5580_s2 + $0x48] sm:$0xff] }
  0xa5   : > { %4224 = vmatmul.mubr.msk.bf16.gmra.mrb[4].mxu0 %vm304_vm1, %v3881_v38  ;;  %v1617_v62 = vsel %vm4644_vm6, %v1612_v15, %v1616_v51  ;;  %v3119_v19 = vsel %vm3103_vm8, 1, %v4490_v20  ;;  %v4491_v40 = vmov 0.0   ;;  %vm3102_vm10 = vcmp.lt.s32.totalorder %v5142_v10, %v5144_v58  ;;  %v3089_v38 = vld [vmem:[%s5580_s2 + $0x28] sm:$0xff]  ;;  %v3094_v15 = vld [vmem:[%s5580_s2 + $0x50] sm:$0xff] }
  0xa6   : > { %4227 = vmatprep.mubr.msk.bf16.mxu0 %vm304_vm1, %v3882_v29  ;;  %v2855_v63 = vsel %vm4672_vm7, %v2853_v57, %v2854_v56  ;;  %v3895_v55 = vsel %vm3103_vm8, 1.0, %v4491_v40  ;;  %3138 = vperm.xlu1 %4422, %v3119_v19   ;;  %vm3104_vm11 = vcmp.lt.s32.totalorder %v3086_v59, %v5144_v58  ;;  %v3894_v5 = vsel %vm3102_vm10, 1.0, %v4491_v40  ;;  %v3095_v57 = vld [vmem:[%s5580_s2 + $0x58] sm:$0xff] }
  0xa7   : > { %v3883_v1 = vcombine.low %v2852_v35, %v2855_v63  ;;  %v3232_v2 = vsel %vm3230_vm9, %v3895_v55, 0.0  ;;  %v3120_v11 = vsel %vm3104_vm11, 1, %v4490_v20  ;;  %v3896_v7 = vsel %vm3104_vm11, 1.0, %v4491_v40  ;;  %v3097_v55 = vld [vmem:[%s5580_s2 + $0x68] sm:$0xff] }
  0xa8   : > { %4156 = vmatmul.mubr.msk.bf16.vlgmr.msra.gmra.mrb[8].mxu1 %vm304_vm1, %v5100_v49  ;;  %v3875_v9 = vrot.slane %v3863_v8, 9  ;;  %v3231_v49 = vsel %vm3230_vm9, %v3894_v5, 0.0  ;;  %v3234_v21 = vsel %vm3230_vm9, %v3896_v7, 0.0  ;;  %v2858_v22 = vrot.slane %v3864_v61, 5  ;;  %v3096_v61 = vld [vmem:[%s5580_s2 + $0x60] sm:$0xff] }
  0xa9   : > { %4159 = vmatprep.mubr.msk.bf16.mxu1 %vm304_vm1, %v3710_v4  ;;  %v2861_v23 = vrot.slane %v3865_v0, 5  ;;  %v3233_v25 = vadd.f32 %v3232_v2, %v3231_v49  ;;  %v3876_v26 = vrot.slane %v3866_v16, 9  ;;  %v2865_v27 = vrot.slane %v3867_v47, 5  ;;  %v3098_v2 = vld [vmem:[%s5580_s2 + $0x70] sm:$0xff] }
  0xaa   : > { %v2868_v28 = vrot.slane %v3868_v3, 5  ;;  %3141 = vperm.xlu1 %4422, %v3120_v11   ;;  %v2859_v30 = vsel %vm4672_vm7, %v3875_v9, %v2858_v22  ;;  %v2860_v24 = vrot.slane %v2858_v22, 4  ;;  %vm3105_vm12 = vcmp.lt.s32.totalorder %v3087_v6, %v5144_v58  ;;  %v3099_v11 = vld [vmem:[%s5580_s2 + $0x78] sm:$0xff] }
  0xab   : > { %vm3106_vm13 = vcmp.lt.s32.totalorder %v3088_v17, %v5144_v58  ;;  %v3711_v36 = vcombine.low %v1607_v60, %v1617_v62  ;;  %v3235_v39 = vadd.f32 %v3234_v21, %v3233_v25  ;;  %v2867_v31 = vrot.slane %v2865_v27, 4 }
  0xac   : > { %v3121_v33 = vsel %vm3105_vm12, 1, %v4490_v20  ;;  %v2862_v32 = vsel %vm4672_vm7, %v2860_v24, %v2861_v23  ;;  %v2866_v41 = vsel %vm4672_vm7, %v3876_v26, %v2865_v27  ;;  %v3897_v37 = vsel %vm3105_vm12, 1.0, %v4491_v40 }
  0xad   : > { %4228 = vmatmul.mubr.msk.bf16.gmra.mrb[8].mxu0 %vm304_vm1, %v3883_v1  ;;  %v3898_v44 = vsel %vm3106_vm13, 1.0, %v4491_v40  ;;  %v3884_v45 = vcombine.low %v2859_v30, %v2862_v32  ;;  %v2869_v46 = vsel %vm4672_vm7, %v2867_v31, %v2868_v28  ;;  %v3236_v14 = vsel %vm3230_vm9, %v3897_v37, 0.0 }
  0xae   : > { %v3238_v18 = vsel %vm3230_vm9, %v3898_v44, 0.0  ;;  %3144 = vperm.xlu1 %4422, %v3121_v33   ;;  %v3237_v12 = vadd.f32 %v3236_v14, %v3235_v39  ;;  %vm3107_vm14 = vcmp.lt.s32.totalorder %v3089_v38, %v5144_v58  ;;  %vm3108_vm15 = vcmp.lt.s32.totalorder %v3090_v34, %v5144_v58 }
  0xaf   : > { %4231 = vmatprep.mubr.msk.bf16.mxu0 %vm304_vm1, %v3884_v45  ;;  %v3122_v50 = vsel %vm3106_vm13, 1, %v4490_v20  ;;  %vm3109_vm2 = vcmp.lt.s32.totalorder %v3091_v42, %v5144_v58  ;;  %vm3110_vm3 = vcmp.lt.s32.totalorder %v5215_v48, %v5144_v58  ;;  %v3899_v43 = vsel %vm3107_vm14, 1.0, %v4491_v40 }
  0xb0   : > { %4160 = vmatmul.mubr.msk.bf16.gmra.mrb[12].mxu1 %vm304_vm1, %v3711_v36  ;;  %v3885_v51 = vcombine.low %v2866_v41, %v2869_v46  ;;  %v3239_v52 = vadd.f32 %v3238_v18, %v3237_v12  ;;  %v3900_v53 = vsel %vm3108_vm15, 1.0, %v4491_v40  ;;  %v3901_v54 = vsel %vm3109_vm2, 1.0, %v4491_v40 }
  0xb1   : > { %v3240_v29 = vsel %vm3230_vm9, %v3899_v43, 0.0  ;;  %v3242_v56 = vsel %vm3230_vm9, %v3900_v53, 0.0  ;;  %v3902_v4 = vsel %vm3110_vm3, 1.0, %v4491_v40  ;;  %vm3111_vm4 = vcmp.lt.s32.totalorder %v3093_v13, %v5144_v58 }
  0xb2   : > { %3147 = vperm.xlu1 %4422, %v3122_v50   ;;  %v3241_v35 = vadd.f32 %v3240_v29, %v3239_v52  ;;  %v3123_v59 = vsel %vm3107_vm14, 1, %v4490_v20  ;;  %v3244_v60 = vsel %vm3230_vm9, %v3901_v54, 0.0  ;;  %vm3112_vm5 = vcmp.lt.s32.totalorder %v3094_v15, %v5144_v58 }
  0xb3   : > { %v3903_v62 = vsel %vm3111_vm4, 1.0, %v4491_v40  ;;  %v3246_v63 = vsel %vm3230_vm9, %v3902_v4, 0.0  ;;  %vm3113_vm6 = vcmp.lt.s32.totalorder %v3095_v57, %v5144_v58  ;;  %v3904_v0 = vsel %vm3112_vm5, 1.0, %v4491_v40 }
  0xb4   : > { %v3243_v8 = vadd.f32 %v3242_v56, %v3241_v35  ;;  %v3248_v16 = vsel %vm3230_vm9, %v3903_v62, 0.0  ;;  %v3905_v47 = vsel %vm3113_vm6, 1.0, %v4491_v40  ;;  %v3124_v3 = vsel %vm3108_vm15, 1, %v4490_v20 }
  0xb5   : > { %4232 = vmatmul.mubr.msk.bf16.gmra.mrb[12].mxu0 %vm304_vm1, %v3885_v51  ;;  %vm3114_vm1 = vcmp.lt.s32.totalorder %v3096_v61, %v5144_v58  ;;  %vm3115_vm7 = vcmp.lt.s32.totalorder %v3097_v55, %v5144_v58  ;;  %v3250_v5 = vsel %vm3230_vm9, %v3904_v0, 0.0  ;;  %vm3116_vm8 = vcmp.lt.s32.totalorder %v3098_v2, %v5144_v58 }
  0xb6   : > { %3150 = vperm.xlu1 %4422, %v3123_v59   ;;  %v3245_v19 = vadd.f32 %v3244_v60, %v3243_v8  ;;  %v3906_v7 = vsel %vm3114_vm1, 1.0, %v4491_v40  ;;  %v3252_v6 = vsel %vm3230_vm9, %v3905_v47, 0.0  ;;  %v3125_v17 = vsel %vm3109_vm2, 1, %v4490_v20 }
  0xb7   : > { %v3907_v49 = vsel %vm3115_vm7, 1.0, %v4491_v40  ;;  %vm3117_vm11 = vcmp.lt.s32.totalorder %v3099_v11, %v5144_v58  ;;  %v3254_v22 = vsel %vm3230_vm9, %v3906_v7, 0.0  ;;  %v3908_v23 = vsel %vm3116_vm8, 1.0, %v4491_v40 }
  0xb8   : > { %v3247_v1 = vadd.f32 %v3246_v63, %v3245_v19  ;;  %v3256_v26 = vsel %vm3230_vm9, %v3907_v49, 0.0  ;;  %v3126_v27 = vsel %vm3110_vm3, 1, %v4490_v20  ;;  %v3909_v28 = vsel %vm3117_vm11, 1.0, %v4491_v40 }
  0xb9   : > { %v3258_v24 = vsel %vm3230_vm9, %v3908_v23, 0.0  ;;  %v3260_v39 = vsel %vm3230_vm9, %v3909_v28, 0.0  ;;  %v3127_v31 = vsel %vm3111_vm4, 1, %v4490_v20  ;;  %v3128_v34 = vsel %vm3112_vm5, 1, %v4490_v20 }
  0xba   : > { %v3249_v9 = vadd.f32 %v3248_v16, %v3247_v1  ;;  %3153 = vperm.xlu1 %4422, %v3124_v3   ;;  %v3129_v40 = vsel %vm3113_vm6, 1, %v4490_v20  ;;  %v3130_v32 = vsel %vm3114_vm1, 1, %v4490_v20  ;;  %v3132_v41 = vsel %vm3116_vm8, 1, %v4490_v20 }
  0xbb   : > { %v3118_v37 = vsel %vm3102_vm10, 1, %v4490_v20  ;;  %v3131_v44 = vsel %vm3115_vm7, 1, %v4490_v20  ;;  %v3133_v42 = vsel %vm3117_vm11, 1, %v4490_v20 }
  0xbc   : > { %v3251_v21 = vadd.f32 %v3250_v5, %v3249_v9 }
  0xbe   : > { %v3253_v25 = vadd.f32 %v3252_v6, %v3251_v21  ;;  %3156 = vperm.xlu1 %4422, %v3125_v17  }
  0xc0   : > { %v3255_v30 = vadd.f32 %v3254_v22, %v3253_v25 }
  0xc2   : > { %v3257_v36 = vadd.f32 %v3256_v26, %v3255_v30  ;;  %3159 = vperm.xlu1 %4422, %v3126_v27  }
  0xc4   : > { %v3259_v33 = vadd.f32 %v3258_v24, %v3257_v36 }
  0xc6   : > { %v3261_v38 = vadd.f32 %v3260_v39, %v3259_v33  ;;  %3162 = vperm.xlu1 %4422, %v3127_v31  }
  0xc8   : > { %3262 = vadd.xlane.f32.xlu0 %v3261_v38 }
  0xca   : > { %3165 = vperm.xlu1 %4422, %v3128_v34  }
  0xce   : > { %3168 = vperm.xlu1 %4422, %v3129_v40  }
  0xd2   : > { %3171 = vperm.xlu1 %4422, %v3130_v32  }
  0xd6   : > { %3177 = vperm.xlu1 %4422, %v3132_v41  }
  0xde   : > { %3135 = vperm.xlu0 %4421, %v3118_v37  }
  0xe2   : > { %3174 = vperm.xlu0 %4421, %v3131_v44  }
  0xe6   : > { %3180 = vperm.xlu0 %4421, %v3133_v42  }
 0x125   : > { %v5343_v48 = vpop.permute.xlu1 %3138 }
 0x126   : > { %vm3183_vm13 = vcmp.eq.s32.totalorder %v5343_v48, 1 }
 0x129   : > { %v5345_v45 = vpop.permute.xlu1 %3141 }
 0x12a   : > { %vm3184_vm10 = vcmp.eq.s32.totalorder %v5345_v45, 1 }
 0x12d   : > { %v5347_v46 = vpop.permute.xlu1 %3144 }
 0x12e   : > { %vm3185_vm12 = vcmp.eq.s32.totalorder %v5347_v46, 1 }
 0x131   : > { %v5349_v10 = vpop.permute.xlu1 %3147 }
 0x132   : > { %vm3186_vm14 = vcmp.eq.s32.totalorder %v5349_v10, 1 }
 0x135   : > { %v5351_v14 = vpop.permute.xlu1 %3150 }
 0x136   : > { %vm3187_vm3 = vcmp.eq.s32.totalorder %v5351_v14, 1 }
 0x139   : > { %v5353_v58 = vpop.permute.xlu1 %3153 }
 0x13a   : > { %vm3188_vm15 = vcmp.eq.s32.totalorder %v5353_v58, 1 }
 0x13d   : > { %v5356_v29 = vpop.permute.xlu1 %3156 }
 0x13e   : > { %vm3189_vm2 = vcmp.eq.s32.totalorder %v5356_v29, 1 }
 0x141   : > { %v5362_v59 = vpop.permute.xlu1 %3159 }
 0x142   : > { %vm3190_vm4 = vcmp.eq.s32.totalorder %v5362_v59, 1 }
 0x145   : > { %v5364_v60 = vpop.permute.xlu1 %3162 }
 0x146   : > { %vm3191_vm1 = vcmp.eq.s32.totalorder %v5364_v60, 1 }
 0x149   : > { %v5371_v1 = vpop.permute.xlu1 %3165 }
 0x14a   : > { %vm3192_vm5 = vcmp.eq.s32.totalorder %v5371_v1, 1 }
 0x14d   : > { %v5404_v23 = vpop.permute.xlu1 %3168 }
 0x14e   : > { %vm3193_vm6 = vcmp.eq.s32.totalorder %v5404_v23, 1 }
 0x155   : > { %v3263_v18 = vpop.xlane.xlu0 %3262 }
 0x156   : > { %v3264_v12 = vrot.slane %v3263_v18, 4 }
 0x158   : > { %v3265_v50 = vadd.f32 %v3264_v12, %v3263_v18  ;;  %v5434_v12 = vpop.permute.xlu1 %3171 }
 0x159   : > { %vm3194_vm7 = vcmp.eq.s32.totalorder %v5434_v12, 1 }
 0x15a   : > { %v3266_v43 = vrot.slane %v3265_v50, 2 }
 0x15b   : > { %v4131_v13 = vpop.f32.mrb[0].mxu1 }
 0x15c   : > { %v1291_v20 = vpop.f32.mrb[1].mxu1  ;;  %v3267_v52 = vadd.f32 %v3266_v43, %v3265_v50 }
 0x15d   : > { %v4132_v51 = vpop.f32.mrb[2].mxu1  ;;  %v5366_v63 = vpop.permute.xlu0 %3135 }
 0x15e   : > { %v1294_v53 = vpop.f32.mrb[3].mxu1  ;;  %v3268_v54 = vrot.slane %v3267_v52, 1  ;;  %vm3182_vm9 = vcmp.eq.s32.totalorder %v5366_v63, 1 }
 0x160   : > { %v3269_v15 = vadd.f32 %v3268_v54, %v3267_v52 }
 0x162   : > { %4376 = vpush %v3269_v15 }
 0x163   : > { %v4135_v56 = vpop.f32.mrb[4].mxu1 }
 0x164   : > { %v1307_v4 = vpop.f32.mrb[5].mxu1 }
 0x165   : > { %v4136_v35 = vpop.f32.mrb[6].mxu1 }
 0x166   : > { %v1310_v57 = vpop.f32.mrb[7].mxu1 }
 0x170   : > { %v4221_v8 = vpop.f32.mrb[0].mxu0 }
 0x171   : > { %v4237_v61 = vadd.f32 %v4221_v8, %v4131_v13  ;;  %v2957_v62 = vpop.f32.mrb[1].mxu0 }
 0x172   : > { %v4238_v19 = vadd.f32 %v2957_v62, %v1291_v20  ;;  %v4222_v55 = vpop.f32.mrb[2].mxu0  ;;  %v5438_v20 = vpop.permute.xlu0 %3174 }
 0x173   : > { %v4239_v0 = vadd.f32 %v4222_v55, %v4132_v51  ;;  %v2960_v16 = vpop.f32.mrb[3].mxu0  ;;  %v5376_v47 = vsel %vm3184_vm10, %v4237_v61, 0.0  ;;  %vm3195_vm0 = vcmp.eq.s32.totalorder %v5438_v20, 1 }
 0x174   : > { %v4240_v2 = vadd.f32 %v2960_v16, %v1294_v53  ;;  %v5389_v5 = vsel %vm3182_vm9, %v4238_v19, 0.0 }
 0x175   : > { %v5385_v3 = vsel %vm3185_vm12, %v4239_v0, 0.0 }
 0x176   : > { %v3953_v11 = vpack.c.bf16 %v5385_v3, %v5376_v47  ;;  %v5395_v7 = vsel %vm3183_vm13, %v4240_v2, 0.0 }
 0x177   : > { %v3272_v9 = vadd.f32 %v5395_v7, %v5389_v5  ;;  %v3948_v6 = vpack.c.bf16 %v5395_v7, %v5389_v5 }
 0x178   : > { %3985 = vst [vmem:[%s5381_s30 + $0x8] sm:$0xff] %v3953_v11   ;;  %v4225_v17 = vpop.f32.mrb[4].mxu0 }
 0x179   : > { %v3273_v49 = vadd.f32 %v3272_v9, %v5376_v47  ;;  %3949 = vst [vmem:[%s5381_s30] sm:$0xff] %v3948_v6   ;;  %v4241_v21 = vadd.f32 %v4225_v17, %v4135_v56  ;;  %v2973_v22 = vpop.f32.mrb[5].mxu0  ;;  %v5467_v9 = vpop.permute.xlu1 %3177 }
 0x17a   : > { %v4242_v25 = vadd.f32 %v2973_v22, %v1307_v4  ;;  %v4226_v26 = vpop.f32.mrb[6].mxu0  ;;  %v5470_v17 = vpop.permute.xlu0 %3180  ;;  %vm3196_vm8 = vcmp.eq.s32.totalorder %v5467_v9, 1 }
 0x17b   : > { %v4157_v27 = vpop.f32.mrb[8].mxu1  ;;  %v3274_v28 = vadd.f32 %v3273_v49, %v5385_v3  ;;  %v4243_v30 = vadd.f32 %v4226_v26, %v4136_v35  ;;  %v2976_v24 = vpop.f32.mrb[7].mxu0  ;;  %v5417_v33 = vsel %vm3188_vm15, %v4241_v21, 0.0  ;;  %vm3197_vm11 = vcmp.eq.s32.totalorder %v5470_v17, 1 }
 0x17c   : > { %v1737_v36 = vpop.f32.mrb[9].mxu1  ;;  %v5412_v39 = vsel %vm3186_vm14, %v4242_v25, 0.0  ;;  %v4244_v31 = vadd.f32 %v2976_v24, %v1310_v57 }
 0x17d   : > { %v4158_v38 = vpop.f32.mrb[10].mxu1  ;;  %v3275_v34 = vadd.f32 %v3274_v28, %v5412_v39  ;;  %v5422_v40 = vsel %vm3189_vm2, %v4243_v30, 0.0 }
 0x17e   : > { %v1740_v32 = vpop.f32.mrb[11].mxu1  ;;  %v3963_v41 = vpack.c.bf16 %v5422_v40, %v5417_v33  ;;  %v5428_v37 = vsel %vm3187_vm3, %v4244_v31, 0.0 }
 0x17f   : > { %v3276_v44 = vadd.f32 %v3275_v34, %v5428_v37  ;;  %v3958_v42 = vpack.c.bf16 %v5428_v37, %v5412_v39 }
 0x180   : > { %3987 = vst [vmem:[%s5381_s30 + $0x18] sm:$0xff] %v3963_v41   ;;  %v4229_v18 = vpop.f32.mrb[8].mxu0 }
 0x181   : > { %v3277_v50 = vadd.f32 %v3276_v44, %v5417_v33  ;;  %3986 = vst [vmem:[%s5381_s30 + $0x10] sm:$0xff] %v3958_v42   ;;  %v4245_v43 = vadd.f32 %v4229_v18, %v4157_v27  ;;  %v2989_v13 = vpop.f32.mrb[9].mxu0 }
 0x182   : > { %v4246_v51 = vadd.f32 %v2989_v13, %v1737_v36  ;;  %v4230_v52 = vpop.f32.mrb[10].mxu0 }
 0x183   : > { %v4161_v53 = vpop.f32.mrb[12].mxu1  ;;  %v3278_v54 = vadd.f32 %v3277_v50, %v5422_v40  ;;  %v4247_v15 = vadd.f32 %v4230_v52, %v4158_v38  ;;  %v2992_v56 = vpop.f32.mrb[11].mxu0  ;;  %v5451_v8 = vsel %vm3192_vm5, %v4245_v43, 0.0 }
 0x184   : > { %v1753_v4 = vpop.f32.mrb[13].mxu1  ;;  %v5446_v35 = vsel %vm3190_vm4, %v4246_v51, 0.0  ;;  %v4248_v57 = vadd.f32 %v2992_v56, %v1740_v32 }
 0x185   : > { %v4162_v61 = vpop.f32.mrb[14].mxu1  ;;  %v3279_v62 = vadd.f32 %v3278_v54, %v5446_v35  ;;  %v5456_v19 = vsel %vm3193_vm6, %v4247_v15, 0.0 }
 0x186   : > { %v1756_v55 = vpop.f32.mrb[15].mxu1  ;;  %v3973_v0 = vpack.c.bf16 %v5456_v19, %v5451_v8  ;;  %v5462_v16 = vsel %vm3191_vm1, %v4248_v57, 0.0 }
 0x187   : > { %v3280_v2 = vadd.f32 %v3279_v62, %v5462_v16  ;;  %v3968_v11 = vpack.c.bf16 %v5462_v16, %v5446_v35 }
 0x188   : > { %3989 = vst [vmem:[%s5381_s30 + $0x28] sm:$0xff] %v3973_v0   ;;  %v4233_v6 = vpop.f32.mrb[12].mxu0 }
 0x189   : > { %v3281_v49 = vadd.f32 %v3280_v2, %v5451_v8  ;;  %3988 = vst [vmem:[%s5381_s30 + $0x20] sm:$0xff] %v3968_v11   ;;  %v4249_v21 = vadd.f32 %v4233_v6, %v4161_v53  ;;  %v3005_v22 = vpop.f32.mrb[13].mxu0 }
 0x18a   : > { %v4250_v25 = vadd.f32 %v3005_v22, %v1753_v4  ;;  %v4234_v26 = vpop.f32.mrb[14].mxu0 }
 0x18b   : > { %v3282_v27 = vadd.f32 %v3281_v49, %v5456_v19  ;;  %v4251_v28 = vadd.f32 %v4234_v26, %v4162_v61  ;;  %v3008_v30 = vpop.f32.mrb[15].mxu0  ;;  %v5485_v31 = vsel %vm3196_vm8, %v4249_v21, 0.0 }
 0x18c   : > { %v5480_v24 = vsel %vm3194_vm7, %v4250_v25, 0.0  ;;  %v4252_v36 = vadd.f32 %v3008_v30, %v1756_v55 }
 0x18d   : > { %v3283_v38 = vadd.f32 %v3282_v27, %v5480_v24  ;;  %v5490_v34 = vsel %vm3197_vm11, %v4251_v28, 0.0 }
 0x18e   : > { %v3983_v32 = vpack.c.bf16 %v5490_v34, %v5485_v31  ;;  %v5496_v41 = vsel %vm3195_vm0, %v4252_v36, 0.0 }
 0x18f   : > { %v3284_v44 = vadd.f32 %v3283_v38, %v5496_v41  ;;  %v3978_v42 = vpack.c.bf16 %v5496_v41, %v5480_v24 }
 0x190   : > { %3991 = vst [vmem:[%s5381_s30 + $0x38] sm:$0xff] %v3983_v32  }
 0x191   : > { %v3285_v18 = vadd.f32 %v3284_v44, %v5485_v31  ;;  %3990 = vst [vmem:[%s5381_s30 + $0x30] sm:$0xff] %v3978_v42  }
 0x193   : > { %v3286_v50 = vadd.f32 %v3285_v18, %v5490_v34  ;;  %s4377_s5 = spop %4376 }
 0x194   : > { %s3271_s7 = smax.f32 %s4492_s6, %s4377_s5 }
 0x195   : > { %v3287_v43 = vrot.slane %v3286_v50, 4  ;;  %v3293_v13 = vstv %s3271_s7 }
 0x196   : > { %4447 = vrcp.f32 %v3293_v13 }
 0x197   : > { %v3288_v51 = vadd.f32 %v3287_v43, %v3286_v50 }
 0x199   : > { %v3289_v52 = vrot.slane %v3288_v51, 2 }
 0x19b   : > { %v3290_v53 = vadd.f32 %v3289_v52, %v3288_v51 }
 0x19d   : > { %v3291_v54 = vrot.slane %v3290_v53, 1 }
 0x19f   : > { %v5505_v15 = vadd.f32 %v3291_v54, %v3290_v53 }
 0x1a0   : > { %v4448_v56 = vpop.eup %4447 }
 0x1a1   : > { %v3295_v4 = vmul.f32 %v4448_v56, %v5505_v15 }
 0x1a3   : > { %v3296_v57 = vsub.f32 %v5389_v5, %v3295_v4  ;;  %v3297_v61 = vsub.f32 %v5395_v7, %v3295_v4  ;;  %v3298_v62 = vsub.f32 %v5376_v47, %v3295_v4  ;;  %v3299_v55 = vsub.f32 %v5385_v3, %v3295_v4 }
 0x1a4   : > { %v3300_v0 = vsub.f32 %v5412_v39, %v3295_v4  ;;  %v3301_v2 = vsub.f32 %v5428_v37, %v3295_v4  ;;  %v3302_v11 = vsub.f32 %v5417_v33, %v3295_v4  ;;  %v3303_v6 = vsub.f32 %v5422_v40, %v3295_v4 }
 0x1a5   : > { %v3304_v49 = vsub.f32 %v5446_v35, %v3295_v4  ;;  %v3305_v21 = vsub.f32 %v5462_v16, %v3295_v4  ;;  %v3306_v5 = vsub.f32 %v5451_v8, %v3295_v4  ;;  %v3307_v7 = vsub.f32 %v5456_v19, %v3295_v4 }
 0x1a6   : > { %v3308_v47 = vsub.f32 %v5480_v24, %v3295_v4  ;;  %v3309_v3 = vsub.f32 %v5496_v41, %v3295_v4  ;;  %v3310_v39 = vsub.f32 %v5485_v31, %v3295_v4  ;;  %v3311_v37 = vsub.f32 %v5490_v34, %v3295_v4 }
 0x1a7   : > { %v3312_v33 = vsel %vm3182_vm9, %v3296_v57, 0.0  ;;  %v3313_v40 = vsel %vm3183_vm13, %v3297_v61, 0.0  ;;  %v3314_v8 = vsel %vm3184_vm10, %v3298_v62, 0.0  ;;  %v3315_v19 = vsel %vm3185_vm12, %v3299_v55, 0.0 }
 0x1a8   : > { %v3328_v35 = vmul.f32 %v3312_v33, %v3312_v33  ;;  %v3329_v16 = vmul.f32 %v3313_v40, %v3313_v40  ;;  %v3330_v22 = vmul.f32 %v3314_v8, %v3314_v8  ;;  %v3316_v26 = vsel %vm3186_vm14, %v3300_v0, 0.0 }
 0x1a9   : > { %v3331_v27 = vmul.f32 %v3315_v19, %v3315_v19  ;;  %v3317_v63 = vsel %vm3187_vm3, %v3301_v2, 0.0  ;;  %v3332_v48 = vmul.f32 %v3316_v26, %v3316_v26  ;;  %v3318_v24 = vsel %vm3188_vm15, %v3302_v11, 0.0 }
 0x1aa   : > { %v3344_v25 = vadd.f32 %v3329_v16, %v3328_v35  ;;  %v3333_v45 = vmul.f32 %v3317_v63, %v3317_v63  ;;  %v3319_v46 = vsel %vm3189_vm2, %v3303_v6, 0.0  ;;  %v3334_v31 = vmul.f32 %v3318_v24, %v3318_v24 }
 0x1ab   : > { %v3320_v10 = vsel %vm3190_vm4, %v3304_v49, 0.0  ;;  %v3335_v34 = vmul.f32 %v3319_v46, %v3319_v46  ;;  %v3321_v14 = vsel %vm3191_vm1, %v3305_v21, 0.0  ;;  %v3322_v58 = vsel %vm3192_vm5, %v3306_v5, 0.0 }
 0x1ac   : > { %v3345_v28 = vadd.f32 %v3344_v25, %v3330_v22  ;;  %v3336_v41 = vmul.f32 %v3320_v10, %v3320_v10  ;;  %v3337_v42 = vmul.f32 %v3321_v14, %v3321_v14  ;;  %v3323_v29 = vsel %vm3193_vm6, %v3307_v7, 0.0 }
 0x1ad   : > { %v3338_v50 = vmul.f32 %v3322_v58, %v3322_v58  ;;  %v3324_v59 = vsel %vm3194_vm7, %v3308_v47, 0.0  ;;  %v3339_v13 = vmul.f32 %v3323_v29, %v3323_v29  ;;  %v3325_v60 = vsel %vm3195_vm0, %v3309_v3, 0.0 }
 0x1ae   : > { %v3346_v30 = vadd.f32 %v3345_v28, %v3331_v27  ;;  %v3340_v52 = vmul.f32 %v3324_v59, %v3324_v59  ;;  %v3326_v53 = vsel %vm3196_vm8, %v3310_v39, 0.0  ;;  %v3341_v54 = vmul.f32 %v3325_v60, %v3325_v60 }
 0x1af   : > { %v3327_v56 = vsel %vm3197_vm11, %v3311_v37, 0.0  ;;  %v3342_v4 = vmul.f32 %v3326_v53, %v3326_v53  ;;  %vm5588_vm0 = vcmask 1043456  }
 0x1b0   : > { %v3347_v36 = vadd.f32 %v3346_v30, %v3332_v48  ;;  %v3343_v57 = vmul.f32 %v3327_v56, %v3327_v56 }
 0x1b2   : > { %v3348_v38 = vadd.f32 %v3347_v36, %v3333_v45 }
 0x1b4   : > { %v3349_v32 = vadd.f32 %v3348_v38, %v3334_v31 }
 0x1b6   : > { %v3350_v44 = vadd.f32 %v3349_v32, %v3335_v34 }
 0x1b8   : > { %v3351_v18 = vadd.f32 %v3350_v44, %v3336_v41 }
 0x1ba   : > { %v3352_v43 = vadd.f32 %v3351_v18, %v3337_v42 }
 0x1bc   : > { %v3353_v51 = vadd.f32 %v3352_v43, %v3338_v50 }
 0x1be   : > { %v3354_v1 = vadd.f32 %v3353_v51, %v3339_v13 }
 0x1c0   : > { %v3355_v23 = vadd.f32 %v3354_v1, %v3340_v52 }
 0x1c2   : > { %v3356_v12 = vadd.f32 %v3355_v23, %v3341_v54 }
 0x1c4   : > { %v3357_v61 = vadd.f32 %v3356_v12, %v3342_v4 }
 0x1c6   : > { %v3358_v62 = vadd.f32 %v3357_v61, %v3343_v57 }
 0x1c8   : > { %v3359_v55 = vrot.slane %v3358_v62, 4 }
 0x1ca   : > { %v3360_v20 = vadd.f32 %v3359_v55, %v3358_v62 }
 0x1cc   : > { %v3361_v0 = vrot.slane %v3360_v20, 2 }
 0x1ce   : > { %v3362_v2 = vadd.f32 %v3361_v0, %v3360_v20 }
 0x1d0   : > { %v3363_v11 = vrot.slane %v3362_v2, 1 }
 0x1d2   : > { %v3364_v9 = vadd.f32 %v3363_v11, %v3362_v2 }
 0x1d4   : > { %v3445_v17 = vsel %vm5588_vm0, %v5505_v15, %v3364_v9 }
 0x1d5   : > { %3446 = vst [vmem:[%s239_s11] sm:$0xff] %v3445_v17 }
 0x1d6 PF: > { %s15_s19 = sadd.s32 1, %s4488_s19   ;;  %s5589_s15 = smov %s4480_s17 }
 0x1d7   : > { %p12_p8 = scmp.ge.s32.totalorder %s15_s19, 6   ;;  %s5590_s16 = smov %s4484_s18 }
 0x1d8   : > { %s5591_s17 = smov %s5594_s20  ;;  %s5592_s18 = smov %s5598_s21 }
 0x1d9   :  { %14 = sbr.rel (!%p12_p8) target bundleno = 3 (0x3), region = 85 }

</bundles_post_ra>
